<compile_context>
chip_gen: v7x
topology: tpu7x:2x2x1
jax: 0.10.0
libtpu: 0.0.40
codegen_flags: <defaults>
</compile_context>

<pallas_src>
import functools

import numpy as np
import jax
import jax.numpy as jnp
from jax import lax
from jax.experimental import pallas as pl
from jax.experimental.pallas import tpu as pltpu


_MARGIN = 128  # zero margin (lanes) around each staged image; > max tap shift.


def _round_up(x, m):
    return (x + m - 1) // m * m


@functools.lru_cache(maxsize=None)
def _static_tables(H, W):
    """Border masks + max-pool selection matrices (numpy, built at trace time)."""
    Wp1 = W + 2
    H2, W2 = H // 2, W // 2
    Wp2 = W2 + 2
    H4, W4 = H2 // 2, W2 // 2
    L1 = _round_up((H + 2) * Wp1, 128)
    L2 = _round_up((H2 + 2) * Wp2, 128)
    F = H4 * W4

    m1 = np.zeros((1, L1), np.float32)
    for i in range(1, H + 1):
        m1[0, i * Wp1 + 1:i * Wp1 + W + 1] = 1.0
    m2 = np.zeros((1, L2), np.float32)
    for i in range(1, H2 + 1):
        m2[0, i * Wp2 + 1:i * Wp2 + W2 + 1] = 1.0

    # pool1: window anchor (padded 30x30 flat) -> block-2 padded 16x16 flat slot
    s1 = np.zeros((L1, L2), np.float32)
    for ho in range(H2):
        for wo in range(W2):
            s1[(2 * ho + 1) * Wp1 + (2 * wo + 1), (ho + 1) * Wp2 + (wo + 1)] = 1.0
    # pool2: window anchor (padded 16x16 flat) -> unpadded 7x7 feature slot
    s2 = np.zeros((L2, F), np.float32)
    for ho in range(H4):
        for wo in range(W4):
            s2[(2 * ho + 1) * Wp2 + (2 * wo + 1), ho * W4 + wo] = 1.0
    return m1, m2, s1, s2, (Wp1, Wp2, L1, L2, F)


def _make_fused_kernel(c_hid, cin1, cin2, wp1, wp2, l1, l2):
    P = _MARGIN

    def kernel(x_ref, w1_ref, b1_ref, w2_ref, b2_ref, w3_ref, b3_ref,
               w4_ref, b4_ref, wl_ref, bl_ref, s1_ref, s2_ref,
               m1_ref, m2_ref, o_ref, buf_a, buf_b):
        # Margins (and never-written rows) must read back as exact zeros.
        buf_a[...] = jnp.zeros(buf_a.shape, buf_a.dtype)
        buf_b[...] = jnp.zeros(buf_b.shape, buf_b.dtype)

        def conv3x3_relu(src, w_r, b_r, m_r, wp, L, cin):
            # src rows [0,cin), lanes [P, P+L) hold a zero-bordered image in
            # flat row-major (width = wp) layout.  Returns (c_hid, L).
            acc = jnp.zeros((c_hid, L), jnp.float32)
            for dy in range(3):
                for dx in range(3):
                    s = (dy - 1) * wp + (dx - 1)
                    shifted = src[0:cin, P + s:P + s + L]          # (cin, L)
                    acc = acc + jnp.dot(w_r[dy * 3 + dx], shifted,
                                        preferred_element_type=jnp.float32)
            # bias (c_hid,1) broadcasts over lanes; mask (1,L) zeroes the
            # border/tail so the next layer reads exact padding zeros.
            return jnp.maximum(acc + b_r[...], 0.0) * m_r[...]

        def maxpool2x2(src, sel_r, wp, L):
            m = src[0:c_hid, P:P + L]
            for s in (1, wp, wp + 1):
                m = jnp.maximum(m, src[0:c_hid, P + s:P + s + L])
            # One MXU dot both downsamples (picks window anchors) and
            # re-embeds into the next stage's zero-bordered flat layout.
            return jnp.dot(m, sel_r[...], preferred_element_type=jnp.float32)

        # Stage the (already flat, lane-dense) input image.
        buf_a[0:cin1, P:P + l1] = x_ref[0]

        # block_1
        buf_b[0:c_hid, P:P + l1] = conv3x3_relu(buf_a, w1_ref, b1_ref, m1_ref, wp1, l1, cin1)
        buf_a[0:c_hid, P:P + l1] = conv3x3_relu(buf_b, w2_ref, b2_ref, m1_ref, wp1, l1, cin2)
        buf_b[0:c_hid, P:P + l2] = maxpool2x2(buf_a, s1_ref, wp1, l1)

        # block_2
        buf_a[0:c_hid, P:P + l2] = conv3x3_relu(buf_b, w3_ref, b3_ref, m2_ref, wp2, l2, cin2)
        buf_b[0:c_hid, P:P + l2] = conv3x3_relu(buf_a, w4_ref, b4_ref, m2_ref, wp2, l2, cin2)
        feat = maxpool2x2(buf_b, s2_ref, wp2, l2)              # (c_hid, 7*7)

        # classifier: our (C, H/4*W/4) layout == PyTorch NCHW flatten order.
        logits = bl_ref[...]                                   # (1, n_out)
        for c in range(c_hid):
            logits = logits + jnp.dot(feat[c:c + 1, :], wl_ref[c],
                                      preferred_element_type=jnp.float32)
        o_ref[0] = logits

    return kernel


def fused_forward(params, x_nchw):
    x = x_nchw.astype(jnp.float32)
    B, c_in, H, W = x.shape
    c_hid = params["b1"].shape[0]
    n_out = params["bl"].shape[0]
    m1, m2, s1, s2, (wp1, wp2, l1, l2, n_feat) = _static_tables(H, W)

    cin_p = _round_up(max(c_in, 8), 8)   # pad input channels to a full sublane group
    chid_p = _round_up(c_hid, 8)
    rows = max(cin_p, chid_p)

    # Lane-dense flat padded input (B, cin_p, L1).  This few-KB repack of the raw
    # input is the only XLA-side glue left (all per-layer pad/stack/transpose gone).
    xp = jnp.pad(x, ((0, 0), (0, cin_p - c_in), (1, 1), (1, 1)))
    xp = xp.reshape(B, cin_p, (H + 2) * (W + 2))
    xp = jnp.pad(xp, ((0, 0), (0, 0), (0, l1 - (H + 2) * (W + 2))))

    def w_taps(w, cin_pad):
        # (3,3,ci,co) -> (9, co, ci_pad): one (Cout, Cin) matrix per tap.
        ci, co = w.shape[2], w.shape[3]
        wt = jnp.transpose(w.reshape(9, ci, co), (0, 2, 1))
        return jnp.pad(wt, ((0, 0), (0, 0), (0, cin_pad - ci)))

    w1 = w_taps(params["w1"], cin_p)
    w2 = w_taps(params["w2"], chid_p)
    w3 = w_taps(params["w3"], chid_p)
    w4 = w_taps(params["w4"], chid_p)
    b1 = params["b1"].reshape(c_hid, 1)
    b2 = params["b2"].reshape(c_hid, 1)
    b3 = params["b3"].reshape(c_hid, 1)
    b4 = params["b4"].reshape(c_hid, 1)
    wl3 = params["wl"].reshape(c_hid, n_feat, n_out)
    bl2 = params["bl"].reshape(1, n_out)

    kernel = _make_fused_kernel(c_hid, cin_p, chid_p, wp1, wp2, l1, l2)

    c2 = lambda b: (0, 0)
    c3 = lambda b: (0, 0, 0)
    in_specs = [
        pl.BlockSpec((1, cin_p, l1), lambda b: (b, 0, 0)),
        pl.BlockSpec((9, c_hid, cin_p), c3), pl.BlockSpec((c_hid, 1), c2),
        pl.BlockSpec((9, c_hid, chid_p), c3), pl.BlockSpec((c_hid, 1), c2),
        pl.BlockSpec((9, c_hid, chid_p), c3), pl.BlockSpec((c_hid, 1), c2),
        pl.BlockSpec((9, c_hid, chid_p), c3), pl.BlockSpec((c_hid, 1), c2),
        pl.BlockSpec((c_hid, n_feat, n_out), c3),
        pl.BlockSpec((1, n_out), c2),
        pl.BlockSpec((l1, l2), c2),
        pl.BlockSpec((l2, n_feat), c2),
        pl.BlockSpec((1, l1), c2),
        pl.BlockSpec((1, l2), c2),
    ]

    out = pl.pallas_call(
        kernel,
        out_shape=jax.ShapeDtypeStruct((B, 1, n_out), jnp.float32),
        grid_spec=pltpu.PrefetchScalarGridSpec(
            num_scalar_prefetch=0,
            grid=(B,),
            in_specs=in_specs,
            out_specs=pl.BlockSpec((1, 1, n_out), lambda b: (b, 0, 0)),
            scratch_shapes=[
                pltpu.VMEM((rows, 2 * _MARGIN + l1), jnp.float32),
                pltpu.VMEM((rows, 2 * _MARGIN + l1), jnp.float32),
            ]),
        compiler_params=pltpu.CompilerParams(
            dimension_semantics=("parallel",)),
    )(xp, w1, b1, w2, b2, w3, b3, w4, b4, wl3, bl2,
      jnp.asarray(s1), jnp.asarray(s2), jnp.asarray(m1), jnp.asarray(m2))
    return out.reshape(B, n_out)


forward = jax.jit(fused_forward)


# ----------------------------------------------------------------------------
# Parameters + pure-JAX reference (PyTorch semantics) for a sanity check.
# ----------------------------------------------------------------------------
def init_params(key, input_shape, hidden_units, output_shape):
    ks = jax.random.split(key, 10)

    def conv_w(k, cin, cout):
        std = (2.0 / (3 * 3 * cin)) ** 0.5
        return std * jax.random.normal(k, (3, 3, cin, cout), jnp.float32)

    def vec(k, n):
        return 0.01 * jax.random.normal(k, (n,), jnp.float32)

    feat = hidden_units * 7 * 7
    std_l = (1.0 / feat) ** 0.5
    return {
        "w1": conv_w(ks[0], input_shape, hidden_units), "b1": vec(ks[1], hidden_units),
        "w2": conv_w(ks[2], hidden_units, hidden_units), "b2": vec(ks[3], hidden_units),
        "w3": conv_w(ks[4], hidden_units, hidden_units), "b3": vec(ks[5], hidden_units),
        "w4": conv_w(ks[6], hidden_units, hidden_units), "b4": vec(ks[7], hidden_units),
        "wl": std_l * jax.random.normal(ks[8], (feat, output_shape), jnp.float32),
        "bl": vec(ks[9], output_shape),
    }


def reference_forward(params, x_nchw):
    def conv(x, w, b):
        w_oihw = jnp.transpose(w, (3, 2, 0, 1))
        y = lax.conv_general_dilated(
            x, w_oihw, window_strides=(1, 1), padding=((1, 1), (1, 1)),
            dimension_numbers=("NCHW", "OIHW", "NCHW"),
            precision=lax.Precision.HIGHEST)
        return jnp.maximum(y + b[None, :, None, None], 0.0)

    def pool(x):
        return lax.reduce_window(x, -jnp.inf, lax.max,
                                 (1, 1, 2, 2), (1, 1, 2, 2), "VALID")

    x = x_nchw.astype(jnp.float32)
    x = conv(x, params["w1"], params["b1"])
    x = conv(x, params["w2"], params["b2"])
    x = pool(x)
    x = conv(x, params["w3"], params["b3"])
    x = conv(x, params["w4"], params["b4"])
    x = pool(x)
    x = x.reshape(x.shape[0], -1)
    return jnp.dot(x, params["wl"],
                   precision=lax.Precision.HIGHEST) + params["bl"]


if __name__ == "__main__":
    key = jax.random.PRNGKey(0)
    k_param, k_x = jax.random.split(key)

    B, C_IN, HID, OUT = 2, 1, 8, 10
    H = W = 28  # classifier expects hidden_units * 7 * 7 features -> 28x28 input

    params = init_params(k_param, C_IN, HID, OUT)
    x = jax.random.normal(k_x, (B, C_IN, H, W), jnp.float32)

    out = jax.block_until_ready(forward(params, x))
    assert out.shape == (B, OUT), out.shape

    ref = jax.block_until_ready(reference_forward(params, x))
    err = float(jnp.max(jnp.abs(out - ref)))
    assert err < 1e-2, f"mismatch vs reference: {err}"

    print("KERNEL_OK")
</pallas_src>

<mosaic_0001>
module attributes {stable_mosaic.version = 11 : i64} {
  func.func @kernel(%arg0: i32, %arg1: memref<1x8x1024xf32, #tpu.memory_space<vmem>>, %arg2: memref<9x8x8xf32, #tpu.memory_space<vmem>>, %arg3: memref<8x1xf32, #tpu.memory_space<vmem>>, %arg4: memref<9x8x8xf32, #tpu.memory_space<vmem>>, %arg5: memref<8x1xf32, #tpu.memory_space<vmem>>, %arg6: memref<9x8x8xf32, #tpu.memory_space<vmem>>, %arg7: memref<8x1xf32, #tpu.memory_space<vmem>>, %arg8: memref<9x8x8xf32, #tpu.memory_space<vmem>>, %arg9: memref<8x1xf32, #tpu.memory_space<vmem>>, %arg10: memref<8x49x10xf32, #tpu.memory_space<vmem>>, %arg11: memref<1x10xf32, #tpu.memory_space<vmem>>, %arg12: memref<1024x256xf32, #tpu.memory_space<vmem>>, %arg13: memref<256x49xf32, #tpu.memory_space<vmem>>, %arg14: memref<1x1024xf32, #tpu.memory_space<vmem>>, %arg15: memref<1x256xf32, #tpu.memory_space<vmem>>, %arg16: memref<1x1x10xf32, #tpu.memory_space<vmem>>, %arg17: memref<8x1280xf32, #tpu.memory_space<vmem>>, %arg18: memref<8x1280xf32, #tpu.memory_space<vmem>>) attributes {dimension_semantics = [#tpu.dimension_semantics<parallel>], iteration_bounds = array<i64: 2>, scalar_prefetch = 0 : i64, scratch_operands = 2 : i64, tpu.core_type = #tpu.core_type<tc>, window_params = [{transform_indices = @transform_0, window_bounds = array<i64: 1, 8, 1024>}, {pipeline_mode = #tpu.pipeline_mode<synchronous>, transform_indices = @transform_1, window_bounds = array<i64: 9, 8, 8>}, {pipeline_mode = #tpu.pipeline_mode<synchronous>, transform_indices = @transform_2, window_bounds = array<i64: 8, 1>}, {pipeline_mode = #tpu.pipeline_mode<synchronous>, transform_indices = @transform_3, window_bounds = array<i64: 9, 8, 8>}, {pipeline_mode = #tpu.pipeline_mode<synchronous>, transform_indices = @transform_4, window_bounds = array<i64: 8, 1>}, {pipeline_mode = #tpu.pipeline_mode<synchronous>, transform_indices = @transform_5, window_bounds = array<i64: 9, 8, 8>}, {pipeline_mode = #tpu.pipeline_mode<synchronous>, transform_indices = @transform_6, window_bounds = array<i64: 8, 1>}, {pipeline_mode = #tpu.pipeline_mode<synchronous>, transform_indices = @transform_7, window_bounds = array<i64: 9, 8, 8>}, {pipeline_mode = #tpu.pipeline_mode<synchronous>, transform_indices = @transform_8, window_bounds = array<i64: 8, 1>}, {pipeline_mode = #tpu.pipeline_mode<synchronous>, transform_indices = @transform_9, window_bounds = array<i64: 8, 49, 10>}, {pipeline_mode = #tpu.pipeline_mode<synchronous>, transform_indices = @transform_10, window_bounds = array<i64: 1, 10>}, {pipeline_mode = #tpu.pipeline_mode<synchronous>, transform_indices = @transform_11, window_bounds = array<i64: 1024, 256>}, {pipeline_mode = #tpu.pipeline_mode<synchronous>, transform_indices = @transform_12, window_bounds = array<i64: 256, 49>}, {pipeline_mode = #tpu.pipeline_mode<synchronous>, transform_indices = @transform_13, window_bounds = array<i64: 1, 1024>}, {pipeline_mode = #tpu.pipeline_mode<synchronous>, transform_indices = @transform_14, window_bounds = array<i64: 1, 256>}, {transform_indices = @transform_15, window_bounds = array<i64: 1, 1, 10>}]} {
    %cst = arith.constant 0.000000e+00 : f32
    %0 = vector.broadcast %cst : f32 to vector<8x1280xf32>
    %c0 = arith.constant 0 : index
    %c0_0 = arith.constant 0 : index
    %1 = vector.load %arg17[%c0, %c0_0] : memref<8x1280xf32, #tpu.memory_space<vmem>>, vector<8x1280xf32>
    tpu.vector_store %arg17[%c0, %c0_0], %0 {strides = array<i32>} : memref<8x1280xf32, #tpu.memory_space<vmem>>, vector<8x1280xf32>,
    %cst_1 = arith.constant 0.000000e+00 : f32
    %2 = vector.broadcast %cst_1 : f32 to vector<8x1280xf32>
    %c0_2 = arith.constant 0 : index
    %c0_3 = arith.constant 0 : index
    %3 = vector.load %arg18[%c0_2, %c0_3] : memref<8x1280xf32, #tpu.memory_space<vmem>>, vector<8x1280xf32>
    tpu.vector_store %arg18[%c0_2, %c0_3], %2 {strides = array<i32>} : memref<8x1280xf32, #tpu.memory_space<vmem>>, vector<8x1280xf32>,
    %c0_4 = arith.constant 0 : index
    %c0_5 = arith.constant 0 : index
    %c0_6 = arith.constant 0 : index
    %4 = vector.load %arg1[%c0_4, %c0_5, %c0_6] : memref<1x8x1024xf32, #tpu.memory_space<vmem>>, vector<1x8x1024xf32>
    %5 = vector.shape_cast %4 : vector<1x8x1024xf32> to vector<8x1024xf32>
    %c0_7 = arith.constant 0 : index
    %c128 = arith.constant 128 : index
    %6 = vector.load %arg17[%c0_7, %c128] : memref<8x1280xf32, #tpu.memory_space<vmem>>, vector<8x1024xf32>
    tpu.vector_store %arg17[%c0_7, %c128], %5 {strides = array<i32>} : memref<8x1280xf32, #tpu.memory_space<vmem>>, vector<8x1024xf32>,
    %cst_8 = arith.constant 0.000000e+00 : f32
    %7 = vector.broadcast %cst_8 : f32 to vector<8x1024xf32>
    %c0_9 = arith.constant 0 : index
    %c97 = arith.constant 97 : index
    %8 = vector.load %arg17[%c0_9, %c97] : memref<8x1280xf32, #tpu.memory_space<vmem>>, vector<8x1024xf32>
    %c0_10 = arith.constant 0 : index
    %c0_11 = arith.constant 0 : index
    %c0_12 = arith.constant 0 : index
    %9 = vector.load %arg2[%c0_10, %c0_11, %c0_12] : memref<9x8x8xf32, #tpu.memory_space<vmem>>, vector<1x8x8xf32>
    %10 = vector.shape_cast %9 : vector<1x8x8xf32> to vector<8x8xf32>
    %cst_13 = arith.constant dense<0.000000e+00> : vector<8x1024xf32>
    %11 = tpu.matmul %10, %8, %cst_13 {dimension_numbers = #tpu.dot_dimension_numbers<[1], [0], [0], [1], [0, 0, 1, 1], [], []>} : vector<8x8xf32>, vector<8x1024xf32>, vector<8x1024xf32> -> vector<8x1024xf32>
    %12 = arith.addf %7, %11 : vector<8x1024xf32>
    %c0_14 = arith.constant 0 : index
    %c98 = arith.constant 98 : index
    %13 = vector.load %arg17[%c0_14, %c98] : memref<8x1280xf32, #tpu.memory_space<vmem>>, vector<8x1024xf32>
    %c1 = arith.constant 1 : index
    %c0_15 = arith.constant 0 : index
    %c0_16 = arith.constant 0 : index
    %14 = vector.load %arg2[%c1, %c0_15, %c0_16] : memref<9x8x8xf32, #tpu.memory_space<vmem>>, vector<1x8x8xf32>
    %15 = vector.shape_cast %14 : vector<1x8x8xf32> to vector<8x8xf32>
    %cst_17 = arith.constant dense<0.000000e+00> : vector<8x1024xf32>
    %16 = tpu.matmul %15, %13, %cst_17 {dimension_numbers = #tpu.dot_dimension_numbers<[1], [0], [0], [1], [0, 0, 1, 1], [], []>} : vector<8x8xf32>, vector<8x1024xf32>, vector<8x1024xf32> -> vector<8x1024xf32>
    %17 = arith.addf %12, %16 : vector<8x1024xf32>
    %c0_18 = arith.constant 0 : index
    %c99 = arith.constant 99 : index
    %18 = vector.load %arg17[%c0_18, %c99] : memref<8x1280xf32, #tpu.memory_space<vmem>>, vector<8x1024xf32>
    %c2 = arith.constant 2 : index
    %c0_19 = arith.constant 0 : index
    %c0_20 = arith.constant 0 : index
    %19 = vector.load %arg2[%c2, %c0_19, %c0_20] : memref<9x8x8xf32, #tpu.memory_space<vmem>>, vector<1x8x8xf32>
    %20 = vector.shape_cast %19 : vector<1x8x8xf32> to vector<8x8xf32>
    %cst_21 = arith.constant dense<0.000000e+00> : vector<8x1024xf32>
    %21 = tpu.matmul %20, %18, %cst_21 {dimension_numbers = #tpu.dot_dimension_numbers<[1], [0], [0], [1], [0, 0, 1, 1], [], []>} : vector<8x8xf32>, vector<8x1024xf32>, vector<8x1024xf32> -> vector<8x1024xf32>
    %22 = arith.addf %17, %21 : vector<8x1024xf32>
    %c0_22 = arith.constant 0 : index
    %c127 = arith.constant 127 : index
    %23 = vector.load %arg17[%c0_22, %c127] : memref<8x1280xf32, #tpu.memory_space<vmem>>, vector<8x1024xf32>
    %c3 = arith.constant 3 : index
    %c0_23 = arith.constant 0 : index
    %c0_24 = arith.constant 0 : index
    %24 = vector.load %arg2[%c3, %c0_23, %c0_24] : memref<9x8x8xf32, #tpu.memory_space<vmem>>, vector<1x8x8xf32>
    %25 = vector.shape_cast %24 : vector<1x8x8xf32> to vector<8x8xf32>
    %cst_25 = arith.constant dense<0.000000e+00> : vector<8x1024xf32>
    %26 = tpu.matmul %25, %23, %cst_25 {dimension_numbers = #tpu.dot_dimension_numbers<[1], [0], [0], [1], [0, 0, 1, 1], [], []>} : vector<8x8xf32>, vector<8x1024xf32>, vector<8x1024xf32> -> vector<8x1024xf32>
    %27 = arith.addf %22, %26 : vector<8x1024xf32>
    %c0_26 = arith.constant 0 : index
    %c128_27 = arith.constant 128 : index
    %28 = vector.load %arg17[%c0_26, %c128_27] : memref<8x1280xf32, #tpu.memory_space<vmem>>, vector<8x1024xf32>
    %c4 = arith.constant 4 : index
    %c0_28 = arith.constant 0 : index
    %c0_29 = arith.constant 0 : index
    %29 = vector.load %arg2[%c4, %c0_28, %c0_29] : memref<9x8x8xf32, #tpu.memory_space<vmem>>, vector<1x8x8xf32>
    %30 = vector.shape_cast %29 : vector<1x8x8xf32> to vector<8x8xf32>
    %cst_30 = arith.constant dense<0.000000e+00> : vector<8x1024xf32>
    %31 = tpu.matmul %30, %28, %cst_30 {dimension_numbers = #tpu.dot_dimension_numbers<[1], [0], [0], [1], [0, 0, 1, 1], [], []>} : vector<8x8xf32>, vector<8x1024xf32>, vector<8x1024xf32> -> vector<8x1024xf32>
    %32 = arith.addf %27, %31 : vector<8x1024xf32>
    %c0_31 = arith.constant 0 : index
    %c129 = arith.constant 129 : index
    %33 = vector.load %arg17[%c0_31, %c129] : memref<8x1280xf32, #tpu.memory_space<vmem>>, vector<8x1024xf32>
    %c5 = arith.constant 5 : index
    %c0_32 = arith.constant 0 : index
    %c0_33 = arith.constant 0 : index
    %34 = vector.load %arg2[%c5, %c0_32, %c0_33] : memref<9x8x8xf32, #tpu.memory_space<vmem>>, vector<1x8x8xf32>
    %35 = vector.shape_cast %34 : vector<1x8x8xf32> to vector<8x8xf32>
    %cst_34 = arith.constant dense<0.000000e+00> : vector<8x1024xf32>
    %36 = tpu.matmul %35, %33, %cst_34 {dimension_numbers = #tpu.dot_dimension_numbers<[1], [0], [0], [1], [0, 0, 1, 1], [], []>} : vector<8x8xf32>, vector<8x1024xf32>, vector<8x1024xf32> -> vector<8x1024xf32>
    %37 = arith.addf %32, %36 : vector<8x1024xf32>
    %c0_35 = arith.constant 0 : index
    %c157 = arith.constant 157 : index
    %38 = vector.load %arg17[%c0_35, %c157] : memref<8x1280xf32, #tpu.memory_space<vmem>>, vector<8x1024xf32>
    %c6 = arith.constant 6 : index
    %c0_36 = arith.constant 0 : index
    %c0_37 = arith.constant 0 : index
    %39 = vector.load %arg2[%c6, %c0_36, %c0_37] : memref<9x8x8xf32, #tpu.memory_space<vmem>>, vector<1x8x8xf32>
    %40 = vector.shape_cast %39 : vector<1x8x8xf32> to vector<8x8xf32>
    %cst_38 = arith.constant dense<0.000000e+00> : vector<8x1024xf32>
    %41 = tpu.matmul %40, %38, %cst_38 {dimension_numbers = #tpu.dot_dimension_numbers<[1], [0], [0], [1], [0, 0, 1, 1], [], []>} : vector<8x8xf32>, vector<8x1024xf32>, vector<8x1024xf32> -> vector<8x1024xf32>
    %42 = arith.addf %37, %41 : vector<8x1024xf32>
    %c0_39 = arith.constant 0 : index
    %c158 = arith.constant 158 : index
    %43 = vector.load %arg17[%c0_39, %c158] : memref<8x1280xf32, #tpu.memory_space<vmem>>, vector<8x1024xf32>
    %c7 = arith.constant 7 : index
    %c0_40 = arith.constant 0 : index
    %c0_41 = arith.constant 0 : index
    %44 = vector.load %arg2[%c7, %c0_40, %c0_41] : memref<9x8x8xf32, #tpu.memory_space<vmem>>, vector<1x8x8xf32>
    %45 = vector.shape_cast %44 : vector<1x8x8xf32> to vector<8x8xf32>
    %cst_42 = arith.constant dense<0.000000e+00> : vector<8x1024xf32>
    %46 = tpu.matmul %45, %43, %cst_42 {dimension_numbers = #tpu.dot_dimension_numbers<[1], [0], [0], [1], [0, 0, 1, 1], [], []>} : vector<8x8xf32>, vector<8x1024xf32>, vector<8x1024xf32> -> vector<8x1024xf32>
    %47 = arith.addf %42, %46 : vector<8x1024xf32>
    %c0_43 = arith.constant 0 : index
    %c159 = arith.constant 159 : index
    %48 = vector.load %arg17[%c0_43, %c159] : memref<8x1280xf32, #tpu.memory_space<vmem>>, vector<8x1024xf32>
    %c8 = arith.constant 8 : index
    %c0_44 = arith.constant 0 : index
    %c0_45 = arith.constant 0 : index
    %49 = vector.load %arg2[%c8, %c0_44, %c0_45] : memref<9x8x8xf32, #tpu.memory_space<vmem>>, vector<1x8x8xf32>
    %50 = vector.shape_cast %49 : vector<1x8x8xf32> to vector<8x8xf32>
    %cst_46 = arith.constant dense<0.000000e+00> : vector<8x1024xf32>
    %51 = tpu.matmul %50, %48, %cst_46 {dimension_numbers = #tpu.dot_dimension_numbers<[1], [0], [0], [1], [0, 0, 1, 1], [], []>} : vector<8x8xf32>, vector<8x1024xf32>, vector<8x1024xf32> -> vector<8x1024xf32>
    %52 = arith.addf %47, %51 : vector<8x1024xf32>
    %c0_47 = arith.constant 0 : index
    %c0_48 = arith.constant 0 : index
    %53 = vector.load %arg3[%c0_47, %c0_48] : memref<8x1xf32, #tpu.memory_space<vmem>>, vector<8x1xf32>
    %54 = vector.broadcast %53 : vector<8x1xf32> to vector<8x1024xf32>
    %55 = arith.addf %52, %54 : vector<8x1024xf32>
    %cst_49 = arith.constant 0.000000e+00 : f32
    %56 = vector.broadcast %cst_49 : f32 to vector<8x1024xf32>
    %57 = arith.maximumf %55, %56 : vector<8x1024xf32>
    %c0_50 = arith.constant 0 : index
    %c0_51 = arith.constant 0 : index
    %58 = vector.load %arg14[%c0_50, %c0_51] : memref<1x1024xf32, #tpu.memory_space<vmem>>, vector<1x1024xf32>
    %59 = vector.broadcast %58 : vector<1x1024xf32> to vector<8x1024xf32>
    %60 = arith.mulf %57, %59 : vector<8x1024xf32>
    %c0_52 = arith.constant 0 : index
    %c128_53 = arith.constant 128 : index
    %61 = vector.load %arg18[%c0_52, %c128_53] : memref<8x1280xf32, #tpu.memory_space<vmem>>, vector<8x1024xf32>
    tpu.vector_store %arg18[%c0_52, %c128_53], %60 {strides = array<i32>} : memref<8x1280xf32, #tpu.memory_space<vmem>>, vector<8x1024xf32>,
    %cst_54 = arith.constant 0.000000e+00 : f32
    %62 = vector.broadcast %cst_54 : f32 to vector<8x1024xf32>
    %c0_55 = arith.constant 0 : index
    %c97_56 = arith.constant 97 : index
    %63 = vector.load %arg18[%c0_55, %c97_56] : memref<8x1280xf32, #tpu.memory_space<vmem>>, vector<8x1024xf32>
    %c0_57 = arith.constant 0 : index
    %c0_58 = arith.constant 0 : index
    %c0_59 = arith.constant 0 : index
    %64 = vector.load %arg4[%c0_57, %c0_58, %c0_59] : memref<9x8x8xf32, #tpu.memory_space<vmem>>, vector<1x8x8xf32>
    %65 = vector.shape_cast %64 : vector<1x8x8xf32> to vector<8x8xf32>
    %cst_60 = arith.constant dense<0.000000e+00> : vector<8x1024xf32>
    %66 = tpu.matmul %65, %63, %cst_60 {dimension_numbers = #tpu.dot_dimension_numbers<[1], [0], [0], [1], [0, 0, 1, 1], [], []>} : vector<8x8xf32>, vector<8x1024xf32>, vector<8x1024xf32> -> vector<8x1024xf32>
    %67 = arith.addf %62, %66 : vector<8x1024xf32>
    %c0_61 = arith.constant 0 : index
    %c98_62 = arith.constant 98 : index
    %68 = vector.load %arg18[%c0_61, %c98_62] : memref<8x1280xf32, #tpu.memory_space<vmem>>, vector<8x1024xf32>
    %c1_63 = arith.constant 1 : index
    %c0_64 = arith.constant 0 : index
    %c0_65 = arith.constant 0 : index
    %69 = vector.load %arg4[%c1_63, %c0_64, %c0_65] : memref<9x8x8xf32, #tpu.memory_space<vmem>>, vector<1x8x8xf32>
    %70 = vector.shape_cast %69 : vector<1x8x8xf32> to vector<8x8xf32>
    %cst_66 = arith.constant dense<0.000000e+00> : vector<8x1024xf32>
    %71 = tpu.matmul %70, %68, %cst_66 {dimension_numbers = #tpu.dot_dimension_numbers<[1], [0], [0], [1], [0, 0, 1, 1], [], []>} : vector<8x8xf32>, vector<8x1024xf32>, vector<8x1024xf32> -> vector<8x1024xf32>
    %72 = arith.addf %67, %71 : vector<8x1024xf32>
    %c0_67 = arith.constant 0 : index
    %c99_68 = arith.constant 99 : index
    %73 = vector.load %arg18[%c0_67, %c99_68] : memref<8x1280xf32, #tpu.memory_space<vmem>>, vector<8x1024xf32>
    %c2_69 = arith.constant 2 : index
    %c0_70 = arith.constant 0 : index
    %c0_71 = arith.constant 0 : index
    %74 = vector.load %arg4[%c2_69, %c0_70, %c0_71] : memref<9x8x8xf32, #tpu.memory_space<vmem>>, vector<1x8x8xf32>
    %75 = vector.shape_cast %74 : vector<1x8x8xf32> to vector<8x8xf32>
    %cst_72 = arith.constant dense<0.000000e+00> : vector<8x1024xf32>
    %76 = tpu.matmul %75, %73, %cst_72 {dimension_numbers = #tpu.dot_dimension_numbers<[1], [0], [0], [1], [0, 0, 1, 1], [], []>} : vector<8x8xf32>, vector<8x1024xf32>, vector<8x1024xf32> -> vector<8x1024xf32>
    %77 = arith.addf %72, %76 : vector<8x1024xf32>
    %c0_73 = arith.constant 0 : index
    %c127_74 = arith.constant 127 : index
    %78 = vector.load %arg18[%c0_73, %c127_74] : memref<8x1280xf32, #tpu.memory_space<vmem>>, vector<8x1024xf32>
    %c3_75 = arith.constant 3 : index
    %c0_76 = arith.constant 0 : index
    %c0_77 = arith.constant 0 : index
    %79 = vector.load %arg4[%c3_75, %c0_76, %c0_77] : memref<9x8x8xf32, #tpu.memory_space<vmem>>, vector<1x8x8xf32>
    %80 = vector.shape_cast %79 : vector<1x8x8xf32> to vector<8x8xf32>
    %cst_78 = arith.constant dense<0.000000e+00> : vector<8x1024xf32>
    %81 = tpu.matmul %80, %78, %cst_78 {dimension_numbers = #tpu.dot_dimension_numbers<[1], [0], [0], [1], [0, 0, 1, 1], [], []>} : vector<8x8xf32>, vector<8x1024xf32>, vector<8x1024xf32> -> vector<8x1024xf32>
    %82 = arith.addf %77, %81 : vector<8x1024xf32>
    %c0_79 = arith.constant 0 : index
    %c128_80 = arith.constant 128 : index
    %83 = vector.load %arg18[%c0_79, %c128_80] : memref<8x1280xf32, #tpu.memory_space<vmem>>, vector<8x1024xf32>
    %c4_81 = arith.constant 4 : index
    %c0_82 = arith.constant 0 : index
    %c0_83 = arith.constant 0 : index
    %84 = vector.load %arg4[%c4_81, %c0_82, %c0_83] : memref<9x8x8xf32, #tpu.memory_space<vmem>>, vector<1x8x8xf32>
    %85 = vector.shape_cast %84 : vector<1x8x8xf32> to vector<8x8xf32>
    %cst_84 = arith.constant dense<0.000000e+00> : vector<8x1024xf32>
    %86 = tpu.matmul %85, %83, %cst_84 {dimension_numbers = #tpu.dot_dimension_numbers<[1], [0], [0], [1], [0, 0, 1, 1], [], []>} : vector<8x8xf32>, vector<8x1024xf32>, vector<8x1024xf32> -> vector<8x1024xf32>
    %87 = arith.addf %82, %86 : vector<8x1024xf32>
    %c0_85 = arith.constant 0 : index
    %c129_86 = arith.constant 129 : index
    %88 = vector.load %arg18[%c0_85, %c129_86] : memref<8x1280xf32, #tpu.memory_space<vmem>>, vector<8x1024xf32>
    %c5_87 = arith.constant 5 : index
    %c0_88 = arith.constant 0 : index
    %c0_89 = arith.constant 0 : index
    %89 = vector.load %arg4[%c5_87, %c0_88, %c0_89] : memref<9x8x8xf32, #tpu.memory_space<vmem>>, vector<1x8x8xf32>
    %90 = vector.shape_cast %89 : vector<1x8x8xf32> to vector<8x8xf32>
    %cst_90 = arith.constant dense<0.000000e+00> : vector<8x1024xf32>
    %91 = tpu.matmul %90, %88, %cst_90 {dimension_numbers = #tpu.dot_dimension_numbers<[1], [0], [0], [1], [0, 0, 1, 1], [], []>} : vector<8x8xf32>, vector<8x1024xf32>, vector<8x1024xf32> -> vector<8x1024xf32>
    %92 = arith.addf %87, %91 : vector<8x1024xf32>
    %c0_91 = arith.constant 0 : index
    %c157_92 = arith.constant 157 : index
    %93 = vector.load %arg18[%c0_91, %c157_92] : memref<8x1280xf32, #tpu.memory_space<vmem>>, vector<8x1024xf32>
    %c6_93 = arith.constant 6 : index
    %c0_94 = arith.constant 0 : index
    %c0_95 = arith.constant 0 : index
    %94 = vector.load %arg4[%c6_93, %c0_94, %c0_95] : memref<9x8x8xf32, #tpu.memory_space<vmem>>, vector<1x8x8xf32>
    %95 = vector.shape_cast %94 : vector<1x8x8xf32> to vector<8x8xf32>
    %cst_96 = arith.constant dense<0.000000e+00> : vector<8x1024xf32>
    %96 = tpu.matmul %95, %93, %cst_96 {dimension_numbers = #tpu.dot_dimension_numbers<[1], [0], [0], [1], [0, 0, 1, 1], [], []>} : vector<8x8xf32>, vector<8x1024xf32>, vector<8x1024xf32> -> vector<8x1024xf32>
    %97 = arith.addf %92, %96 : vector<8x1024xf32>
    %c0_97 = arith.constant 0 : index
    %c158_98 = arith.constant 158 : index
    %98 = vector.load %arg18[%c0_97, %c158_98] : memref<8x1280xf32, #tpu.memory_space<vmem>>, vector<8x1024xf32>
    %c7_99 = arith.constant 7 : index
    %c0_100 = arith.constant 0 : index
    %c0_101 = arith.constant 0 : index
    %99 = vector.load %arg4[%c7_99, %c0_100, %c0_101] : memref<9x8x8xf32, #tpu.memory_space<vmem>>, vector<1x8x8xf32>
    %100 = vector.shape_cast %99 : vector<1x8x8xf32> to vector<8x8xf32>
    %cst_102 = arith.constant dense<0.000000e+00> : vector<8x1024xf32>
    %101 = tpu.matmul %100, %98, %cst_102 {dimension_numbers = #tpu.dot_dimension_numbers<[1], [0], [0], [1], [0, 0, 1, 1], [], []>} : vector<8x8xf32>, vector<8x1024xf32>, vector<8x1024xf32> -> vector<8x1024xf32>
    %102 = arith.addf %97, %101 : vector<8x1024xf32>
    %c0_103 = arith.constant 0 : index
    %c159_104 = arith.constant 159 : index
    %103 = vector.load %arg18[%c0_103, %c159_104] : memref<8x1280xf32, #tpu.memory_space<vmem>>, vector<8x1024xf32>
    %c8_105 = arith.constant 8 : index
    %c0_106 = arith.constant 0 : index
    %c0_107 = arith.constant 0 : index
    %104 = vector.load %arg4[%c8_105, %c0_106, %c0_107] : memref<9x8x8xf32, #tpu.memory_space<vmem>>, vector<1x8x8xf32>
    %105 = vector.shape_cast %104 : vector<1x8x8xf32> to vector<8x8xf32>
    %cst_108 = arith.constant dense<0.000000e+00> : vector<8x1024xf32>
    %106 = tpu.matmul %105, %103, %cst_108 {dimension_numbers = #tpu.dot_dimension_numbers<[1], [0], [0], [1], [0, 0, 1, 1], [], []>} : vector<8x8xf32>, vector<8x1024xf32>, vector<8x1024xf32> -> vector<8x1024xf32>
    %107 = arith.addf %102, %106 : vector<8x1024xf32>
    %c0_109 = arith.constant 0 : index
    %c0_110 = arith.constant 0 : index
    %108 = vector.load %arg5[%c0_109, %c0_110] : memref<8x1xf32, #tpu.memory_space<vmem>>, vector<8x1xf32>
    %109 = vector.broadcast %108 : vector<8x1xf32> to vector<8x1024xf32>
    %110 = arith.addf %107, %109 : vector<8x1024xf32>
    %cst_111 = arith.constant 0.000000e+00 : f32
    %111 = vector.broadcast %cst_111 : f32 to vector<8x1024xf32>
    %112 = arith.maximumf %110, %111 : vector<8x1024xf32>
    %c0_112 = arith.constant 0 : index
    %c0_113 = arith.constant 0 : index
    %113 = vector.load %arg14[%c0_112, %c0_113] : memref<1x1024xf32, #tpu.memory_space<vmem>>, vector<1x1024xf32>
    %114 = vector.broadcast %113 : vector<1x1024xf32> to vector<8x1024xf32>
    %115 = arith.mulf %112, %114 : vector<8x1024xf32>
    %c0_114 = arith.constant 0 : index
    %c128_115 = arith.constant 128 : index
    %116 = vector.load %arg17[%c0_114, %c128_115] : memref<8x1280xf32, #tpu.memory_space<vmem>>, vector<8x1024xf32>
    tpu.vector_store %arg17[%c0_114, %c128_115], %115 {strides = array<i32>} : memref<8x1280xf32, #tpu.memory_space<vmem>>, vector<8x1024xf32>,
    %c0_116 = arith.constant 0 : index
    %c128_117 = arith.constant 128 : index
    %117 = vector.load %arg17[%c0_116, %c128_117] : memref<8x1280xf32, #tpu.memory_space<vmem>>, vector<8x1024xf32>
    %c0_118 = arith.constant 0 : index
    %c129_119 = arith.constant 129 : index
    %118 = vector.load %arg17[%c0_118, %c129_119] : memref<8x1280xf32, #tpu.memory_space<vmem>>, vector<8x1024xf32>
    %119 = arith.maximumf %117, %118 : vector<8x1024xf32>
    %c0_120 = arith.constant 0 : index
    %c158_121 = arith.constant 158 : index
    %120 = vector.load %arg17[%c0_120, %c158_121] : memref<8x1280xf32, #tpu.memory_space<vmem>>, vector<8x1024xf32>
    %121 = arith.maximumf %119, %120 : vector<8x1024xf32>
    %c0_122 = arith.constant 0 : index
    %c159_123 = arith.constant 159 : index
    %122 = vector.load %arg17[%c0_122, %c159_123] : memref<8x1280xf32, #tpu.memory_space<vmem>>, vector<8x1024xf32>
    %123 = arith.maximumf %121, %122 : vector<8x1024xf32>
    %c0_124 = arith.constant 0 : index
    %c0_125 = arith.constant 0 : index
    %124 = vector.load %arg12[%c0_124, %c0_125] : memref<1024x256xf32, #tpu.memory_space<vmem>>, vector<1024x256xf32>
    %cst_126 = arith.constant dense<0.000000e+00> : vector<8x256xf32>
    %125 = tpu.matmul %123, %124, %cst_126 {dimension_numbers = #tpu.dot_dimension_numbers<[1], [0], [0], [1], [0, 0, 1, 1], [], []>} : vector<8x1024xf32>, vector<1024x256xf32>, vector<8x256xf32> -> vector<8x256xf32>
    %c0_127 = arith.constant 0 : index
    %c128_128 = arith.constant 128 : index
    %126 = vector.load %arg18[%c0_127, %c128_128] : memref<8x1280xf32, #tpu.memory_space<vmem>>, vector<8x256xf32>
    tpu.vector_store %arg18[%c0_127, %c128_128], %125 {strides = array<i32>} : memref<8x1280xf32, #tpu.memory_space<vmem>>, vector<8x256xf32>,
    %cst_129 = arith.constant 0.000000e+00 : f32
    %127 = vector.broadcast %cst_129 : f32 to vector<8x256xf32>
    %c0_130 = arith.constant 0 : index
    %c111 = arith.constant 111 : index
    %128 = vector.load %arg18[%c0_130, %c111] : memref<8x1280xf32, #tpu.memory_space<vmem>>, vector<8x256xf32>
    %c0_131 = arith.constant 0 : index
    %c0_132 = arith.constant 0 : index
    %c0_133 = arith.constant 0 : index
    %129 = vector.load %arg6[%c0_131, %c0_132, %c0_133] : memref<9x8x8xf32, #tpu.memory_space<vmem>>, vector<1x8x8xf32>
    %130 = vector.shape_cast %129 : vector<1x8x8xf32> to vector<8x8xf32>
    %cst_134 = arith.constant dense<0.000000e+00> : vector<8x256xf32>
    %131 = tpu.matmul %130, %128, %cst_134 {dimension_numbers = #tpu.dot_dimension_numbers<[1], [0], [0], [1], [0, 0, 1, 1], [], []>} : vector<8x8xf32>, vector<8x256xf32>, vector<8x256xf32> -> vector<8x256xf32>
    %132 = arith.addf %127, %131 : vector<8x256xf32>
    %c0_135 = arith.constant 0 : index
    %c112 = arith.constant 112 : index
    %133 = vector.load %arg18[%c0_135, %c112] : memref<8x1280xf32, #tpu.memory_space<vmem>>, vector<8x256xf32>
    %c1_136 = arith.constant 1 : index
    %c0_137 = arith.constant 0 : index
    %c0_138 = arith.constant 0 : index
    %134 = vector.load %arg6[%c1_136, %c0_137, %c0_138] : memref<9x8x8xf32, #tpu.memory_space<vmem>>, vector<1x8x8xf32>
    %135 = vector.shape_cast %134 : vector<1x8x8xf32> to vector<8x8xf32>
    %cst_139 = arith.constant dense<0.000000e+00> : vector<8x256xf32>
    %136 = tpu.matmul %135, %133, %cst_139 {dimension_numbers = #tpu.dot_dimension_numbers<[1], [0], [0], [1], [0, 0, 1, 1], [], []>} : vector<8x8xf32>, vector<8x256xf32>, vector<8x256xf32> -> vector<8x256xf32>
    %137 = arith.addf %132, %136 : vector<8x256xf32>
    %c0_140 = arith.constant 0 : index
    %c113 = arith.constant 113 : index
    %138 = vector.load %arg18[%c0_140, %c113] : memref<8x1280xf32, #tpu.memory_space<vmem>>, vector<8x256xf32>
    %c2_141 = arith.constant 2 : index
    %c0_142 = arith.constant 0 : index
    %c0_143 = arith.constant 0 : index
    %139 = vector.load %arg6[%c2_141, %c0_142, %c0_143] : memref<9x8x8xf32, #tpu.memory_space<vmem>>, vector<1x8x8xf32>
    %140 = vector.shape_cast %139 : vector<1x8x8xf32> to vector<8x8xf32>
    %cst_144 = arith.constant dense<0.000000e+00> : vector<8x256xf32>
    %141 = tpu.matmul %140, %138, %cst_144 {dimension_numbers = #tpu.dot_dimension_numbers<[1], [0], [0], [1], [0, 0, 1, 1], [], []>} : vector<8x8xf32>, vector<8x256xf32>, vector<8x256xf32> -> vector<8x256xf32>
    %142 = arith.addf %137, %141 : vector<8x256xf32>
    %c0_145 = arith.constant 0 : index
    %c127_146 = arith.constant 127 : index
    %143 = vector.load %arg18[%c0_145, %c127_146] : memref<8x1280xf32, #tpu.memory_space<vmem>>, vector<8x256xf32>
    %c3_147 = arith.constant 3 : index
    %c0_148 = arith.constant 0 : index
    %c0_149 = arith.constant 0 : index
    %144 = vector.load %arg6[%c3_147, %c0_148, %c0_149] : memref<9x8x8xf32, #tpu.memory_space<vmem>>, vector<1x8x8xf32>
    %145 = vector.shape_cast %144 : vector<1x8x8xf32> to vector<8x8xf32>
    %cst_150 = arith.constant dense<0.000000e+00> : vector<8x256xf32>
    %146 = tpu.matmul %145, %143, %cst_150 {dimension_numbers = #tpu.dot_dimension_numbers<[1], [0], [0], [1], [0, 0, 1, 1], [], []>} : vector<8x8xf32>, vector<8x256xf32>, vector<8x256xf32> -> vector<8x256xf32>
    %147 = arith.addf %142, %146 : vector<8x256xf32>
    %c0_151 = arith.constant 0 : index
    %c128_152 = arith.constant 128 : index
    %148 = vector.load %arg18[%c0_151, %c128_152] : memref<8x1280xf32, #tpu.memory_space<vmem>>, vector<8x256xf32>
    %c4_153 = arith.constant 4 : index
    %c0_154 = arith.constant 0 : index
    %c0_155 = arith.constant 0 : index
    %149 = vector.load %arg6[%c4_153, %c0_154, %c0_155] : memref<9x8x8xf32, #tpu.memory_space<vmem>>, vector<1x8x8xf32>
    %150 = vector.shape_cast %149 : vector<1x8x8xf32> to vector<8x8xf32>
    %cst_156 = arith.constant dense<0.000000e+00> : vector<8x256xf32>
    %151 = tpu.matmul %150, %148, %cst_156 {dimension_numbers = #tpu.dot_dimension_numbers<[1], [0], [0], [1], [0, 0, 1, 1], [], []>} : vector<8x8xf32>, vector<8x256xf32>, vector<8x256xf32> -> vector<8x256xf32>
    %152 = arith.addf %147, %151 : vector<8x256xf32>
    %c0_157 = arith.constant 0 : index
    %c129_158 = arith.constant 129 : index
    %153 = vector.load %arg18[%c0_157, %c129_158] : memref<8x1280xf32, #tpu.memory_space<vmem>>, vector<8x256xf32>
    %c5_159 = arith.constant 5 : index
    %c0_160 = arith.constant 0 : index
    %c0_161 = arith.constant 0 : index
    %154 = vector.load %arg6[%c5_159, %c0_160, %c0_161] : memref<9x8x8xf32, #tpu.memory_space<vmem>>, vector<1x8x8xf32>
    %155 = vector.shape_cast %154 : vector<1x8x8xf32> to vector<8x8xf32>
    %cst_162 = arith.constant dense<0.000000e+00> : vector<8x256xf32>
    %156 = tpu.matmul %155, %153, %cst_162 {dimension_numbers = #tpu.dot_dimension_numbers<[1], [0], [0], [1], [0, 0, 1, 1], [], []>} : vector<8x8xf32>, vector<8x256xf32>, vector<8x256xf32> -> vector<8x256xf32>
    %157 = arith.addf %152, %156 : vector<8x256xf32>
    %c0_163 = arith.constant 0 : index
    %c143 = arith.constant 143 : index
    %158 = vector.load %arg18[%c0_163, %c143] : memref<8x1280xf32, #tpu.memory_space<vmem>>, vector<8x256xf32>
    %c6_164 = arith.constant 6 : index
    %c0_165 = arith.constant 0 : index
    %c0_166 = arith.constant 0 : index
    %159 = vector.load %arg6[%c6_164, %c0_165, %c0_166] : memref<9x8x8xf32, #tpu.memory_space<vmem>>, vector<1x8x8xf32>
    %160 = vector.shape_cast %159 : vector<1x8x8xf32> to vector<8x8xf32>
    %cst_167 = arith.constant dense<0.000000e+00> : vector<8x256xf32>
    %161 = tpu.matmul %160, %158, %cst_167 {dimension_numbers = #tpu.dot_dimension_numbers<[1], [0], [0], [1], [0, 0, 1, 1], [], []>} : vector<8x8xf32>, vector<8x256xf32>, vector<8x256xf32> -> vector<8x256xf32>
    %162 = arith.addf %157, %161 : vector<8x256xf32>
    %c0_168 = arith.constant 0 : index
    %c144 = arith.constant 144 : index
    %163 = vector.load %arg18[%c0_168, %c144] : memref<8x1280xf32, #tpu.memory_space<vmem>>, vector<8x256xf32>
    %c7_169 = arith.constant 7 : index
    %c0_170 = arith.constant 0 : index
    %c0_171 = arith.constant 0 : index
    %164 = vector.load %arg6[%c7_169, %c0_170, %c0_171] : memref<9x8x8xf32, #tpu.memory_space<vmem>>, vector<1x8x8xf32>
    %165 = vector.shape_cast %164 : vector<1x8x8xf32> to vector<8x8xf32>
    %cst_172 = arith.constant dense<0.000000e+00> : vector<8x256xf32>
    %166 = tpu.matmul %165, %163, %cst_172 {dimension_numbers = #tpu.dot_dimension_numbers<[1], [0], [0], [1], [0, 0, 1, 1], [], []>} : vector<8x8xf32>, vector<8x256xf32>, vector<8x256xf32> -> vector<8x256xf32>
    %167 = arith.addf %162, %166 : vector<8x256xf32>
    %c0_173 = arith.constant 0 : index
    %c145 = arith.constant 145 : index
    %168 = vector.load %arg18[%c0_173, %c145] : memref<8x1280xf32, #tpu.memory_space<vmem>>, vector<8x256xf32>
    %c8_174 = arith.constant 8 : index
    %c0_175 = arith.constant 0 : index
    %c0_176 = arith.constant 0 : index
    %169 = vector.load %arg6[%c8_174, %c0_175, %c0_176] : memref<9x8x8xf32, #tpu.memory_space<vmem>>, vector<1x8x8xf32>
    %170 = vector.shape_cast %169 : vector<1x8x8xf32> to vector<8x8xf32>
    %cst_177 = arith.constant dense<0.000000e+00> : vector<8x256xf32>
    %171 = tpu.matmul %170, %168, %cst_177 {dimension_numbers = #tpu.dot_dimension_numbers<[1], [0], [0], [1], [0, 0, 1, 1], [], []>} : vector<8x8xf32>, vector<8x256xf32>, vector<8x256xf32> -> vector<8x256xf32>
    %172 = arith.addf %167, %171 : vector<8x256xf32>
    %c0_178 = arith.constant 0 : index
    %c0_179 = arith.constant 0 : index
    %173 = vector.load %arg7[%c0_178, %c0_179] : memref<8x1xf32, #tpu.memory_space<vmem>>, vector<8x1xf32>
    %174 = vector.broadcast %173 : vector<8x1xf32> to vector<8x256xf32>
    %175 = arith.addf %172, %174 : vector<8x256xf32>
    %cst_180 = arith.constant 0.000000e+00 : f32
    %176 = vector.broadcast %cst_180 : f32 to vector<8x256xf32>
    %177 = arith.maximumf %175, %176 : vector<8x256xf32>
    %c0_181 = arith.constant 0 : index
    %c0_182 = arith.constant 0 : index
    %178 = vector.load %arg15[%c0_181, %c0_182] : memref<1x256xf32, #tpu.memory_space<vmem>>, vector<1x256xf32>
    %179 = vector.broadcast %178 : vector<1x256xf32> to vector<8x256xf32>
    %180 = arith.mulf %177, %179 : vector<8x256xf32>
    %c0_183 = arith.constant 0 : index
    %c128_184 = arith.constant 128 : index
    %181 = vector.load %arg17[%c0_183, %c128_184] : memref<8x1280xf32, #tpu.memory_space<vmem>>, vector<8x256xf32>
    tpu.vector_store %arg17[%c0_183, %c128_184], %180 {strides = array<i32>} : memref<8x1280xf32, #tpu.memory_space<vmem>>, vector<8x256xf32>,
    %cst_185 = arith.constant 0.000000e+00 : f32
    %182 = vector.broadcast %cst_185 : f32 to vector<8x256xf32>
    %c0_186 = arith.constant 0 : index
    %c111_187 = arith.constant 111 : index
    %183 = vector.load %arg17[%c0_186, %c111_187] : memref<8x1280xf32, #tpu.memory_space<vmem>>, vector<8x256xf32>
    %c0_188 = arith.constant 0 : index
    %c0_189 = arith.constant 0 : index
    %c0_190 = arith.constant 0 : index
    %184 = vector.load %arg8[%c0_188, %c0_189, %c0_190] : memref<9x8x8xf32, #tpu.memory_space<vmem>>, vector<1x8x8xf32>
    %185 = vector.shape_cast %184 : vector<1x8x8xf32> to vector<8x8xf32>
    %cst_191 = arith.constant dense<0.000000e+00> : vector<8x256xf32>
    %186 = tpu.matmul %185, %183, %cst_191 {dimension_numbers = #tpu.dot_dimension_numbers<[1], [0], [0], [1], [0, 0, 1, 1], [], []>} : vector<8x8xf32>, vector<8x256xf32>, vector<8x256xf32> -> vector<8x256xf32>
    %187 = arith.addf %182, %186 : vector<8x256xf32>
    %c0_192 = arith.constant 0 : index
    %c112_193 = arith.constant 112 : index
    %188 = vector.load %arg17[%c0_192, %c112_193] : memref<8x1280xf32, #tpu.memory_space<vmem>>, vector<8x256xf32>
    %c1_194 = arith.constant 1 : index
    %c0_195 = arith.constant 0 : index
    %c0_196 = arith.constant 0 : index
    %189 = vector.load %arg8[%c1_194, %c0_195, %c0_196] : memref<9x8x8xf32, #tpu.memory_space<vmem>>, vector<1x8x8xf32>
    %190 = vector.shape_cast %189 : vector<1x8x8xf32> to vector<8x8xf32>
    %cst_197 = arith.constant dense<0.000000e+00> : vector<8x256xf32>
    %191 = tpu.matmul %190, %188, %cst_197 {dimension_numbers = #tpu.dot_dimension_numbers<[1], [0], [0], [1], [0, 0, 1, 1], [], []>} : vector<8x8xf32>, vector<8x256xf32>, vector<8x256xf32> -> vector<8x256xf32>
    %192 = arith.addf %187, %191 : vector<8x256xf32>
    %c0_198 = arith.constant 0 : index
    %c113_199 = arith.constant 113 : index
    %193 = vector.load %arg17[%c0_198, %c113_199] : memref<8x1280xf32, #tpu.memory_space<vmem>>, vector<8x256xf32>
    %c2_200 = arith.constant 2 : index
    %c0_201 = arith.constant 0 : index
    %c0_202 = arith.constant 0 : index
    %194 = vector.load %arg8[%c2_200, %c0_201, %c0_202] : memref<9x8x8xf32, #tpu.memory_space<vmem>>, vector<1x8x8xf32>
    %195 = vector.shape_cast %194 : vector<1x8x8xf32> to vector<8x8xf32>
    %cst_203 = arith.constant dense<0.000000e+00> : vector<8x256xf32>
    %196 = tpu.matmul %195, %193, %cst_203 {dimension_numbers = #tpu.dot_dimension_numbers<[1], [0], [0], [1], [0, 0, 1, 1], [], []>} : vector<8x8xf32>, vector<8x256xf32>, vector<8x256xf32> -> vector<8x256xf32>
    %197 = arith.addf %192, %196 : vector<8x256xf32>
    %c0_204 = arith.constant 0 : index
    %c127_205 = arith.constant 127 : index
    %198 = vector.load %arg17[%c0_204, %c127_205] : memref<8x1280xf32, #tpu.memory_space<vmem>>, vector<8x256xf32>
    %c3_206 = arith.constant 3 : index
    %c0_207 = arith.constant 0 : index
    %c0_208 = arith.constant 0 : index
    %199 = vector.load %arg8[%c3_206, %c0_207, %c0_208] : memref<9x8x8xf32, #tpu.memory_space<vmem>>, vector<1x8x8xf32>
    %200 = vector.shape_cast %199 : vector<1x8x8xf32> to vector<8x8xf32>
    %cst_209 = arith.constant dense<0.000000e+00> : vector<8x256xf32>
    %201 = tpu.matmul %200, %198, %cst_209 {dimension_numbers = #tpu.dot_dimension_numbers<[1], [0], [0], [1], [0, 0, 1, 1], [], []>} : vector<8x8xf32>, vector<8x256xf32>, vector<8x256xf32> -> vector<8x256xf32>
    %202 = arith.addf %197, %201 : vector<8x256xf32>
    %c0_210 = arith.constant 0 : index
    %c128_211 = arith.constant 128 : index
    %203 = vector.load %arg17[%c0_210, %c128_211] : memref<8x1280xf32, #tpu.memory_space<vmem>>, vector<8x256xf32>
    %c4_212 = arith.constant 4 : index
    %c0_213 = arith.constant 0 : index
    %c0_214 = arith.constant 0 : index
    %204 = vector.load %arg8[%c4_212, %c0_213, %c0_214] : memref<9x8x8xf32, #tpu.memory_space<vmem>>, vector<1x8x8xf32>
    %205 = vector.shape_cast %204 : vector<1x8x8xf32> to vector<8x8xf32>
    %cst_215 = arith.constant dense<0.000000e+00> : vector<8x256xf32>
    %206 = tpu.matmul %205, %203, %cst_215 {dimension_numbers = #tpu.dot_dimension_numbers<[1], [0], [0], [1], [0, 0, 1, 1], [], []>} : vector<8x8xf32>, vector<8x256xf32>, vector<8x256xf32> -> vector<8x256xf32>
    %207 = arith.addf %202, %206 : vector<8x256xf32>
    %c0_216 = arith.constant 0 : index
    %c129_217 = arith.constant 129 : index
    %208 = vector.load %arg17[%c0_216, %c129_217] : memref<8x1280xf32, #tpu.memory_space<vmem>>, vector<8x256xf32>
    %c5_218 = arith.constant 5 : index
    %c0_219 = arith.constant 0 : index
    %c0_220 = arith.constant 0 : index
    %209 = vector.load %arg8[%c5_218, %c0_219, %c0_220] : memref<9x8x8xf32, #tpu.memory_space<vmem>>, vector<1x8x8xf32>
    %210 = vector.shape_cast %209 : vector<1x8x8xf32> to vector<8x8xf32>
    %cst_221 = arith.constant dense<0.000000e+00> : vector<8x256xf32>
    %211 = tpu.matmul %210, %208, %cst_221 {dimension_numbers = #tpu.dot_dimension_numbers<[1], [0], [0], [1], [0, 0, 1, 1], [], []>} : vector<8x8xf32>, vector<8x256xf32>, vector<8x256xf32> -> vector<8x256xf32>
    %212 = arith.addf %207, %211 : vector<8x256xf32>
    %c0_222 = arith.constant 0 : index
    %c143_223 = arith.constant 143 : index
    %213 = vector.load %arg17[%c0_222, %c143_223] : memref<8x1280xf32, #tpu.memory_space<vmem>>, vector<8x256xf32>
    %c6_224 = arith.constant 6 : index
    %c0_225 = arith.constant 0 : index
    %c0_226 = arith.constant 0 : index
    %214 = vector.load %arg8[%c6_224, %c0_225, %c0_226] : memref<9x8x8xf32, #tpu.memory_space<vmem>>, vector<1x8x8xf32>
    %215 = vector.shape_cast %214 : vector<1x8x8xf32> to vector<8x8xf32>
    %cst_227 = arith.constant dense<0.000000e+00> : vector<8x256xf32>
    %216 = tpu.matmul %215, %213, %cst_227 {dimension_numbers = #tpu.dot_dimension_numbers<[1], [0], [0], [1], [0, 0, 1, 1], [], []>} : vector<8x8xf32>, vector<8x256xf32>, vector<8x256xf32> -> vector<8x256xf32>
    %217 = arith.addf %212, %216 : vector<8x256xf32>
    %c0_228 = arith.constant 0 : index
    %c144_229 = arith.constant 144 : index
    %218 = vector.load %arg17[%c0_228, %c144_229] : memref<8x1280xf32, #tpu.memory_space<vmem>>, vector<8x256xf32>
    %c7_230 = arith.constant 7 : index
    %c0_231 = arith.constant 0 : index
    %c0_232 = arith.constant 0 : index
    %219 = vector.load %arg8[%c7_230, %c0_231, %c0_232] : memref<9x8x8xf32, #tpu.memory_space<vmem>>, vector<1x8x8xf32>
    %220 = vector.shape_cast %219 : vector<1x8x8xf32> to vector<8x8xf32>
    %cst_233 = arith.constant dense<0.000000e+00> : vector<8x256xf32>
    %221 = tpu.matmul %220, %218, %cst_233 {dimension_numbers = #tpu.dot_dimension_numbers<[1], [0], [0], [1], [0, 0, 1, 1], [], []>} : vector<8x8xf32>, vector<8x256xf32>, vector<8x256xf32> -> vector<8x256xf32>
    %222 = arith.addf %217, %221 : vector<8x256xf32>
    %c0_234 = arith.constant 0 : index
    %c145_235 = arith.constant 145 : index
    %223 = vector.load %arg17[%c0_234, %c145_235] : memref<8x1280xf32, #tpu.memory_space<vmem>>, vector<8x256xf32>
    %c8_236 = arith.constant 8 : index
    %c0_237 = arith.constant 0 : index
    %c0_238 = arith.constant 0 : index
    %224 = vector.load %arg8[%c8_236, %c0_237, %c0_238] : memref<9x8x8xf32, #tpu.memory_space<vmem>>, vector<1x8x8xf32>
    %225 = vector.shape_cast %224 : vector<1x8x8xf32> to vector<8x8xf32>
    %cst_239 = arith.constant dense<0.000000e+00> : vector<8x256xf32>
    %226 = tpu.matmul %225, %223, %cst_239 {dimension_numbers = #tpu.dot_dimension_numbers<[1], [0], [0], [1], [0, 0, 1, 1], [], []>} : vector<8x8xf32>, vector<8x256xf32>, vector<8x256xf32> -> vector<8x256xf32>
    %227 = arith.addf %222, %226 : vector<8x256xf32>
    %c0_240 = arith.constant 0 : index
    %c0_241 = arith.constant 0 : index
    %228 = vector.load %arg9[%c0_240, %c0_241] : memref<8x1xf32, #tpu.memory_space<vmem>>, vector<8x1xf32>
    %229 = vector.broadcast %228 : vector<8x1xf32> to vector<8x256xf32>
    %230 = arith.addf %227, %229 : vector<8x256xf32>
    %cst_242 = arith.constant 0.000000e+00 : f32
    %231 = vector.broadcast %cst_242 : f32 to vector<8x256xf32>
    %232 = arith.maximumf %230, %231 : vector<8x256xf32>
    %c0_243 = arith.constant 0 : index
    %c0_244 = arith.constant 0 : index
    %233 = vector.load %arg15[%c0_243, %c0_244] : memref<1x256xf32, #tpu.memory_space<vmem>>, vector<1x256xf32>
    %234 = vector.broadcast %233 : vector<1x256xf32> to vector<8x256xf32>
    %235 = arith.mulf %232, %234 : vector<8x256xf32>
    %c0_245 = arith.constant 0 : index
    %c128_246 = arith.constant 128 : index
    %236 = vector.load %arg18[%c0_245, %c128_246] : memref<8x1280xf32, #tpu.memory_space<vmem>>, vector<8x256xf32>
    tpu.vector_store %arg18[%c0_245, %c128_246], %235 {strides = array<i32>} : memref<8x1280xf32, #tpu.memory_space<vmem>>, vector<8x256xf32>,
    %c0_247 = arith.constant 0 : index
    %c128_248 = arith.constant 128 : index
    %237 = vector.load %arg18[%c0_247, %c128_248] : memref<8x1280xf32, #tpu.memory_space<vmem>>, vector<8x256xf32>
    %c0_249 = arith.constant 0 : index
    %c129_250 = arith.constant 129 : index
    %238 = vector.load %arg18[%c0_249, %c129_250] : memref<8x1280xf32, #tpu.memory_space<vmem>>, vector<8x256xf32>
    %239 = arith.maximumf %237, %238 : vector<8x256xf32>
    %c0_251 = arith.constant 0 : index
    %c144_252 = arith.constant 144 : index
    %240 = vector.load %arg18[%c0_251, %c144_252] : memref<8x1280xf32, #tpu.memory_space<vmem>>, vector<8x256xf32>
    %241 = arith.maximumf %239, %240 : vector<8x256xf32>
    %c0_253 = arith.constant 0 : index
    %c145_254 = arith.constant 145 : index
    %242 = vector.load %arg18[%c0_253, %c145_254] : memref<8x1280xf32, #tpu.memory_space<vmem>>, vector<8x256xf32>
    %243 = arith.maximumf %241, %242 : vector<8x256xf32>
    %c0_255 = arith.constant 0 : index
    %c0_256 = arith.constant 0 : index
    %244 = vector.load %arg13[%c0_255, %c0_256] : memref<256x49xf32, #tpu.memory_space<vmem>>, vector<256x49xf32>
    %cst_257 = arith.constant dense<0.000000e+00> : vector<8x49xf32>
    %245 = tpu.matmul %243, %244, %cst_257 {dimension_numbers = #tpu.dot_dimension_numbers<[1], [0], [0], [1], [0, 0, 1, 1], [], []>} : vector<8x256xf32>, vector<256x49xf32>, vector<8x49xf32> -> vector<8x49xf32>
    %c0_258 = arith.constant 0 : index
    %c0_259 = arith.constant 0 : index
    %246 = vector.load %arg11[%c0_258, %c0_259] : memref<1x10xf32, #tpu.memory_space<vmem>>, vector<1x10xf32>
    %247 = vector.extract_strided_slice %245 {offsets = [0, 0], sizes = [1, 49], strides = [1, 1]} : vector<8x49xf32> to vector<1x49xf32>
    %c0_260 = arith.constant 0 : index
    %c0_261 = arith.constant 0 : index
    %c0_262 = arith.constant 0 : index
    %248 = vector.load %arg10[%c0_260, %c0_261, %c0_262] : memref<8x49x10xf32, #tpu.memory_space<vmem>>, vector<1x49x10xf32>
    %249 = vector.shape_cast %248 : vector<1x49x10xf32> to vector<49x10xf32>
    %cst_263 = arith.constant dense<0.000000e+00> : vector<1x10xf32>
    %250 = tpu.matmul %247, %249, %cst_263 {dimension_numbers = #tpu.dot_dimension_numbers<[1], [0], [0], [1], [0, 0, 1, 1], [], []>} : vector<1x49xf32>, vector<49x10xf32>, vector<1x10xf32> -> vector<1x10xf32>
    %251 = arith.addf %246, %250 : vector<1x10xf32>
    %252 = vector.extract_strided_slice %245 {offsets = [1, 0], sizes = [1, 49], strides = [1, 1]} : vector<8x49xf32> to vector<1x49xf32>
    %c1_264 = arith.constant 1 : index
    %c0_265 = arith.constant 0 : index
    %c0_266 = arith.constant 0 : index
    %253 = vector.load %arg10[%c1_264, %c0_265, %c0_266] : memref<8x49x10xf32, #tpu.memory_space<vmem>>, vector<1x49x10xf32>
    %254 = vector.shape_cast %253 : vector<1x49x10xf32> to vector<49x10xf32>
    %cst_267 = arith.constant dense<0.000000e+00> : vector<1x10xf32>
    %255 = tpu.matmul %252, %254, %cst_267 {dimension_numbers = #tpu.dot_dimension_numbers<[1], [0], [0], [1], [0, 0, 1, 1], [], []>} : vector<1x49xf32>, vector<49x10xf32>, vector<1x10xf32> -> vector<1x10xf32>
    %256 = arith.addf %251, %255 : vector<1x10xf32>
    %257 = vector.extract_strided_slice %245 {offsets = [2, 0], sizes = [1, 49], strides = [1, 1]} : vector<8x49xf32> to vector<1x49xf32>
    %c2_268 = arith.constant 2 : index
    %c0_269 = arith.constant 0 : index
    %c0_270 = arith.constant 0 : index
    %258 = vector.load %arg10[%c2_268, %c0_269, %c0_270] : memref<8x49x10xf32, #tpu.memory_space<vmem>>, vector<1x49x10xf32>
    %259 = vector.shape_cast %258 : vector<1x49x10xf32> to vector<49x10xf32>
    %cst_271 = arith.constant dense<0.000000e+00> : vector<1x10xf32>
    %260 = tpu.matmul %257, %259, %cst_271 {dimension_numbers = #tpu.dot_dimension_numbers<[1], [0], [0], [1], [0, 0, 1, 1], [], []>} : vector<1x49xf32>, vector<49x10xf32>, vector<1x10xf32> -> vector<1x10xf32>
    %261 = arith.addf %256, %260 : vector<1x10xf32>
    %262 = vector.extract_strided_slice %245 {offsets = [3, 0], sizes = [1, 49], strides = [1, 1]} : vector<8x49xf32> to vector<1x49xf32>
    %c3_272 = arith.constant 3 : index
    %c0_273 = arith.constant 0 : index
    %c0_274 = arith.constant 0 : index
    %263 = vector.load %arg10[%c3_272, %c0_273, %c0_274] : memref<8x49x10xf32, #tpu.memory_space<vmem>>, vector<1x49x10xf32>
    %264 = vector.shape_cast %263 : vector<1x49x10xf32> to vector<49x10xf32>
    %cst_275 = arith.constant dense<0.000000e+00> : vector<1x10xf32>
    %265 = tpu.matmul %262, %264, %cst_275 {dimension_numbers = #tpu.dot_dimension_numbers<[1], [0], [0], [1], [0, 0, 1, 1], [], []>} : vector<1x49xf32>, vector<49x10xf32>, vector<1x10xf32> -> vector<1x10xf32>
    %266 = arith.addf %261, %265 : vector<1x10xf32>
    %267 = vector.extract_strided_slice %245 {offsets = [4, 0], sizes = [1, 49], strides = [1, 1]} : vector<8x49xf32> to vector<1x49xf32>
    %c4_276 = arith.constant 4 : index
    %c0_277 = arith.constant 0 : index
    %c0_278 = arith.constant 0 : index
    %268 = vector.load %arg10[%c4_276, %c0_277, %c0_278] : memref<8x49x10xf32, #tpu.memory_space<vmem>>, vector<1x49x10xf32>
    %269 = vector.shape_cast %268 : vector<1x49x10xf32> to vector<49x10xf32>
    %cst_279 = arith.constant dense<0.000000e+00> : vector<1x10xf32>
    %270 = tpu.matmul %267, %269, %cst_279 {dimension_numbers = #tpu.dot_dimension_numbers<[1], [0], [0], [1], [0, 0, 1, 1], [], []>} : vector<1x49xf32>, vector<49x10xf32>, vector<1x10xf32> -> vector<1x10xf32>
    %271 = arith.addf %266, %270 : vector<1x10xf32>
    %272 = vector.extract_strided_slice %245 {offsets = [5, 0], sizes = [1, 49], strides = [1, 1]} : vector<8x49xf32> to vector<1x49xf32>
    %c5_280 = arith.constant 5 : index
    %c0_281 = arith.constant 0 : index
    %c0_282 = arith.constant 0 : index
    %273 = vector.load %arg10[%c5_280, %c0_281, %c0_282] : memref<8x49x10xf32, #tpu.memory_space<vmem>>, vector<1x49x10xf32>
    %274 = vector.shape_cast %273 : vector<1x49x10xf32> to vector<49x10xf32>
    %cst_283 = arith.constant dense<0.000000e+00> : vector<1x10xf32>
    %275 = tpu.matmul %272, %274, %cst_283 {dimension_numbers = #tpu.dot_dimension_numbers<[1], [0], [0], [1], [0, 0, 1, 1], [], []>} : vector<1x49xf32>, vector<49x10xf32>, vector<1x10xf32> -> vector<1x10xf32>
    %276 = arith.addf %271, %275 : vector<1x10xf32>
    %277 = vector.extract_strided_slice %245 {offsets = [6, 0], sizes = [1, 49], strides = [1, 1]} : vector<8x49xf32> to vector<1x49xf32>
    %c6_284 = arith.constant 6 : index
    %c0_285 = arith.constant 0 : index
    %c0_286 = arith.constant 0 : index
    %278 = vector.load %arg10[%c6_284, %c0_285, %c0_286] : memref<8x49x10xf32, #tpu.memory_space<vmem>>, vector<1x49x10xf32>
    %279 = vector.shape_cast %278 : vector<1x49x10xf32> to vector<49x10xf32>
    %cst_287 = arith.constant dense<0.000000e+00> : vector<1x10xf32>
    %280 = tpu.matmul %277, %279, %cst_287 {dimension_numbers = #tpu.dot_dimension_numbers<[1], [0], [0], [1], [0, 0, 1, 1], [], []>} : vector<1x49xf32>, vector<49x10xf32>, vector<1x10xf32> -> vector<1x10xf32>
    %281 = arith.addf %276, %280 : vector<1x10xf32>
    %282 = vector.extract_strided_slice %245 {offsets = [7, 0], sizes = [1, 49], strides = [1, 1]} : vector<8x49xf32> to vector<1x49xf32>
    %c7_288 = arith.constant 7 : index
    %c0_289 = arith.constant 0 : index
    %c0_290 = arith.constant 0 : index
    %283 = vector.load %arg10[%c7_288, %c0_289, %c0_290] : memref<8x49x10xf32, #tpu.memory_space<vmem>>, vector<1x49x10xf32>
    %284 = vector.shape_cast %283 : vector<1x49x10xf32> to vector<49x10xf32>
    %cst_291 = arith.constant dense<0.000000e+00> : vector<1x10xf32>
    %285 = tpu.matmul %282, %284, %cst_291 {dimension_numbers = #tpu.dot_dimension_numbers<[1], [0], [0], [1], [0, 0, 1, 1], [], []>} : vector<1x49xf32>, vector<49x10xf32>, vector<1x10xf32> -> vector<1x10xf32>
    %286 = arith.addf %281, %285 : vector<1x10xf32>
    %c0_292 = arith.constant 0 : index
    %c0_293 = arith.constant 0 : index
    %c0_294 = arith.constant 0 : index
    %287 = vector.load %arg16[%c0_292, %c0_293, %c0_294] : memref<1x1x10xf32, #tpu.memory_space<vmem>>, vector<1x1x10xf32>
    %288 = vector.shape_cast %287 : vector<1x1x10xf32> to vector<1x10xf32>
    %289 = vector.shape_cast %286 : vector<1x10xf32> to vector<1x1x10xf32>
    tpu.vector_store %arg16[%c0_292, %c0_293, %c0_294], %289 {strides = array<i32>} : memref<1x1x10xf32, #tpu.memory_space<vmem>>, vector<1x1x10xf32>,
    return
  }
  func.func @transform_0(%arg0: i32) -> (i32, i32, i32) {
    %c0_i32 = arith.constant 0 : i32
    %c0_i32_0 = arith.constant 0 : i32
    %c0_i32_1 = arith.constant 0 : i32
    return %arg0, %c0_i32, %c0_i32_0 : i32, i32, i32
  }
  func.func @transform_1(%arg0: i32) -> (i32, i32, i32) {
    %c0_i32 = arith.constant 0 : i32
    %c0_i32_0 = arith.constant 0 : i32
    %c0_i32_1 = arith.constant 0 : i32
    %c0_i32_2 = arith.constant 0 : i32
    return %c0_i32, %c0_i32_0, %c0_i32_1 : i32, i32, i32
  }
  func.func @transform_2(%arg0: i32) -> (i32, i32) {
    %c0_i32 = arith.constant 0 : i32
    %c0_i32_0 = arith.constant 0 : i32
    %c0_i32_1 = arith.constant 0 : i32
    return %c0_i32, %c0_i32_0 : i32, i32
  }
  func.func @transform_3(%arg0: i32) -> (i32, i32, i32) {
    %c0_i32 = arith.constant 0 : i32
    %c0_i32_0 = arith.constant 0 : i32
    %c0_i32_1 = arith.constant 0 : i32
    %c0_i32_2 = arith.constant 0 : i32
    return %c0_i32, %c0_i32_0, %c0_i32_1 : i32, i32, i32
  }
  func.func @transform_4(%arg0: i32) -> (i32, i32) {
    %c0_i32 = arith.constant 0 : i32
    %c0_i32_0 = arith.constant 0 : i32
    %c0_i32_1 = arith.constant 0 : i32
    return %c0_i32, %c0_i32_0 : i32, i32
  }
  func.func @transform_5(%arg0: i32) -> (i32, i32, i32) {
    %c0_i32 = arith.constant 0 : i32
    %c0_i32_0 = arith.constant 0 : i32
    %c0_i32_1 = arith.constant 0 : i32
    %c0_i32_2 = arith.constant 0 : i32
    return %c0_i32, %c0_i32_0, %c0_i32_1 : i32, i32, i32
  }
  func.func @transform_6(%arg0: i32) -> (i32, i32) {
    %c0_i32 = arith.constant 0 : i32
    %c0_i32_0 = arith.constant 0 : i32
    %c0_i32_1 = arith.constant 0 : i32
    return %c0_i32, %c0_i32_0 : i32, i32
  }
  func.func @transform_7(%arg0: i32) -> (i32, i32, i32) {
    %c0_i32 = arith.constant 0 : i32
    %c0_i32_0 = arith.constant 0 : i32
    %c0_i32_1 = arith.constant 0 : i32
    %c0_i32_2 = arith.constant 0 : i32
    return %c0_i32, %c0_i32_0, %c0_i32_1 : i32, i32, i32
  }
  func.func @transform_8(%arg0: i32) -> (i32, i32) {
    %c0_i32 = arith.constant 0 : i32
    %c0_i32_0 = arith.constant 0 : i32
    %c0_i32_1 = arith.constant 0 : i32
    return %c0_i32, %c0_i32_0 : i32, i32
  }
  func.func @transform_9(%arg0: i32) -> (i32, i32, i32) {
    %c0_i32 = arith.constant 0 : i32
    %c0_i32_0 = arith.constant 0 : i32
    %c0_i32_1 = arith.constant 0 : i32
    %c0_i32_2 = arith.constant 0 : i32
    return %c0_i32, %c0_i32_0, %c0_i32_1 : i32, i32, i32
  }
  func.func @transform_10(%arg0: i32) -> (i32, i32) {
    %c0_i32 = arith.constant 0 : i32
    %c0_i32_0 = arith.constant 0 : i32
    %c0_i32_1 = arith.constant 0 : i32
    return %c0_i32, %c0_i32_0 : i32, i32
  }
  func.func @transform_11(%arg0: i32) -> (i32, i32) {
    %c0_i32 = arith.constant 0 : i32
    %c0_i32_0 = arith.constant 0 : i32
    %c0_i32_1 = arith.constant 0 : i32
    return %c0_i32, %c0_i32_0 : i32, i32
  }
  func.func @transform_12(%arg0: i32) -> (i32, i32) {
    %c0_i32 = arith.constant 0 : i32
    %c0_i32_0 = arith.constant 0 : i32
    %c0_i32_1 = arith.constant 0 : i32
    return %c0_i32, %c0_i32_0 : i32, i32
  }
  func.func @transform_13(%arg0: i32) -> (i32, i32) {
    %c0_i32 = arith.constant 0 : i32
    %c0_i32_0 = arith.constant 0 : i32
    %c0_i32_1 = arith.constant 0 : i32
    return %c0_i32, %c0_i32_0 : i32, i32
  }
  func.func @transform_14(%arg0: i32) -> (i32, i32) {
    %c0_i32 = arith.constant 0 : i32
    %c0_i32_0 = arith.constant 0 : i32
    %c0_i32_1 = arith.constant 0 : i32
    return %c0_i32, %c0_i32_0 : i32, i32
  }
  func.func @transform_15(%arg0: i32) -> (i32, i32, i32) {
    %c0_i32 = arith.constant 0 : i32
    %c0_i32_0 = arith.constant 0 : i32
    %c0_i32_1 = arith.constant 0 : i32
    return %arg0, %c0_i32, %c0_i32_0 : i32, i32, i32
  }
}

</mosaic_0001>

<bundles_post_ra>
// kernel: fused_forward.1
= control target key start
LH: loop header
LB: loop body
LE: loop exit
PB: predicated region body
PF: predicated region fallthrough
CT: control target
= control target key end

     0   :  { %s13666_s0 = inlined_call_operand.vmem [shape: f32[2,8,1024], index: 0, kind: input, shape index: {}]   ;;  %s13667_s1 = inlined_call_operand.vmem [shape: f32[9,8,8], index: 1, kind: input, shape index: {}]   ;;  %s13668_s2 = inlined_call_operand.vmem [shape: f32[8,1], index: 2, kind: input, shape index: {}]   ;;  %s13669_s3 = inlined_call_operand.vmem [shape: f32[9,8,8], index: 3, kind: input, shape index: {}]   ;;  %s13670_s4 = inlined_call_operand.vmem [shape: f32[8,1], index: 4, kind: input, shape index: {}]   ;;  %s13671_s5 = inlined_call_operand.vmem [shape: f32[9,8,8], index: 5, kind: input, shape index: {}]   ;;  %s13672_s6 = inlined_call_operand.vmem [shape: f32[8,1], index: 6, kind: input, shape index: {}]   ;;  %s13673_s7 = inlined_call_operand.vmem [shape: f32[9,8,8], index: 7, kind: input, shape index: {}]   ;;  %s13674_s8 = inlined_call_operand.vmem [shape: f32[8,1], index: 8, kind: input, shape index: {}]   ;;  %s13675_s9 = inlined_call_operand.vmem [shape: f32[8,49,10], index: 9, kind: input, shape index: {}]   ;;  %s13676_s10 = inlined_call_operand.vmem [shape: f32[1,10], index: 10, kind: input, shape index: {}]   ;;  %s13677_s11 = inlined_call_operand.vmem [shape: f32[1024,256], index: 11, kind: input, shape index: {}]   ;;  %s13678_s12 = inlined_call_operand.vmem [shape: f32[256,49], index: 12, kind: input, shape index: {}]   ;;  %s13679_s13 = inlined_call_operand.vmem [shape: f32[1,1024], index: 13, kind: input, shape index: {}]   ;;  %s13680_s14 = inlined_call_operand.vmem [shape: f32[1,256], index: 14, kind: input, shape index: {}]   ;;  %s13681_s15 = inlined_call_operand.hbm [shape: f32[2,1,10], index: 15, kind: output, shape index: {}]  }
   0x1   :  { %13697 = sst [smem:[#allocation9_spill]] %s13666_s0 }
   0x2   :  { %13698 = sst [smem:[#allocation10_spill]] %s13667_s1 }
   0x3   :  { %13699 = sst [smem:[#allocation11_spill]] %s13668_s2 }
   0x4   :  { %13700 = sst [smem:[#allocation12_spill]] %s13669_s3 }
   0x5   :  { %13701 = sst [smem:[#allocation13_spill]] %s13670_s4 }
   0x6   :  { %13702 = sst [smem:[#allocation14_spill]] %s13679_s13 }
   0x7   :  { %20 = vsyncpa [#allocation5], 0 }
   0x8   :  { %22 = vsyncpa [#allocation5 + $0x1], 0  ;;  %s11121_s18 = smov 0   ;;  %s11123_s19 = smov 0  }
   0x9   :  { %s11125_s20 = smov 0   ;;  %s11127_s21 = smov 0  }
   0xa LB: > { %13703 = sst [smem:[#allocation7_spill]] %s11016_s20  ;;  %s11142_s22 = sadd.s32 4294967295, %s11020_s21   ;;  %s11020_s21 = sphi %s11127_s21, %s13724_s21   ;;  %s11016_s20 = sphi %s11125_s20, %s13721_s20   ;;  %s11012_s19 = sphi %s11123_s19, %s13723_s19   ;;  %s11008_s18 = sphi %s11121_s18, %s13722_s18  }
   0xb   : > { %s9851_s23 = sadd.s32 4294967294, %s11020_s21   ;;  %s11146_s24 = sadd.s32 1, %s11020_s21  }
   0xc   : > { %s355_s25 = sadd.s32 1, %s11016_s20  ;;  %s352_s26 = ssub.s32 %s11020_s21, %s11146_s24 }
   0xd   : > { %p365_p0 = scmp.ne.s32.totalorder %s11016_s20, %s11012_s19  ;;  %p353_p1 = scmp.eq.s32.totalorder %s352_s26, 0 }
   0xe   : > { %p366_p2 = scmp.eq.s32.totalorder %s11142_s22, 1  ;;  %p371_p3 = scmp.ne.s32.totalorder %s11012_s19, %s11008_s18 }
   0xf   : > { %p372_p4 = scmp.eq.s32.totalorder %s9851_s23, 1  ;;  %p9854_p7 = scmp.ge.s32.totalorder %s11020_s21, 1 }
  0x10   : > { %s11157_s27 = scalar_select %p353_p1, %s11016_s20, %s355_s25  }
  0x11   : > { %p11159_p5 = por %p366_p2, %p365_p0  ;;  %p11163_p6 = por %p372_p4, %p371_p3 }
  0x12   : > { %13704 = sst [smem:[#allocation8_spill]] %s11157_s27  ;;  %p440_p8 = scmp.lt.s32.totalorder %s11020_s21, 3 }
  0x14   : > { %p441_p9 = pnand %p9854_p7, %p440_p8 }
  0x15   : > { %p487_p10 = scmp.lt.s32.totalorder (!%p441_p9), %s11142_s22, 1  ;;  %v11022_v0 = vmov (!%p441_p9), 0.0   ;;  %s13688_s30 = smov (!%p441_p9), 30   ;;  %vm567_vm0 = vcmask (!%p441_p9), 244736   ;;  %vm584_vm1 = vcmask (!%p441_p9), 64512   ;;  %v11031_v28 = vmov (!%p441_p9), 0  }
  0x16   : > { %444 = sbr.rel (%p441_p9) target bundleno = 2979 (0xba3), region = 80  ;;  %549 = vrot.lane.b32.xlu1 (!%p441_p9), %v11022_v0, %s13688_s30  ;;  %652 = vmatprep.mubr.f32.mxu1 (!%p441_p9), %v11022_v0  ;;  %s13707_s0 = sld [smem:[#allocation9_spill]] (!%p441_p9)  ;;  %vm890_vm2 = vcmask (!%p441_p9), 252928   ;;  %vm1214_vm3 = vcmask (!%p441_p9), 236544   ;;  %vm1546_vm4 = vcmask (!%p441_p9), 7168   ;;  %vm2193_vm5 = vcmask (!%p441_p9), 1039360  }
  0x17   : > { %1440 = vmatprep.mubr.f32.mxu0 (!%p441_p9), %v11022_v0  ;;  %s13694_s23 = smov (!%p441_p9), 1   ;;  %s13682_s25 = smov (!%p441_p9), 127   ;;  %10881 = vset.pattern.permute.xlu0 (!%p441_p9), %v11031_v28  ;;  %vm2525_vm6 = vcmask (!%p441_p9), 809984   ;;  %vm2857_vm7 = vcmask (!%p441_p9), 801792   ;;  %vm3189_vm8 = vcmask (!%p441_p9), 793600   ;;  %vm7334_vm9 = vcmask (!%p441_p9), 130048  }
  0x18   : > { %s13708_s1 = sld [smem:[#allocation10_spill]] (!%p441_p9)  ;;  %10942 = vset.pattern.permute.xlu1 (!%p441_p9), %v11031_v28  ;;  %s13709_s2 = sld [smem:[#allocation11_spill]] (!%p441_p9)  ;;  %vm7419_vm10 = vcmask (!%p441_p9), 138240   ;;  %vm7506_vm11 = vcmask (!%p441_p9), 121856   ;;  %vm7855_vm12 = vcmask (!%p441_p9), 924672   ;;  %vm7944_vm13 = vcmask (!%p441_p9), 916480  }
  0x19   : > { %s13712_s13 = sld [smem:[#allocation14_spill]] (!%p441_p9)  ;;  %s13717_s3 = sld [smem:[#allocation12_spill]] (!%p441_p9)  ;;  %vm8033_vm14 = vcmask (!%p441_p9), 908288   ;;  %vm9111_vm15 = vcmask (!%p441_p9), 1040384  }
  0x1a   : > { %s13718_s4 = sld [smem:[#allocation13_spill]] (!%p441_p9) }
  0x1d   : > { %s488_s16 = scalar_select %p487_p10, %s11142_s22, 1 }
  0x1e   : > { %v9857_v15 = vld [vmem:[%s13708_s1 + $0x8] sm:$0xff]  ;;  %v537_v33 = vld [vmem:[%s13708_s1] sm:$0xff]  ;;  %v9866_v53 = vld [vmem:[%s13708_s1 + $0x10] sm:$0xff] }
  0x1f   : > { %s10047_s17 = sshll.u32 %s488_s16, 6  ;;  %s11024_s16 = smov 31   ;;  %v3501_v39 = vld [vmem:[%s13709_s2] sm:$0xff] }
  0x20   : > { %s491_s26 = scalar_lea.vmem %s13707_s0, %s10047_s17  ;;  %s13686_s17 = smov 29  }
  0x21   : > { %v11178_v1 = vld [vmem:[%s491_s26] sm:$0xff]  ;;  %v11180_v2 = vld [vmem:[%s491_s26 + $0x10] sm:$0xff]  ;;  %v11186_v3 = vld [vmem:[%s491_s26 + $0x8] sm:$0xff]  ;;  %s13719_s2 = smov 1  }
  0x22   : > { %551 = vrot.lane.b32.xlu0 %v11178_v1, %s13688_s30  ;;  %555 = vrot.lane.b32.xlu1 %v11180_v2, %s13688_s30  ;;  %v11188_v4 = vld [vmem:[%s491_s26 + $0x20] sm:$0xff]  ;;  %v11194_v5 = vld [vmem:[%s491_s26 + $0x18] sm:$0xff] }
  0x23   : > { %v11196_v6 = vld [vmem:[%s491_s26 + $0x30] sm:$0xff]  ;;  %v11202_v7 = vld [vmem:[%s491_s26 + $0x28] sm:$0xff]  ;;  %v11208_v8 = vld [vmem:[%s491_s26 + $0x38] sm:$0xff]  ;;  %s13684_s26 = smov 99  }
  0x26   : > { %553 = vrot.lane.b32.xlu0 %v11186_v3, %s13688_s30  ;;  %559 = vrot.lane.b32.xlu1 %v11188_v4, %s13688_s30 }
  0x2a   : > { %557 = vrot.lane.b32.xlu0 %v11194_v5, %s13688_s30  ;;  %563 = vrot.lane.b32.xlu1 %v11196_v6, %s13688_s30 }
  0x2e   : > { %561 = vrot.lane.b32.xlu0 %v11202_v7, %s13688_s30  ;;  %874 = vrot.lane.b32.xlu1 %v11178_v1, %s11024_s16 }
  0x32   : > { %565 = vrot.lane.b32.xlu0 %v11208_v8, %s13688_s30  ;;  %872 = vrot.lane.b32.xlu1 %v11022_v0, %s11024_s16  ;;  %s13690_s30 = smov 97  }
  0x36   : > { %876 = vrot.lane.b32.xlu0 %v11186_v3, %s11024_s16  ;;  %880 = vrot.lane.b32.xlu1 %v11194_v5, %s11024_s16 }
  0x3a   : > { %878 = vrot.lane.b32.xlu0 %v11180_v2, %s11024_s16  ;;  %884 = vrot.lane.b32.xlu1 %v11202_v7, %s11024_s16 }
  0x3e   : > { %882 = vrot.lane.b32.xlu0 %v11188_v4, %s11024_s16  ;;  %888 = vrot.lane.b32.xlu1 %v11208_v8, %s11024_s16 }
  0x42   : > { %886 = vrot.lane.b32.xlu0 %v11196_v6, %s11024_s16  ;;  %1200 = vrot.lane.b32.xlu1 %v11186_v3, %s13686_s17 }
  0x46   : > { %1198 = vrot.lane.b32.xlu0 %v11178_v1, %s13686_s17  ;;  %1202 = vrot.lane.b32.xlu1 %v11180_v2, %s13686_s17 }
  0x4a   : > { %1196 = vrot.lane.b32.xlu0 %v11022_v0, %s13686_s17  ;;  %1206 = vrot.lane.b32.xlu1 %v11188_v4, %s13686_s17 }
  0x4e   : > { %1204 = vrot.lane.b32.xlu0 %v11194_v5, %s13686_s17  ;;  %1210 = vrot.lane.b32.xlu1 %v11196_v6, %s13686_s17 }
  0x52   : > { %1208 = vrot.lane.b32.xlu0 %v11202_v7, %s13686_s17  ;;  %1530 = vrot.lane.b32.xlu1 %v11178_v1, %s13694_s23 }
  0x56   : > { %1212 = vrot.lane.b32.xlu0 %v11208_v8, %s13686_s17  ;;  %1528 = vrot.lane.b32.xlu1 %v11022_v0, %s13694_s23  ;;  %s13710_s17 = smov 30  }
  0x5a   : > { %1532 = vrot.lane.b32.xlu0 %v11186_v3, %s13694_s23  ;;  %1536 = vrot.lane.b32.xlu1 %v11194_v5, %s13694_s23 }
  0x5e   : > { %1534 = vrot.lane.b32.xlu0 %v11180_v2, %s13694_s23  ;;  %1540 = vrot.lane.b32.xlu1 %v11202_v7, %s13694_s23 }
  0x62   : > { %1538 = vrot.lane.b32.xlu0 %v11188_v4, %s13694_s23  ;;  %1544 = vrot.lane.b32.xlu1 %v11208_v8, %s13694_s23 }
  0x66   : > { %1542 = vrot.lane.b32.xlu0 %v11196_v6, %s13694_s23  ;;  %2179 = vrot.lane.b32.xlu1 %v11180_v2, %s13682_s25 }
  0x6a   : > { %2177 = vrot.lane.b32.xlu0 %v11186_v3, %s13682_s25  ;;  %2181 = vrot.lane.b32.xlu1 %v11194_v5, %s13682_s25 }
  0x6e   : > { %2175 = vrot.lane.b32.xlu0 %v11178_v1, %s13682_s25  ;;  %2185 = vrot.lane.b32.xlu1 %v11202_v7, %s13682_s25 }
  0x72   : > { %2183 = vrot.lane.b32.xlu0 %v11188_v4, %s13682_s25  ;;  %2189 = vrot.lane.b32.xlu1 %v11208_v8, %s13682_s25 }
  0x76   : > { %2187 = vrot.lane.b32.xlu0 %v11196_v6, %s13682_s25  ;;  %2509 = vrot.lane.b32.xlu1 %v11186_v3, %s13684_s26 }
  0x7a   : > { %2191 = vrot.lane.b32.xlu0 %v11022_v0, %s13682_s25  ;;  %2507 = vrot.lane.b32.xlu1 %v11178_v1, %s13684_s26  ;;  %s13692_s25 = smov 98  }
  0x7e   : > { %2511 = vrot.lane.b32.xlu0 %v11180_v2, %s13684_s26  ;;  %2515 = vrot.lane.b32.xlu1 %v11188_v4, %s13684_s26 }
  0x82   : > { %2513 = vrot.lane.b32.xlu0 %v11194_v5, %s13684_s26  ;;  %2519 = vrot.lane.b32.xlu1 %v11196_v6, %s13684_s26 }
  0x86   : > { %2517 = vrot.lane.b32.xlu0 %v11202_v7, %s13684_s26  ;;  %2523 = vrot.lane.b32.xlu1 %v11022_v0, %s13684_s26 }
  0x88   : > { %v550_v9 = vpop.permute.xlu1 %549 }
  0x8a   : > { %2521 = vrot.lane.b32.xlu0 %v11208_v8, %s13684_s26  ;;  %2843 = vrot.lane.b32.xlu1 %v11180_v2, %s13692_s25  ;;  %s13711_s26 = smov 29  }
  0x8e   : > { %2841 = vrot.lane.b32.xlu0 %v11186_v3, %s13692_s25  ;;  %2845 = vrot.lane.b32.xlu1 %v11194_v5, %s13692_s25 }
  0x92   : > { %2839 = vrot.lane.b32.xlu0 %v11178_v1, %s13692_s25  ;;  %2849 = vrot.lane.b32.xlu1 %v11202_v7, %s13692_s25 }
  0x94   : > { %v552_v10 = vpop.permute.xlu0 %551  ;;  %v556_v11 = vpop.permute.xlu1 %555 }
  0x95   : > { %v568_v16 = vsel %vm567_vm0, %v550_v9, %v552_v10 }
  0x96   : > { %2847 = vrot.lane.b32.xlu0 %v11188_v4, %s13692_s25  ;;  %2853 = vrot.lane.b32.xlu1 %v11208_v8, %s13692_s25 }
  0x98   : > { %v554_v12 = vpop.permute.xlu0 %553  ;;  %v560_v13 = vpop.permute.xlu1 %559 }
  0x99   : > { %v569_v14 = vsel %vm567_vm0, %v552_v10, %v554_v12  ;;  %v570_v20 = vsel %vm567_vm0, %v554_v12, %v556_v11 }
  0x9a   : > { %2851 = vrot.lane.b32.xlu0 %v11196_v6, %s13692_s25  ;;  %588 = vmatprep.subr.mxu1 %v569_v14 }
  0x9b   : > { %3173 = vrot.lane.b32.xlu1 %v11186_v3, %s13690_s30  ;;  %589 = vmatpush1.msra.mxu1 %v568_v16 }
  0x9c   : > { %v558_v17 = vpop.permute.xlu0 %557  ;;  %v564_v18 = vpop.permute.xlu1 %563  ;;  %9858 = vmatmul.mubr.msk.f32.vlgmr.msra.gmra.mrb[0].mxu1 %vm584_vm1, %v9857_v15 }
  0x9d   : > { %v571_v19 = vsel %vm567_vm0, %v556_v11, %v558_v17  ;;  %723 = vmatprep.mubr.f32.mxu1 %v11022_v0  ;;  %v572_v24 = vsel %vm567_vm0, %v558_v17, %v560_v13 }
  0x9e   : > { %2855 = vrot.lane.b32.xlu0 %v11022_v0, %s13692_s25  ;;  %659 = vmatprep.subr.mxu1 %v571_v19  ;;  %s13714_s25 = smov 99  }
  0x9f   : > { %3171 = vrot.lane.b32.xlu1 %v11178_v1, %s13690_s30  ;;  %660 = vmatpush1.msra.mxu1 %v570_v20 }
  0xa0   : > { %v562_v21 = vpop.permute.xlu0 %561  ;;  %v875_v22 = vpop.permute.xlu1 %874  ;;  %9859 = vmatmul.mubr.msk.f32.vlgmr.msra.gmra.mrb[2].mxu1 %vm584_vm1, %v9857_v15 }
  0xa1   : > { %v573_v23 = vsel %vm567_vm0, %v560_v13, %v562_v21  ;;  %794 = vmatprep.mubr.f32.mxu1 %v11022_v0  ;;  %v574_v29 = vsel %vm567_vm0, %v562_v21, %v564_v18 }
  0xa2   : > { %3175 = vrot.lane.b32.xlu0 %v11180_v2, %s13690_s30  ;;  %730 = vmatprep.subr.mxu1 %v573_v23 }
  0xa3   : > { %731 = vmatpush1.msra.mxu1 %v572_v24  ;;  %3179 = vrot.lane.b32.xlu1 %v11188_v4, %s13690_s30 }
  0xa4   : > { %v566_v25 = vpop.permute.xlu0 %565  ;;  %v873_v26 = vpop.permute.xlu1 %872  ;;  %9860 = vmatmul.mubr.msk.f32.vlgmr.msra.gmra.mrb[4].mxu1 %vm584_vm1, %v9857_v15 }
  0xa5   : > { %v575_v27 = vsel %vm567_vm0, %v564_v18, %v566_v25  ;;  %865 = vmatprep.mubr.f32.mxu1 %v11022_v0  ;;  %v891_v34 = vsel %vm890_vm2, %v873_v26, %v875_v22 }
  0xa6   : > { %3177 = vrot.lane.b32.xlu0 %v11194_v5, %s13690_s30  ;;  %801 = vmatprep.subr.mxu1 %v575_v27 }
  0xa7   : > { %802 = vmatpush1.msra.mxu1 %v574_v29  ;;  %3183 = vrot.lane.b32.xlu1 %v11196_v6, %s13690_s30  ;;  %v9876_v29 = vld [vmem:[%s13708_s1 + $0x20] sm:$0xff] }
  0xa8   : > { %v877_v30 = vpop.permute.xlu0 %876  ;;  %v881_v31 = vpop.permute.xlu1 %880  ;;  %9861 = vmatmul.mubr.msk.f32.vlgmr.msra.gmra.mrb[6].mxu1 %vm584_vm1, %v9857_v15  ;;  %v9871_v15 = vld [vmem:[%s13708_s1 + $0x18] sm:$0xff] }
  0xa9   : > { %v892_v32 = vsel %vm890_vm2, %v875_v22, %v877_v30  ;;  %974 = vmatprep.mubr.f32.mxu1 %v11022_v0 }
  0xaa   : > { %3181 = vrot.lane.b32.xlu0 %v11202_v7, %s13690_s30  ;;  %910 = vmatprep.subr.mxu1 %v892_v32 }
  0xab   : > { %911 = vmatpush1.msra.mxu1 %v891_v34  ;;  %3187 = vrot.lane.b32.xlu1 %v11022_v0, %s13690_s30 }
  0xac   : > { %v879_v35 = vpop.permute.xlu0 %878  ;;  %v885_v36 = vpop.permute.xlu1 %884  ;;  %9862 = vmatmul.mubr.msk.f32.vlgmr.msra.gmra.mrb[0].mxu1 %vm584_vm1, %v537_v33 }
  0xad   : > { %v894_v37 = vsel %vm890_vm2, %v879_v35, %v881_v31  ;;  %v893_v38 = vsel %vm890_vm2, %v877_v30, %v879_v35  ;;  %1045 = vmatprep.mubr.f32.mxu1 %v11022_v0 }
  0xae   : > { %3185 = vrot.lane.b32.xlu0 %v11208_v8, %s13690_s30  ;;  %981 = vmatprep.subr.mxu1 %v894_v37  ;;  %s13713_s30 = smov 127  }
  0xaf   : > { %982 = vmatpush1.msra.mxu1 %v893_v38  ;;  %3923 = vrot.lane.b32.xlu1 %v11022_v0, %s11024_s16 }
  0xb0   : > { %v883_v40 = vpop.permute.xlu0 %882  ;;  %v889_v41 = vpop.permute.xlu1 %888  ;;  %9863 = vmatmul.mubr.msk.f32.vlgmr.msra.gmra.mrb[2].mxu1 %vm584_vm1, %v537_v33 }
  0xb1   : > { %v896_v42 = vsel %vm890_vm2, %v883_v40, %v885_v36  ;;  %v895_v43 = vsel %vm890_vm2, %v881_v31, %v883_v40  ;;  %1116 = vmatprep.mubr.f32.mxu1 %v11022_v0 }
  0xb2   : > { %1052 = vmatprep.subr.mxu1 %v896_v42  ;;  %3504 = vperm.xlu0 %10881, %v3501_v39  }
  0xb3   : > { %1053 = vmatpush1.msra.mxu1 %v895_v43  ;;  %4577 = vrot.lane.b32.xlu1 %v11022_v0, %s13694_s23 }
  0xb4   : > { %v887_v44 = vpop.permute.xlu0 %886  ;;  %v1201_v45 = vpop.permute.xlu1 %1200  ;;  %9864 = vmatmul.mubr.msk.f32.vlgmr.msra.gmra.mrb[4].mxu1 %vm584_vm1, %v537_v33 }
  0xb5   : > { %v898_v46 = vsel %vm890_vm2, %v887_v44, %v889_v41  ;;  %v897_v47 = vsel %vm890_vm2, %v885_v36, %v887_v44  ;;  %1187 = vmatprep.mubr.f32.mxu1 %v11022_v0  ;;  %v9886_v44 = vld [vmem:[%s13708_s1 + $0x30] sm:$0xff] }
  0xb6   : > { %1123 = vmatprep.subr.mxu1 %v898_v46  ;;  %3602 = vrot.lane.b32.xlu0 %v11022_v0, %s13710_s17 }
  0xb7   : > { %1124 = vmatpush1.msra.mxu1 %v897_v47 }
  0xb8   : > { %v1199_v48 = vpop.permute.xlu0 %1198  ;;  %v1203_v49 = vpop.permute.xlu1 %1202  ;;  %9865 = vmatmul.mubr.msk.f32.vlgmr.msra.gmra.mrb[6].mxu1 %vm584_vm1, %v537_v33 }
  0xb9   : > { %v1216_v50 = vsel %vm1214_vm3, %v1199_v48, %v1201_v45  ;;  %1298 = vmatprep.mubr.f32.mxu1 %v11022_v0  ;;  %v1217_v58 = vsel %vm1214_vm3, %v1201_v45, %v1203_v49 }
  0xba   : > { %1234 = vmatprep.subr.mxu1 %v1216_v50  ;;  %4246 = vrot.lane.b32.xlu0 %v11022_v0, %s13711_s26 }
  0xbc   : > { %v1197_v51 = vpop.permute.xlu0 %1196  ;;  %v1207_v52 = vpop.permute.xlu1 %1206 }
  0xbd   : > { %v1215_v54 = vsel %vm1214_vm3, %v1197_v51, %v1199_v48 }
  0xbe   : > { %1235 = vmatpush1.msra.mxu1 %v1215_v54 }
  0xbf   : > { %9867 = vmatmul.mubr.msk.f32.vlgmr.msra.gmra.mrb[0].mxu1 %vm584_vm1, %v9866_v53 }
  0xc0   : > { %v1205_v55 = vpop.permute.xlu0 %1204  ;;  %v1211_v56 = vpop.permute.xlu1 %1210  ;;  %1369 = vmatprep.mubr.f32.mxu1 %v11022_v0 }
  0xc1   : > { %v1218_v57 = vsel %vm1214_vm3, %v1203_v49, %v1205_v55  ;;  %v1219_v62 = vsel %vm1214_vm3, %v1205_v55, %v1207_v52 }
  0xc2   : > { %1305 = vmatprep.subr.mxu1 %v1218_v57 }
  0xc3   : > { %1306 = vmatpush1.msra.mxu1 %v1217_v58 }
  0xc4   : > { %v1209_v59 = vpop.permute.xlu0 %1208  ;;  %v1531_v60 = vpop.permute.xlu1 %1530  ;;  %9868 = vmatmul.mubr.msk.f32.vlgmr.msra.gmra.mrb[2].mxu1 %vm584_vm1, %v9866_v53 }
  0xc5   : > { %v1220_v61 = vsel %vm1214_vm3, %v1207_v52, %v1209_v59  ;;  %1511 = vmatprep.mubr.f32.mxu1 %v11022_v0  ;;  %v1221_v11 = vsel %vm1214_vm3, %v1209_v59, %v1211_v56 }
  0xc6   : > { %1376 = vmatprep.subr.mxu0 %v1220_v61 }
  0xc7   : > { %1377 = vmatpush1.msra.mxu0 %v1219_v62 }
  0xc8   : > { %v1213_v63 = vpop.permute.xlu0 %1212  ;;  %v1529_v9 = vpop.permute.xlu1 %1528  ;;  %9869 = vmatmul.mubr.msk.f32.vlgmr.msra.gmra.mrb[0].mxu0 %vm584_vm1, %v9866_v53 }
  0xc9   : > { %v1222_v10 = vsel %vm1214_vm3, %v1211_v56, %v1213_v63  ;;  %1630 = vmatprep.mubr.f32.mxu0 %v11022_v0  ;;  %v1547_v16 = vsel %vm1546_vm4, %v1529_v9, %v1531_v60  ;;  %v9891_v63 = vld [vmem:[%s13708_s1 + $0x38] sm:$0xff] }
  0xca   : > { %1447 = vmatprep.subr.mxu1 %v1222_v10 }
  0xcb   : > { %1448 = vmatpush1.msra.mxu1 %v1221_v11 }
  0xcc   : > { %v1533_v12 = vpop.permute.xlu0 %1532  ;;  %v1537_v13 = vpop.permute.xlu1 %1536  ;;  %9870 = vmatmul.mubr.msk.f32.vlgmr.msra.gmra.mrb[6].mxu1 %vm584_vm1, %v9866_v53 }
  0xcd   : > { %v1548_v14 = vsel %vm1546_vm4, %v1531_v60, %v1533_v12  ;;  %1701 = vmatprep.mubr.f32.mxu1 %v11022_v0 }
  0xce   : > { %1566 = vmatprep.subr.mxu0 %v1548_v14 }
  0xcf   : > { %1567 = vmatpush1.msra.mxu0 %v1547_v16 }
  0xd0   : > { %v1535_v17 = vpop.permute.xlu0 %1534  ;;  %v1541_v18 = vpop.permute.xlu1 %1540  ;;  %9872 = vmatmul.mubr.msk.f32.vlgmr.msra.gmra.mrb[2].mxu0 %vm584_vm1, %v9871_v15 }
  0xd1   : > { %v1550_v19 = vsel %vm1546_vm4, %v1535_v17, %v1537_v13  ;;  %v1549_v20 = vsel %vm1546_vm4, %v1533_v12, %v1535_v17  ;;  %1772 = vmatprep.mubr.f32.mxu0 %v11022_v0 }
  0xd2   : > { %1637 = vmatprep.subr.mxu1 %v1550_v19 }
  0xd3   : > { %1638 = vmatpush1.msra.mxu1 %v1549_v20 }
  0xd4   : > { %v1539_v21 = vpop.permute.xlu0 %1538  ;;  %v1545_v22 = vpop.permute.xlu1 %1544  ;;  %9873 = vmatmul.mubr.msk.f32.vlgmr.msra.gmra.mrb[2].mxu1 %vm584_vm1, %v9871_v15 }
  0xd5   : > { %v1552_v23 = vsel %vm1546_vm4, %v1539_v21, %v1541_v18  ;;  %v1551_v24 = vsel %vm1546_vm4, %v1537_v13, %v1539_v21  ;;  %1843 = vmatprep.mubr.f32.mxu1 %v11022_v0 }
  0xd6   : > { %1708 = vmatprep.subr.mxu0 %v1552_v23 }
  0xd7   : > { %1709 = vmatpush1.msra.mxu0 %v1551_v24 }
  0xd8   : > { %v1543_v25 = vpop.permute.xlu0 %1542  ;;  %v2180_v26 = vpop.permute.xlu1 %2179  ;;  %9874 = vmatmul.mubr.msk.f32.vlgmr.msra.gmra.mrb[0].mxu0 %vm584_vm1, %v9871_v15  ;;  %1863 = vmatprep.subr.mxu0 %v11186_v3 }
  0xd9   : > { %v1554_v27 = vsel %vm1546_vm4, %v1543_v25, %v1545_v22  ;;  %v1553_v28 = vsel %vm1546_vm4, %v1541_v18, %v1543_v25  ;;  %1864 = vmatpush1.msra.mxu0 %v11178_v1  ;;  %1927 = vmatprep.mubr.f32.mxu0 %v11022_v0  ;;  %v9896_v25 = vld [vmem:[%s13708_s1 + $0x40] sm:$0xff] }
  0xda   : > { %1779 = vmatprep.subr.mxu1 %v1554_v27  ;;  %2005 = vmatprep.subr.mxu0 %v11202_v7 }
  0xdb   : > { %1780 = vmatpush1.msra.mxu1 %v1553_v28 }
  0xdc   : > { %v2178_v30 = vpop.permute.xlu0 %2177  ;;  %v2182_v31 = vpop.permute.xlu1 %2181  ;;  %9877 = vmatmul.mubr.msk.f32.vlgmr.msra.gmra.mrb[2].mxu0 %vm584_vm1, %v9876_v29  ;;  %9875 = vmatmul.mubr.msk.f32.vlgmr.msra.gmra.mrb[6].mxu1 %vm584_vm1, %v9871_v15 }
  0xdd   : > { %2006 = vmatpush1.msra.mxu0 %v11188_v4  ;;  %v2195_v1 = vsel %vm2193_vm5, %v2178_v30, %v2180_v26  ;;  %1934 = vmatprep.subr.mxu1 %v11194_v5  ;;  %v9881_v4 = vld [vmem:[%s13708_s1 + $0x28] sm:$0xff]  ;;  %s11034_s1 = smov 15  }
  0xde   : > { %2213 = vmatprep.subr.mxu0 %v2195_v1  ;;  %2069 = vmatprep.mubr.f32.mxu0 %v11022_v0 }
  0xdf   : > { %1935 = vmatpush1.msra.mxu1 %v11180_v2  ;;  %1998 = vmatprep.mubr.f32.mxu1 %v11022_v0 }
  0xe0   : > { %v2176_v3 = vpop.permute.xlu0 %2175  ;;  %v2186_v7 = vpop.permute.xlu1 %2185  ;;  %9879 = vmatmul.mubr.msk.f32.vlgmr.msra.gmra.mrb[0].mxu0 %vm584_vm1, %v9876_v29  ;;  %9878 = vmatmul.mubr.msk.f32.vlgmr.msra.gmra.mrb[2].mxu1 %vm584_vm1, %v9876_v29 }
  0xe1   : > { %v2194_v32 = vsel %vm2193_vm5, %v2176_v3, %v2178_v30  ;;  %2076 = vmatprep.subr.mxu1 %v11208_v8  ;;  %2140 = vmatprep.mubr.f32.mxu1 %v11022_v0  ;;  %v2196_v8 = vsel %vm2193_vm5, %v2180_v26, %v2182_v31 }
  0xe2   : > { %2214 = vmatpush1.msra.mxu0 %v2194_v32  ;;  %2077 = vmatpush1.msra.mxu1 %v11196_v6 }
  0xe3   : > { %2277 = vmatprep.mubr.f32.mxu0 %v11022_v0 }
  0xe4   : > { %v2184_v2 = vpop.permute.xlu0 %2183  ;;  %v2190_v5 = vpop.permute.xlu1 %2189  ;;  %9880 = vmatmul.mubr.msk.f32.vlgmr.msra.gmra.mrb[6].mxu1 %vm584_vm1, %v9876_v29  ;;  %9882 = vmatmul.mubr.msk.f32.vlgmr.msra.gmra.mrb[2].mxu0 %vm584_vm1, %v9881_v4 }
  0xe5   : > { %v2197_v33 = vsel %vm2193_vm5, %v2182_v31, %v2184_v2  ;;  %2348 = vmatprep.mubr.f32.mxu1 %v11022_v0  ;;  %2419 = vmatprep.mubr.f32.mxu0 %v11022_v0  ;;  %v2198_v36 = vsel %vm2193_vm5, %v2184_v2, %v2186_v7 }
  0xe6   : > { %2284 = vmatprep.subr.mxu1 %v2197_v33 }
  0xe7   : > { %2285 = vmatpush1.msra.mxu1 %v2196_v8 }
  0xe8   : > { %v2188_v34 = vpop.permute.xlu0 %2187  ;;  %v2510_v6 = vpop.permute.xlu1 %2509  ;;  %9883 = vmatmul.mubr.msk.f32.vlgmr.msra.gmra.mrb[2].mxu1 %vm584_vm1, %v9881_v4 }
  0xe9   : > { %v2199_v35 = vsel %vm2193_vm5, %v2186_v7, %v2188_v34  ;;  %2490 = vmatprep.mubr.f32.mxu1 %v11022_v0  ;;  %v2200_v40 = vsel %vm2193_vm5, %v2188_v34, %v2190_v5 }
  0xea   : > { %2355 = vmatprep.subr.mxu0 %v2199_v35 }
  0xeb   : > { %2356 = vmatpush1.msra.mxu0 %v2198_v36 }
  0xec   : > { %v2192_v37 = vpop.permute.xlu0 %2191  ;;  %v2508_v38 = vpop.permute.xlu1 %2507  ;;  %9884 = vmatmul.mubr.msk.f32.vlgmr.msra.gmra.mrb[0].mxu0 %vm584_vm1, %v9881_v4 }
  0xed   : > { %v2201_v39 = vsel %vm2193_vm5, %v2190_v5, %v2192_v37  ;;  %2609 = vmatprep.mubr.f32.mxu0 %v11022_v0  ;;  %v2526_v45 = vsel %vm2525_vm6, %v2508_v38, %v2510_v6 }
  0xee   : > { %2426 = vmatprep.subr.mxu1 %v2201_v39  ;;  %v11528_v39 = vld [vmem:[%s13712_s13] sm:$0xff]  ;;  %s11037_s13 = smov 111  }
  0xef   : > { %2427 = vmatpush1.msra.mxu1 %v2200_v40 }
  0xf0   : > { %v2512_v41 = vpop.permute.xlu0 %2511  ;;  %v2516_v42 = vpop.permute.xlu1 %2515  ;;  %9885 = vmatmul.mubr.msk.f32.vlgmr.msra.gmra.mrb[6].mxu1 %vm584_vm1, %v9881_v4 }
  0xf1   : > { %v2527_v43 = vsel %vm2525_vm6, %v2510_v6, %v2512_v41  ;;  %2680 = vmatprep.mubr.f32.mxu1 %v11022_v0  ;;  %v3525_v6 = vlaneseq }
  0xf2   : > { %2545 = vmatprep.subr.mxu0 %v2527_v43 }
  0xf3   : > { %2546 = vmatpush1.msra.mxu0 %v2526_v45  ;;  %v11518_v35 = vshrl.u32 %v3525_v6, 7 }
  0xf4   : > { %v2514_v46 = vpop.permute.xlu0 %2513  ;;  %v2520_v47 = vpop.permute.xlu1 %2519  ;;  %9887 = vmatmul.mubr.msk.f32.vlgmr.msra.gmra.mrb[2].mxu0 %vm584_vm1, %v9886_v44 }
  0xf5   : > { %v2529_v48 = vsel %vm2525_vm6, %v2514_v46, %v2516_v42  ;;  %v2528_v49 = vsel %vm2525_vm6, %v2512_v41, %v2514_v46  ;;  %2751 = vmatprep.mubr.f32.mxu0 %v11022_v0  ;;  %v11521_v36 = vsub.s32 0, %v11518_v35 }
  0xf6   : > { %2616 = vmatprep.subr.mxu1 %v2529_v48 }
  0xf7   : > { %2617 = vmatpush1.msra.mxu1 %v2528_v49  ;;  %v11537_v49 = vsub.s32 1, %v11518_v35 }
  0xf8   : > { %v2518_v50 = vpop.permute.xlu0 %2517  ;;  %v2524_v51 = vpop.permute.xlu1 %2523  ;;  %9888 = vmatmul.mubr.msk.f32.vlgmr.msra.gmra.mrb[2].mxu1 %vm584_vm1, %v9886_v44 }
  0xf9   : > { %v2531_v52 = vsel %vm2525_vm6, %v2518_v50, %v2520_v47  ;;  %v2530_v53 = vsel %vm2525_vm6, %v2516_v42, %v2518_v50  ;;  %2822 = vmatprep.mubr.f32.mxu1 %v11022_v0 }
  0xfa   : > { %2687 = vmatprep.subr.mxu0 %v2531_v52 }
  0xfb   : > { %2688 = vmatpush1.msra.mxu0 %v2530_v53 }
  0xfc   : > { %v2522_v54 = vpop.permute.xlu0 %2521  ;;  %v2844_v55 = vpop.permute.xlu1 %2843  ;;  %9889 = vmatmul.mubr.msk.f32.vlgmr.msra.gmra.mrb[0].mxu0 %vm584_vm1, %v9886_v44 }
  0xfd   : > { %v2533_v56 = vsel %vm2525_vm6, %v2522_v54, %v2524_v51  ;;  %v2532_v57 = vsel %vm2525_vm6, %v2520_v47, %v2522_v54  ;;  %2941 = vmatprep.mubr.f32.mxu0 %v11022_v0 }
  0xfe   : > { %2758 = vmatprep.subr.mxu1 %v2533_v56  ;;  %v11548_v56 = vrot.slane %v11528_v39, %v11537_v49 }
  0xff   : > { %2759 = vmatpush1.msra.mxu1 %v2532_v57 }
 0x100   : > { %v2842_v58 = vpop.permute.xlu0 %2841  ;;  %v2846_v59 = vpop.permute.xlu1 %2845  ;;  %9890 = vmatmul.mubr.msk.f32.vlgmr.msra.gmra.mrb[6].mxu1 %vm584_vm1, %v9886_v44  ;;  %v11533_v44 = vrot.slane %v11528_v39, %v11521_v36 }
 0x101   : > { %v2859_v60 = vsel %vm2857_vm7, %v2842_v58, %v2844_v55  ;;  %3012 = vmatprep.mubr.f32.mxu1 %v11022_v0  ;;  %v2860_v13 = vsel %vm2857_vm7, %v2844_v55, %v2846_v59 }
 0x102   : > { %2877 = vmatprep.subr.mxu0 %v2859_v60 }
 0x104   : > { %v2840_v61 = vpop.permute.xlu0 %2839  ;;  %v2850_v62 = vpop.permute.xlu1 %2849 }
 0x105   : > { %v2858_v9 = vsel %vm2857_vm7, %v2840_v61, %v2842_v58  ;;  %v3543_v61 = vsub.s32 4, %v11518_v35 }
 0x106   : > { %2878 = vmatpush1.msra.mxu0 %v2858_v9 }
 0x107   : > { %9892 = vmatmul.mubr.msk.f32.vlgmr.msra.gmra.mrb[2].mxu0 %vm584_vm1, %v9891_v63 }
 0x108   : > { %v2848_v10 = vpop.permute.xlu0 %2847  ;;  %v2854_v11 = vpop.permute.xlu1 %2853  ;;  %3083 = vmatprep.mubr.f32.mxu0 %v11022_v0 }
 0x109   : > { %v2861_v12 = vsel %vm2857_vm7, %v2846_v59, %v2848_v10  ;;  %v2862_v17 = vsel %vm2857_vm7, %v2848_v10, %v2850_v62 }
 0x10a   : > { %2948 = vmatprep.subr.mxu1 %v2861_v12 }
 0x10b   : > { %2949 = vmatpush1.msra.mxu1 %v2860_v13 }
 0x10c   : > { %v2852_v14 = vpop.permute.xlu0 %2851  ;;  %9893 = vmatmul.mubr.msk.f32.vlgmr.msra.gmra.mrb[2].mxu1 %vm584_vm1, %v9891_v63 }
 0x10d   : > { %v3174_v15 = vpop.permute.xlu1 %3173  ;;  %v2863_v16 = vsel %vm2857_vm7, %v2850_v62, %v2852_v14  ;;  %3154 = vmatprep.mubr.f32.mxu1 %v11022_v0  ;;  %v2864_v21 = vsel %vm2857_vm7, %v2852_v14, %v2854_v11 }
 0x10e   : > { %3019 = vmatprep.subr.mxu0 %v2863_v16 }
 0x10f   : > { %3020 = vmatpush1.msra.mxu0 %v2862_v17 }
 0x110   : > { %v2856_v18 = vpop.permute.xlu0 %2855  ;;  %9894 = vmatmul.mubr.msk.f32.vlgmr.msra.gmra.mrb[0].mxu0 %vm584_vm1, %v9891_v63 }
 0x111   : > { %v3172_v19 = vpop.permute.xlu1 %3171  ;;  %v2865_v20 = vsel %vm2857_vm7, %v2854_v11, %v2856_v18  ;;  %3273 = vmatprep.mubr.f32.mxu0 %v11022_v0  ;;  %v3547_v11 = vsub.s32 5, %v11518_v35 }
 0x112   : > { %3090 = vmatprep.subr.mxu1 %v2865_v20  ;;  %v3190_v26 = vsel %vm3189_vm8, %v3172_v19, %v3174_v15 }
 0x113   : > { %3091 = vmatpush1.msra.mxu1 %v2864_v21  ;;  %v11584_v13 = vrot.slane %v11528_v39, %v3547_v11  ;;  %v3539_v21 = vsub.s32 3, %v11518_v35 }
 0x114   : > { %v3176_v22 = vpop.permute.xlu0 %3175  ;;  %9895 = vmatmul.mubr.msk.f32.vlgmr.msra.gmra.mrb[6].mxu1 %vm584_vm1, %v9891_v63  ;;  %v11568_v63 = vrot.slane %v11528_v39, %v3543_v61 }
 0x115   : > { %v3191_v23 = vsel %vm3189_vm8, %v3174_v15, %v3176_v22  ;;  %v3180_v24 = vpop.permute.xlu1 %3179  ;;  %3344 = vmatprep.mubr.f32.mxu1 %v11022_v0  ;;  %v3535_v15 = vsub.s32 2, %v11518_v35 }
 0x116   : > { %3209 = vmatprep.subr.mxu0 %v3191_v23  ;;  %v11616_v23 = vrot.slane %v11528_v39, %v3539_v21 }
 0x117   : > { %3210 = vmatpush1.msra.mxu0 %v3190_v26  ;;  %v11600_v18 = vrot.slane %v11528_v39, %v3535_v15  ;;  %v3551_v26 = vsub.s32 6, %v11518_v35 }
 0x118   : > { %9897 = vmatmul.mubr.msk.f32.vlgmr.msra.gmra.mrb[2].mxu0 %vm584_vm1, %v9896_v25  ;;  %v3178_v27 = vpop.permute.xlu0 %3177 }
 0x119   : > { %v3193_v28 = vsel %vm3189_vm8, %v3178_v27, %v3180_v24  ;;  %v3192_v29 = vsel %vm3189_vm8, %v3176_v22, %v3178_v27  ;;  %v3184_v30 = vpop.permute.xlu1 %3183  ;;  %3415 = vmatprep.mubr.f32.mxu0 %v11022_v0 }
 0x11a   : > { %3280 = vmatprep.subr.mxu1 %v3193_v28  ;;  %v11632_v28 = vrot.slane %v11528_v39, %v3551_v26  ;;  %v11798_v26 = vld [vmem:[%s13717_s3] sm:$0xff] }
 0x11b   : > { %3281 = vmatpush1.msra.mxu1 %v3192_v29 }
 0x11c   : > { %9898 = vmatmul.mubr.msk.f32.vlgmr.msra.gmra.mrb[2].mxu1 %vm584_vm1, %v9896_v25  ;;  %v3182_v31 = vpop.permute.xlu0 %3181 }
 0x11d   : > { %v3195_v1 = vsel %vm3189_vm8, %v3182_v31, %v3184_v30  ;;  %v3194_v3 = vsel %vm3189_vm8, %v3180_v24, %v3182_v31  ;;  %3486 = vmatprep.mubr.f32.mxu1 %v11022_v0  ;;  %v3188_v7 = vpop.permute.xlu1 %3187  ;;  %v3555_v31 = vsub.s32 7, %v11518_v35 }
 0x11e   : > { %3351 = vmatprep.subr.mxu0 %v3195_v1 }
 0x11f   : > { %3352 = vmatpush1.msra.mxu0 %v3194_v3  ;;  %v11648_v3 = vrot.slane %v11528_v39, %v3555_v31 }
 0x120   : > { %9899 = vmatmul.mubr.msk.f32.vlgmr.msra.gmra.mrb[0].mxu0 %vm584_vm1, %v9896_v25  ;;  %v3186_v32 = vpop.permute.xlu0 %3185 }
 0x121   : > { %v3197_v4 = vsel %vm3189_vm8, %v3186_v32, %v3188_v7  ;;  %v3196_v2 = vsel %vm3189_vm8, %v3184_v30, %v3186_v32  ;;  %3703 = vmatprep.mubr.f32.mxu0 %v11022_v0  ;;  %v11701_v32 = vpop.permute.xlu1 %3923 }
 0x122   : > { %3422 = vmatprep.subr.mxu1 %v3197_v4 }
 0x123   : > { %3423 = vmatpush1.msra.mxu1 %v3196_v2 }
 0x124   : > { %9900 = vmatmul.mubr.msk.f32.vlgmr.msra.gmra.mrb[6].mxu1 %vm584_vm1, %v9896_v25 }
 0x125   : > { %3774 = vmatprep.mubr.f32.mxu1 %v11022_v0  ;;  %v11711_v2 = vpop.permute.xlu1 %4577 }
 0x131   : > { %v11523_v38 = vpop.permute.xlu0 %3504 }
 0x135   : > { %v3603_v4 = vpop.permute.xlu0 %3602 }
 0x187   : > { %v1118_v5 = vpop.f32.mrb[4].mxu1 }
 0x188   : > { %v1120_v33 = vpop.f32.mrb[5].mxu1 }
 0x192   : > { %v1300_v8 = vpop.f32.mrb[0].mxu1 }
 0x193   : > { %v1302_v34 = vpop.f32.mrb[1].mxu1 }
 0x1eb   : > { %v3275_v37 = vpop.f32.mrb[2].mxu0 }
 0x1ec   : > { %v10643_v40 = vadd.f32 %v3275_v37, %v1300_v8  ;;  %v3277_v41 = vpop.f32.mrb[3].mxu0 }
 0x1ed   : > { %v10644_v42 = vadd.f32 %v3277_v41, %v1302_v34  ;;  %v11745_v41 = vld [vmem:[%s13717_s3 + $0x8] sm:$0xff] }
 0x1ee   : > { %v3507_v43 = vadd.f32 %v10643_v40, %v11523_v38 }
 0x1ef   : > { %v3346_v45 = vpop.f32.mrb[2].mxu1  ;;  %v3508_v48 = vadd.f32 %v10644_v42, %v11523_v38 }
 0x1f0   : > { %v3515_v46 = vmax.f32 %v3507_v43, 0.0  ;;  %v3348_v47 = vpop.f32.mrb[3].mxu1  ;;  %v3509_v14 = vadd.f32 %v11523_v38, %v3346_v45  ;;  %v6545_v43 = vld [vmem:[%s13718_s4] sm:$0xff]  ;;  %s11036_s4 = smov 112  }
 0x1f1   : > { %v3516_v55 = vmax.f32 %v3508_v48, 0.0  ;;  %v3510_v20 = vadd.f32 %v11523_v38, %v3348_v47 }
 0x1f2   : > { %v11540_v50 = vmul.f32 %v11533_v44, %v3515_v46  ;;  %v3517_v17 = vmax.f32 %v3509_v14, 0.0 }
 0x1f3   : > { %v3417_v51 = vpop.f32.mrb[0].mxu0  ;;  %v11555_v59 = vmul.f32 %v11548_v56, %v3516_v55  ;;  %v3518_v22 = vmax.f32 %v3510_v20, 0.0 }
 0x1f4   : > { %v10645_v52 = vadd.f32 %v3417_v51, %v1118_v5  ;;  %v3419_v53 = vpop.f32.mrb[1].mxu0  ;;  %4248 = vrot.lane.b32.xlu0 %v11540_v50, %s13711_s26  ;;  %3604 = vrot.lane.b32.xlu1 %v11540_v50, %s13710_s17  ;;  %v11607_v19 = vmul.f32 %v11600_v18, %v3517_v17  ;;  %v11713_v5 = vpop.permute.xlu0 %4246 }
 0x1f5   : > { %v10646_v54 = vadd.f32 %v3419_v53, %v1120_v33  ;;  %v11623_v24 = vmul.f32 %v11616_v23, %v3518_v22 }
 0x1f6   : > { %v3511_v60 = vadd.f32 %v10645_v52, %v11523_v38 }
 0x1f7   : > { %v3488_v57 = vpop.f32.mrb[6].mxu1  ;;  %v3512_v10 = vadd.f32 %v10646_v54, %v11523_v38 }
 0x1f8   : > { %v3490_v58 = vpop.f32.mrb[7].mxu1  ;;  %5223 = vrot.lane.b32.xlu0 %v11540_v50, %s13713_s30  ;;  %3925 = vrot.lane.b32.xlu1 %v11540_v50, %s11024_s16  ;;  %v3519_v62 = vmax.f32 %v3511_v60, 0.0  ;;  %v3513_v25 = vadd.f32 %v11523_v38, %v3488_v57 }
 0x1f9   : > { %v3520_v12 = vmax.f32 %v3512_v10, 0.0  ;;  %v3514_v30 = vadd.f32 %v11523_v38, %v3490_v58 }
 0x1fa   : > { %v11575_v9 = vmul.f32 %v11568_v63, %v3519_v62  ;;  %v3521_v27 = vmax.f32 %v3513_v25, 0.0 }
 0x1fb   : > { %v11593_v16 = vmul.f32 %v11584_v13, %v3520_v12  ;;  %v3522_v1 = vmax.f32 %v3514_v30, 0.0 }
 0x1fc   : > { %3927 = vrot.lane.b32.xlu0 %v11555_v59, %s11024_s16  ;;  %4579 = vrot.lane.b32.xlu1 %v11540_v50, %s13694_s23  ;;  %v11639_v29 = vmul.f32 %v11632_v28, %v3521_v27 }
 0x1fd   : > { %v11655_v7 = vmul.f32 %v11648_v3, %v3522_v1 }
 0x200   : > { %4581 = vrot.lane.b32.xlu0 %v11555_v59, %s13694_s23  ;;  %3606 = vrot.lane.b32.xlu1 %v11555_v59, %s13710_s17 }
 0x204   : > { %5225 = vrot.lane.b32.xlu0 %v11555_v59, %s13713_s30  ;;  %4250 = vrot.lane.b32.xlu1 %v11555_v59, %s13711_s26 }
 0x208   : > { %3933 = vrot.lane.b32.xlu0 %v11575_v9, %s11024_s16  ;;  %3612 = vrot.lane.b32.xlu1 %v11575_v9, %s13710_s17 }
 0x20c   : > { %4587 = vrot.lane.b32.xlu0 %v11575_v9, %s13694_s23  ;;  %4256 = vrot.lane.b32.xlu1 %v11575_v9, %s13711_s26 }
 0x210   : > { %3614 = vrot.lane.b32.xlu0 %v11593_v16, %s13710_s17  ;;  %3935 = vrot.lane.b32.xlu1 %v11593_v16, %s11024_s16 }
 0x214   : > { %4258 = vrot.lane.b32.xlu0 %v11593_v16, %s13711_s26  ;;  %4589 = vrot.lane.b32.xlu1 %v11593_v16, %s13694_s23 }
 0x218   : > { %3929 = vrot.lane.b32.xlu0 %v11607_v19, %s11024_s16  ;;  %3608 = vrot.lane.b32.xlu1 %v11607_v19, %s13710_s17 }
 0x21c   : > { %4583 = vrot.lane.b32.xlu0 %v11607_v19, %s13694_s23  ;;  %4252 = vrot.lane.b32.xlu1 %v11607_v19, %s13711_s26 }
 0x220   : > { %3610 = vrot.lane.b32.xlu0 %v11623_v24, %s13710_s17  ;;  %5227 = vrot.lane.b32.xlu1 %v11607_v19, %s13713_s30 }
 0x224   : > { %4254 = vrot.lane.b32.xlu0 %v11623_v24, %s13711_s26  ;;  %3931 = vrot.lane.b32.xlu1 %v11623_v24, %s11024_s16 }
 0x228   : > { %3937 = vrot.lane.b32.xlu0 %v11639_v29, %s11024_s16  ;;  %4585 = vrot.lane.b32.xlu1 %v11623_v24, %s13694_s23 }
 0x22c   : > { %4591 = vrot.lane.b32.xlu0 %v11639_v29, %s13694_s23  ;;  %5229 = vrot.lane.b32.xlu1 %v11623_v24, %s13713_s30 }
 0x230   : > { %3618 = vrot.lane.b32.xlu0 %v11655_v7, %s13710_s17  ;;  %3616 = vrot.lane.b32.xlu1 %v11639_v29, %s13710_s17  ;;  %s13715_s17 = smov 98  }
 0x234   : > { %5231 = vrot.lane.b32.xlu0 %v11575_v9, %s13713_s30  ;;  %4260 = vrot.lane.b32.xlu1 %v11639_v29, %s13711_s26 }
 0x238   : > { %5235 = vrot.lane.b32.xlu0 %v11639_v29, %s13713_s30  ;;  %5233 = vrot.lane.b32.xlu1 %v11593_v16, %s13713_s30 }
 0x23c   : > { %5239 = vrot.lane.b32.xlu0 %v11022_v0, %s13713_s30  ;;  %5556 = vrot.lane.b32.xlu1 %v11555_v59, %s13714_s25 }
 0x240   : > { %4262 = vrot.lane.b32.xlu0 %v11655_v7, %s13711_s26  ;;  %3939 = vrot.lane.b32.xlu1 %v11655_v7, %s11024_s16  ;;  %s13716_s16 = smov 97   ;;  %s11033_s26 = smov 17  }
 0x244   : > { %5558 = vrot.lane.b32.xlu0 %v11607_v19, %s13714_s25  ;;  %5554 = vrot.lane.b32.xlu1 %v11540_v50, %s13714_s25 }
 0x248   : > { %5560 = vrot.lane.b32.xlu0 %v11623_v24, %s13714_s25  ;;  %5562 = vrot.lane.b32.xlu1 %v11575_v9, %s13714_s25 }
 0x24c   : > { %5564 = vrot.lane.b32.xlu0 %v11593_v16, %s13714_s25  ;;  %5566 = vrot.lane.b32.xlu1 %v11639_v29, %s13714_s25 }
 0x250   : > { %5887 = vrot.lane.b32.xlu0 %v11555_v59, %s13715_s17  ;;  %4593 = vrot.lane.b32.xlu1 %v11655_v7, %s13694_s23  ;;  %s11032_s23 = smov 16  }
 0x254   : > { %5885 = vrot.lane.b32.xlu0 %v11540_v50, %s13715_s17  ;;  %5570 = vrot.lane.b32.xlu1 %v11022_v0, %s13714_s25 }
 0x258   : > { %5893 = vrot.lane.b32.xlu0 %v11575_v9, %s13715_s17  ;;  %5889 = vrot.lane.b32.xlu1 %v11607_v19, %s13715_s17 }
 0x25c   : > { %5897 = vrot.lane.b32.xlu0 %v11639_v29, %s13715_s17  ;;  %5891 = vrot.lane.b32.xlu1 %v11623_v24, %s13715_s17 }
 0x260   : > { %5568 = vrot.lane.b32.xlu0 %v11655_v7, %s13714_s25  ;;  %5237 = vrot.lane.b32.xlu1 %v11655_v7, %s13713_s30  ;;  %s10044_s25 = sshll.u32 %s11142_s22, 4  ;;  %s11040_s22 = smov [#allocation4]  }
 0x261   : > { %s10962_s0 = sshll.u32 %s11040_s22, 4  ;;  %s10963_s0 = int_to_ptr.vmem [resolvable:$false] %s10962_s0 }
 0x262   : > { %s10964_s27 = scalar_lea.vmem %s10963_s0, 32 }
 0x264   : > { %5901 = vrot.lane.b32.xlu0 %v11022_v0, %s13715_s17  ;;  %5895 = vrot.lane.b32.xlu1 %v11593_v16, %s13715_s17 }
 0x266   : > { %v3605_v33 = vpop.permute.xlu1 %3604  ;;  %v11719_v8 = vpop.permute.xlu0 %4248 }
 0x267   : > { %v3620_v42 = vsel %vm567_vm0, %v3603_v4, %v3605_v33  ;;  %v4264_v4 = vsel %vm1214_vm3, %v11713_v5, %v11719_v8 }
 0x268   : > { %6220 = vrot.lane.b32.xlu0 %v11607_v19, %s13716_s16  ;;  %6218 = vrot.lane.b32.xlu1 %v11555_v59, %s13716_s16 }
 0x26a   : > { %v3926_v34 = vpop.permute.xlu1 %3925  ;;  %v11725_v6 = vpop.permute.xlu0 %5223 }
 0x26b   : > { %v3941_v22 = vsel %vm890_vm2, %v11701_v32, %v3926_v34 }
 0x26c   : > { %6222 = vrot.lane.b32.xlu0 %v11623_v24, %s13716_s16  ;;  %6216 = vrot.lane.b32.xlu1 %v11540_v50, %s13716_s16 }
 0x26e   : > { %v11731_v35 = vpop.permute.xlu1 %4579  ;;  %v11733_v37 = vpop.permute.xlu0 %3927 }
 0x26f   : > { %v3942_v20 = vsel %vm890_vm2, %v3926_v34, %v11733_v37 }
 0x270   : > { %6226 = vrot.lane.b32.xlu0 %v11593_v16, %s13716_s16  ;;  %5899 = vrot.lane.b32.xlu1 %v11655_v7, %s13715_s17 }
 0x272   : > { %v3607_v38 = vpop.permute.xlu1 %3606  ;;  %v11739_v39 = vpop.permute.xlu0 %4581 }
 0x273   : > { %v3621_v40 = vsel %vm567_vm0, %v3605_v33, %v3607_v38 }
 0x274   : > { %3639 = vmatprep.subr.mxu0 %v3621_v40  ;;  %6230 = vrot.lane.b32.xlu0 %v11655_v7, %s13716_s16  ;;  %v11831_v40 = vld [vmem:[%s13717_s3 + $0x10] sm:$0xff] }
 0x275   : > { %6224 = vrot.lane.b32.xlu1 %v11575_v9, %s13716_s16  ;;  %3640 = vmatpush1.msra.mxu0 %v3620_v42  ;;  %v4596_v42 = vsel %vm1546_vm4, %v11731_v35, %v11739_v39 }
 0x276   : > { %v11755_v45 = vpop.permute.xlu1 %4250  ;;  %v11757_v46 = vpop.permute.xlu0 %5225  ;;  %9902 = vmatmul.mubr.msk.f32.vlgmr.msra.gmra.mrb[4].mxu0 %vm584_vm1, %v11745_v41 }
 0x277   : > { %3845 = vmatprep.mubr.f32.mxu0 %v11022_v0  ;;  %v4265_v1 = vsel %vm1214_vm3, %v11719_v8, %v11755_v45 }
 0x278   : > { %6548 = vperm.xlu0 %10881, %v6545_v43  }
 0x279   : > { %6228 = vrot.lane.b32.xlu1 %v11639_v29, %s13716_s16 }
 0x27a   : > { %v3613_v47 = vpop.permute.xlu1 %3612  ;;  %v3934_v48 = vpop.permute.xlu0 %3933 }
 0x27d   : > { %6232 = vrot.lane.b32.xlu1 %v11022_v0, %s13716_s16 }
 0x27e   : > { %v4257_v51 = vpop.permute.xlu1 %4256  ;;  %v11766_v52 = vpop.permute.xlu0 %4587 }
 0x282   : > { %v11768_v53 = vpop.permute.xlu1 %3935  ;;  %v3615_v54 = vpop.permute.xlu0 %3614 }
 0x283   : > { %v3625_v55 = vsel %vm567_vm0, %v3613_v47, %v3615_v54  ;;  %v3946_v27 = vsel %vm890_vm2, %v3934_v48, %v11768_v53 }
 0x284   : > { %3781 = vmatprep.subr.mxu0 %v3625_v55 }
 0x286   : > { %v11771_v57 = vpop.permute.xlu1 %4589  ;;  %v11773_v58 = vpop.permute.xlu0 %4258 }
 0x287   : > { %v4269_v34 = vsel %vm1214_vm3, %v4257_v51, %v11773_v58 }
 0x28a   : > { %v3609_v60 = vpop.permute.xlu1 %3608  ;;  %v11775_v61 = vpop.permute.xlu0 %3929 }
 0x28b   : > { %v3622_v17 = vsel %vm567_vm0, %v3607_v38, %v3609_v60 }
 0x28e   : > { %v11777_v62 = vpop.permute.xlu1 %4252  ;;  %v11779_v10 = vpop.permute.xlu0 %4583 }
 0x292   : > { %v11781_v11 = vpop.permute.xlu1 %5227  ;;  %v3611_v12 = vpop.permute.xlu0 %3610 }
 0x293   : > { %v3623_v14 = vsel %vm567_vm0, %v3609_v60, %v3611_v12  ;;  %v3624_v15 = vsel %vm567_vm0, %v3611_v12, %v3613_v47  ;;  %v4600_v12 = vsel %vm1546_vm4, %v11766_v52, %v11771_v57 }
 0x294   : > { %3710 = vmatprep.subr.mxu1 %v3623_v14  ;;  %3782 = vmatpush1.msra.mxu0 %v3624_v15  ;;  %v11858_v14 = vld [vmem:[%s13717_s3 + $0x18] sm:$0xff] }
 0x295   : > { %3711 = vmatpush1.msra.mxu1 %v3622_v17  ;;  %9904 = vmatmul.mubr.msk.f32.vlgmr.msra.gmra.mrb[6].mxu0 %vm584_vm1, %v11745_v41 }
 0x296   : > { %3960 = vmatprep.subr.mxu0 %v3942_v20  ;;  %v3932_v21 = vpop.permute.xlu1 %3931  ;;  %v11792_v25 = vpop.permute.xlu0 %4254  ;;  %4024 = vmatprep.mubr.f32.mxu0 %v11022_v0 }
 0x297   : > { %3961 = vmatpush1.msra.mxu0 %v3941_v22  ;;  %v3945_v30 = vsel %vm890_vm2, %v3932_v21, %v3934_v48  ;;  %9903 = vmatmul.mubr.msk.f32.vlgmr.msra.gmra.mrb[8].mxu1 %vm584_vm1, %v11745_v41  ;;  %v4268_v5 = vsel %vm1214_vm3, %v11792_v25, %v4257_v51  ;;  %v4595_v51 = vsel %vm1546_vm4, %v11711_v2, %v11731_v35 }
 0x298   : > { %4102 = vmatprep.subr.mxu0 %v3946_v27  ;;  %3916 = vmatprep.mubr.f32.mxu1 %v11022_v0  ;;  %v3944_v55 = vsel %vm890_vm2, %v11775_v61, %v3932_v21  ;;  %v3943_v2 = vsel %vm890_vm2, %v11733_v37, %v11775_v61  ;;  %v4267_v22 = vsel %vm1214_vm3, %v11777_v62, %v11792_v25 }
 0x299   : > { %9906 = vmatmul.mubr.msk.f32.vlgmr.msra.gmra.mrb[4].mxu0 %vm584_vm1, %v11798_v26 }
 0x29a   : > { %4103 = vmatpush1.msra.mxu0 %v3945_v30  ;;  %v11808_v31 = vpop.permute.xlu1 %4585  ;;  %v11813_v32 = vpop.permute.xlu0 %3937  ;;  %4166 = vmatprep.mubr.f32.mxu0 %v11022_v0 }
 0x29b   : > { %4283 = vmatprep.subr.mxu0 %v4265_v1  ;;  %v4599_v35 = vsel %vm1546_vm4, %v11808_v31, %v11766_v52  ;;  %v11888_v52 = vld [vmem:[%s13717_s3 + $0x20] sm:$0xff] }
 0x29d   : > { %9908 = vmatmul.mubr.msk.f32.vlgmr.msra.gmra.mrb[6].mxu0 %vm584_vm1, %v11798_v26 }
 0x29e   : > { %4284 = vmatpush1.msra.mxu0 %v4264_v4  ;;  %v11821_v33 = vpop.permute.xlu1 %5229  ;;  %v11825_v38 = vpop.permute.xlu0 %4591  ;;  %4347 = vmatprep.mubr.f32.mxu0 %v11022_v0 }
 0x29f   : > { %4425 = vmatprep.subr.mxu0 %v4269_v34 }
 0x2a1   : > { %9911 = vmatmul.mubr.msk.f32.vlgmr.msra.gmra.mrb[4].mxu0 %vm584_vm1, %v11831_v40 }
 0x2a2   : > { %4426 = vmatpush1.msra.mxu0 %v4268_v5  ;;  %v3617_v8 = vpop.permute.xlu1 %3616  ;;  %v3619_v43 = vpop.permute.xlu0 %3618  ;;  %4489 = vmatprep.mubr.f32.mxu0 %v11022_v0 }
 0x2a3   : > { %4614 = vmatprep.subr.mxu0 %v4596_v42  ;;  %v3627_v47 = vsel %vm567_vm0, %v3617_v8, %v3619_v43  ;;  %v3626_v48 = vsel %vm567_vm0, %v3615_v54, %v3617_v8  ;;  %v11962_v8 = vld [vmem:[%s13717_s3 + $0x30] sm:$0xff]  ;;  %v4601_v43 = vsel %vm1546_vm4, %v11771_v57, %v11825_v38  ;;  %vm11039_vm0 = vmmov 0  }
 0x2a4   : > { %3852 = vmatprep.subr.mxu1 %v3627_v47 }
 0x2a5   : > { %3853 = vmatpush1.msra.mxu1 %v3626_v48  ;;  %9913 = vmatmul.mubr.msk.f32.vlgmr.msra.gmra.mrb[6].mxu0 %vm584_vm1, %v11831_v40 }
 0x2a6   : > { %4615 = vmatpush1.msra.mxu0 %v4595_v51  ;;  %v4261_v60 = vpop.permute.xlu1 %4260  ;;  %4031 = vmatprep.subr.mxu1 %v3944_v55  ;;  %v11853_v54 = vpop.permute.xlu0 %5231 }
 0x2a7   : > { %4756 = vmatprep.subr.mxu0 %v4600_v12  ;;  %9905 = vmatmul.mubr.msk.f32.vlgmr.msra.gmra.mrb[10].mxu1 %vm584_vm1, %v11745_v41 }
 0x2a8   : > { %4032 = vmatpush1.msra.mxu1 %v3943_v2  ;;  %4678 = vmatprep.mubr.f32.mxu0 %v11022_v0 }
 0x2a9   : > { %9916 = vmatmul.mubr.msk.f32.vlgmr.msra.gmra.mrb[4].mxu0 %vm584_vm1, %v11858_v14  ;;  %4095 = vmatprep.mubr.f32.mxu1 %v11022_v0 }
 0x2aa   : > { %4757 = vmatpush1.msra.mxu0 %v4599_v35  ;;  %v5234_v15 = vpop.permute.xlu1 %5233  ;;  %v11872_v17 = vpop.permute.xlu0 %5235  ;;  %4820 = vmatprep.mubr.f32.mxu0 %v11022_v0 }
 0x2ab   : > { %4911 = vmatprep.subr.mxu0 %v11555_v59  ;;  %9907 = vmatmul.mubr.msk.f32.vlgmr.msra.gmra.mrb[8].mxu1 %vm584_vm1, %v11798_v26  ;;  %v5245_v25 = vsel %vm2193_vm5, %v11853_v54, %v5234_v15 }
 0x2ac   : > { %4237 = vmatprep.mubr.f32.mxu1 %v11022_v0 }
 0x2ad   : > { %9918 = vmatmul.mubr.msk.f32.vlgmr.msra.gmra.mrb[6].mxu0 %vm584_vm1, %v11858_v14 }
 0x2ae   : > { %4912 = vmatpush1.msra.mxu0 %v11540_v50  ;;  %v5557_v37 = vpop.permute.xlu1 %5556  ;;  %v11882_v41 = vpop.permute.xlu0 %5239  ;;  %4975 = vmatprep.mubr.f32.mxu0 %v11022_v0  ;;  %v5242_v50 = vsel %vm2193_vm5, %v11757_v46, %v11781_v11 }
 0x2af   : > { %5053 = vmatprep.subr.mxu0 %v11593_v16  ;;  %v3947_v16 = vsel %vm890_vm2, %v11768_v53, %v11813_v32  ;;  %v5246_v53 = vsel %vm2193_vm5, %v5234_v15, %v11872_v17 }
 0x2b1   : > { %9921 = vmatmul.mubr.msk.f32.vlgmr.msra.gmra.mrb[4].mxu0 %vm584_vm1, %v11888_v52 }
 0x2b2   : > { %5054 = vmatpush1.msra.mxu0 %v11575_v9  ;;  %v3940_v59 = vpop.permute.xlu1 %3939  ;;  %v4263_v61 = vpop.permute.xlu0 %4262  ;;  %5117 = vmatprep.mubr.f32.mxu0 %v11022_v0  ;;  %v5241_v9 = vsel %vm2193_vm5, %v11725_v6, %v11757_v46  ;;  %v4266_v6 = vsel %vm1214_vm3, %v11755_v45, %v11777_v62  ;;  %v11923_v46 = vld [vmem:[%s13717_s3 + $0x28] sm:$0xff]  ;;  %v4270_v62 = vsel %vm1214_vm3, %v11773_v58, %v4261_v60 }
 0x2b3   : > { %5260 = vmatprep.subr.mxu0 %v5242_v50  ;;  %v3948_v20 = vsel %vm890_vm2, %v11813_v32, %v3940_v59  ;;  %v4598_v32 = vsel %vm1546_vm4, %v11779_v10, %v11808_v31  ;;  %v4597_v31 = vsel %vm1546_vm4, %v11739_v39, %v11779_v10  ;;  %vm9781_vm2 = vcmask 73728  }
 0x2b4   : > { %4173 = vmatprep.subr.mxu1 %v3948_v20 }
 0x2b5   : > { %4174 = vmatpush1.msra.mxu1 %v3947_v16  ;;  %9923 = vmatmul.mubr.msk.f32.vlgmr.msra.gmra.mrb[6].mxu0 %vm584_vm1, %v11888_v52 }
 0x2b6   : > { %5261 = vmatpush1.msra.mxu0 %v5241_v9  ;;  %v5555_v21 = vpop.permute.xlu1 %5554  ;;  %9909 = vmatmul.mubr.msk.f32.vlgmr.msra.gmra.mrb[10].mxu1 %vm584_vm1, %v11798_v26  ;;  %v11915_v27 = vpop.permute.xlu0 %5558  ;;  %v4271_v26 = vsel %vm1214_vm3, %v4261_v60, %v4263_v61 }
 0x2b7   : > { %4354 = vmatprep.subr.mxu1 %v4267_v22  ;;  %5402 = vmatprep.subr.mxu0 %v5246_v53  ;;  %v5573_v1 = vsel %vm2525_vm6, %v5557_v37, %v11915_v27  ;;  %v5572_v4 = vsel %vm2525_vm6, %v5555_v21, %v5557_v37  ;;  %v9940_v22 = vld [vmem:[%s13717_s3 + $0x40] sm:$0xff] }
 0x2b8   : > { %4355 = vmatpush1.msra.mxu1 %v4266_v6  ;;  %5324 = vmatprep.mubr.f32.mxu0 %v11022_v0 }
 0x2b9   : > { %4496 = vmatprep.subr.mxu1 %v4271_v26  ;;  %4418 = vmatprep.mubr.f32.mxu1 %v11022_v0 }
 0x2ba   : > { %9926 = vmatmul.mubr.msk.f32.vlgmr.msra.gmra.mrb[4].mxu0 %vm584_vm1, %v11923_v46  ;;  %v11932_v45 = vpop.permute.xlu1 %5562  ;;  %9912 = vmatmul.mubr.msk.f32.vlgmr.msra.gmra.mrb[8].mxu1 %vm584_vm1, %v11831_v40  ;;  %v11938_v30 = vpop.permute.xlu0 %5560 }
 0x2bb   : > { %5403 = vmatpush1.msra.mxu0 %v5245_v25  ;;  %4497 = vmatpush1.msra.mxu1 %v4270_v62  ;;  %v5574_v35 = vsel %vm2525_vm6, %v11915_v27, %v11938_v30 }
 0x2bc   : > { %5591 = vmatprep.subr.mxu0 %v5573_v1  ;;  %4685 = vmatprep.subr.mxu1 %v4598_v32 }
 0x2bd   : > { %5466 = vmatprep.mubr.f32.mxu0 %v11022_v0  ;;  %4560 = vmatprep.mubr.f32.mxu1 %v11022_v0 }
 0x2be   : > { %9928 = vmatmul.mubr.msk.f32.vlgmr.msra.gmra.mrb[6].mxu0 %vm584_vm1, %v11923_v46  ;;  %v11950_v58 = vpop.permute.xlu1 %5566  ;;  %9914 = vmatmul.mubr.msk.f32.vlgmr.msra.gmra.mrb[10].mxu1 %vm584_vm1, %v11831_v40  ;;  %v5565_v34 = vpop.permute.xlu0 %5564 }
 0x2bf   : > { %5592 = vmatpush1.msra.mxu0 %v5572_v4  ;;  %4686 = vmatpush1.msra.mxu1 %v4597_v31  ;;  %v5577_v5 = vsel %vm2525_vm6, %v5565_v34, %v11950_v58  ;;  %v5576_v42 = vsel %vm2525_vm6, %v11932_v45, %v5565_v34 }
 0x2c0   : > { %5655 = vmatprep.mubr.f32.mxu0 %v11022_v0  ;;  %5733 = vmatprep.subr.mxu0 %v5577_v5 }
 0x2c1   : > { %4749 = vmatprep.mubr.f32.mxu1 %v11022_v0 }
 0x2c2   : > { %9931 = vmatmul.mubr.msk.f32.vlgmr.msra.gmra.mrb[4].mxu0 %vm584_vm1, %v11962_v8  ;;  %v4594_v39 = vpop.permute.xlu1 %4593  ;;  %9917 = vmatmul.mubr.msk.f32.vlgmr.msra.gmra.mrb[8].mxu1 %vm584_vm1, %v11858_v14  ;;  %v5888_v10 = vpop.permute.xlu0 %5887 }
 0x2c3   : > { %5734 = vmatpush1.msra.mxu0 %v5576_v42  ;;  %v4602_v40 = vsel %vm1546_vm4, %v11825_v38, %v4594_v39  ;;  %4891 = vmatprep.mubr.f32.mxu1 %v11022_v0  ;;  %v6780_v42 = vld [vmem:[%s13677_s11 + $0x18] sm:$0xff]  ;;  %v6777_v39 = vld [vmem:[%s13677_s11] sm:$0xff] }
 0x2c4   : > { %4827 = vmatprep.subr.mxu1 %v4602_v40  ;;  %5797 = vmatprep.mubr.f32.mxu0 %v11022_v0  ;;  %v6779_v40 = vld [vmem:[%s13677_s11 + $0x10] sm:$0xff] }
 0x2c5   : > { %4828 = vmatpush1.msra.mxu1 %v4601_v43  ;;  %v6782_v43 = vld [vmem:[%s13677_s11 + $0x28] sm:$0xff] }
 0x2c6   : > { %v5571_v47 = vpop.permute.xlu1 %5570  ;;  %9919 = vmatmul.mubr.msk.f32.vlgmr.msra.gmra.mrb[10].mxu1 %vm584_vm1, %v11858_v14  ;;  %4982 = vmatprep.subr.mxu1 %v11623_v24  ;;  %v5886_v48 = vpop.permute.xlu0 %5885  ;;  %v5244_v24 = vsel %vm2193_vm5, %v11821_v33, %v11853_v54 }
 0x2c7   : > { %4983 = vmatpush1.msra.mxu1 %v11607_v19  ;;  %5046 = vmatprep.mubr.f32.mxu1 %v11022_v0  ;;  %v5903_v55 = vsel %vm2857_vm7, %v5886_v48, %v5888_v10  ;;  %v10285_v48 = vpack.c.bf16 %v6779_v40, %v6777_v39  ;;  %v6816_v39 = vld [vmem:[%s13677_s11 + $0x138] sm:$0xff] }
 0x2c8   : > { %5124 = vmatprep.subr.mxu1 %v11655_v7  ;;  %9933 = vmatmul.mubr.msk.f32.vlgmr.msra.gmra.mrb[6].mxu0 %vm584_vm1, %v11962_v8  ;;  %v11999_v7 = vld [vmem:[%s13717_s3 + $0x38] sm:$0xff]  ;;  %s11035_s3 = smov 113  }
 0x2c9   : > { %5986 = vmatprep.mubr.f32.mxu0 %v11022_v0 }
 0x2ca   : > { %v5890_v57 = vpop.permute.xlu1 %5889  ;;  %9922 = vmatmul.mubr.msk.f32.vlgmr.msra.gmra.mrb[8].mxu1 %vm584_vm1, %v11888_v52  ;;  %v5894_v38 = vpop.permute.xlu0 %5893 }
 0x2cb   : > { %5125 = vmatpush1.msra.mxu1 %v11639_v29  ;;  %v5904_v51 = vsel %vm2857_vm7, %v5888_v10, %v5890_v57  ;;  %5188 = vmatprep.mubr.f32.mxu1 %v11022_v0  ;;  %v5243_v29 = vsel %vm2193_vm5, %v11781_v11, %v11821_v33  ;;  %v5575_v33 = vsel %vm2525_vm6, %v11938_v30, %v11932_v45 }
 0x2cc   : > { %5331 = vmatprep.subr.mxu1 %v5244_v24  ;;  %5922 = vmatprep.subr.mxu0 %v5904_v51  ;;  %v6783_v24 = vld [vmem:[%s13677_s11 + $0x30] sm:$0xff]  ;;  %v6786_v51 = vld [vmem:[%s13677_s11 + $0x48] sm:$0xff] }
 0x2cd   : > { %5923 = vmatpush1.msra.mxu0 %v5903_v55 }
 0x2ce   : > { %v5892_v60 = vpop.permute.xlu1 %5891  ;;  %9924 = vmatmul.mubr.msk.f32.vlgmr.msra.gmra.mrb[10].mxu1 %vm584_vm1, %v11888_v52  ;;  %v5898_v12 = vpop.permute.xlu0 %5897  ;;  %9936 = vmatmul.mubr.msk.f32.vlgmr.msra.gmra.mrb[4].mxu0 %vm584_vm1, %v11999_v7 }
 0x2cf   : > { %5332 = vmatpush1.msra.mxu1 %v5243_v29  ;;  %5395 = vmatprep.mubr.f32.mxu1 %v11022_v0  ;;  %v5906_v20 = vsel %vm2857_vm7, %v5892_v60, %v5894_v38  ;;  %v5905_v9 = vsel %vm2857_vm7, %v5890_v57, %v5892_v60  ;;  %v6785_v29 = vld [vmem:[%s13677_s11 + $0x40] sm:$0xff] }
 0x2d0   : > { %6128 = vmatprep.mubr.f32.mxu0 %v11022_v0 }
 0x2d2   : > { %v5238_v54 = vpop.permute.xlu1 %5237  ;;  %9927 = vmatmul.mubr.msk.f32.vlgmr.msra.gmra.mrb[8].mxu1 %vm584_vm1, %v11923_v46  ;;  %v5569_v14 = vpop.permute.xlu0 %5568 }
 0x2d3   : > { %v5247_v2 = vsel %vm2193_vm5, %v11872_v17, %v5238_v54  ;;  %v5248_v11 = vsel %vm2193_vm5, %v5238_v54, %v11882_v41  ;;  %5537 = vmatprep.mubr.f32.mxu1 %v11022_v0  ;;  %v5579_v41 = vsel %vm2525_vm6, %v5569_v14, %v5571_v47  ;;  %v5578_v59 = vsel %vm2525_vm6, %v11950_v58, %v5569_v14  ;;  %v6784_v47 = vld [vmem:[%s13677_s11 + $0x38] sm:$0xff]  ;;  %v6790_v54 = vld [vmem:[%s13677_s11 + $0x68] sm:$0xff] }
 0x2d4   : > { %5473 = vmatprep.subr.mxu1 %v5248_v11  ;;  %v10287_v57 = vpack.c.bf16 %v6784_v47, %v6782_v43  ;;  %v6792_v14 = vld [vmem:[%s13677_s11 + $0x78] sm:$0xff]  ;;  %v6813_v43 = vld [vmem:[%s13677_s11 + $0x120] sm:$0xff]  ;;  %v6815_v47 = vld [vmem:[%s13677_s11 + $0x130] sm:$0xff] }
 0x2d5   : > { %5474 = vmatpush1.msra.mxu1 %v5247_v2  ;;  %v10295_v11 = vpack.c.bf16 %v6792_v14, %v6790_v54  ;;  %v6823_v14 = vld [vmem:[%s13677_s11 + $0x170] sm:$0xff] }
 0x2d6   : > { %v5896_v15 = vpop.permute.xlu1 %5895  ;;  %9929 = vmatmul.mubr.msk.f32.vlgmr.msra.gmra.mrb[10].mxu1 %vm584_vm1, %v11923_v46  ;;  %5662 = vmatprep.subr.mxu1 %v5575_v33  ;;  %v5902_v17 = vpop.permute.xlu0 %5901  ;;  %v6789_v33 = vld [vmem:[%s13677_s11 + $0x60] sm:$0xff] }
 0x2d7   : > { %v5907_v37 = vsel %vm2857_vm7, %v5894_v38, %v5896_v15  ;;  %5663 = vmatpush1.msra.mxu1 %v5574_v35  ;;  %v5908_v52 = vsel %vm2857_vm7, %v5896_v15, %v5898_v12  ;;  %5726 = vmatprep.mubr.f32.mxu1 %v11022_v0  ;;  %v6781_v38 = vld [vmem:[%s13677_s11 + $0x20] sm:$0xff]  ;;  %v6791_v35 = vld [vmem:[%s13677_s11 + $0x70] sm:$0xff]  ;;  %v6794_v15 = vld [vmem:[%s13677_s11 + $0x88] sm:$0xff] }
 0x2d8   : > { %5804 = vmatprep.subr.mxu1 %v5579_v41  ;;  %6064 = vmatprep.subr.mxu0 %v5908_v52  ;;  %v10289_v55 = vpack.c.bf16 %v6783_v24, %v6781_v38  ;;  %v6793_v52 = vld [vmem:[%s13677_s11 + $0x80] sm:$0xff]  ;;  %v6820_v38 = vld [vmem:[%s13677_s11 + $0x158] sm:$0xff] }
 0x2d9   : > { %6065 = vmatpush1.msra.mxu0 %v5907_v37  ;;  %v10297_v37 = vpack.c.bf16 %v6791_v35, %v6789_v33  ;;  %v6817_v24 = vld [vmem:[%s13677_s11 + $0x140] sm:$0xff] }
 0x2da   : > { %v6219_v50 = vpop.permute.xlu1 %6218  ;;  %9932 = vmatmul.mubr.msk.f32.vlgmr.msra.gmra.mrb[8].mxu1 %vm584_vm1, %v11962_v8  ;;  %v6221_v61 = vpop.permute.xlu0 %6220  ;;  %9938 = vmatmul.mubr.msk.f32.vlgmr.msra.gmra.mrb[6].mxu0 %vm584_vm1, %v11999_v7 }
 0x2db   : > { %5805 = vmatpush1.msra.mxu1 %v5578_v59  ;;  %v6235_v16 = vsel %vm3189_vm8, %v6219_v50, %v6221_v61  ;;  %5868 = vmatprep.mubr.f32.mxu1 %v11022_v0  ;;  %v6795_v59 = vld [vmem:[%s13677_s11 + $0x90] sm:$0xff] }
 0x2dc   : > { %5993 = vmatprep.subr.mxu1 %v5906_v20  ;;  %6253 = vmatprep.subr.mxu0 %v6235_v16  ;;  %v10301_v20 = vpack.c.bf16 %v6795_v59, %v6793_v52  ;;  %v6827_v59 = vld [vmem:[%s13677_s11 + $0x190] sm:$0xff] }
 0x2dd   : > { %6317 = vmatprep.mubr.f32.mxu0 %v11022_v0 }
 0x2de   : > { %v6217_v21 = vpop.permute.xlu1 %6216  ;;  %9934 = vmatmul.mubr.msk.f32.vlgmr.msra.gmra.mrb[10].mxu1 %vm584_vm1, %v11962_v8  ;;  %v6223_v6 = vpop.permute.xlu0 %6222  ;;  %v6778_v8 = vld [vmem:[%s13677_s11 + $0x8] sm:$0xff] }
 0x2df   : > { %v6234_v53 = vsel %vm3189_vm8, %v6217_v21, %v6219_v50  ;;  %5994 = vmatpush1.msra.mxu1 %v5905_v9  ;;  %6057 = vmatprep.mubr.f32.mxu1 %v11022_v0  ;;  %v6236_v62 = vsel %vm3189_vm8, %v6221_v61, %v6223_v6  ;;  %v10283_v10 = vpack.c.bf16 %v6780_v42, %v6778_v8  ;;  %v6798_v50 = vld [vmem:[%s13677_s11 + $0xa8] sm:$0xff]  ;;  %v6800_v61 = vld [vmem:[%s13677_s11 + $0xb8] sm:$0xff]  ;;  %v6797_v9 = vld [vmem:[%s13677_s11 + $0xa0] sm:$0xff] }
 0x2e0   : > { %6254 = vmatpush1.msra.mxu0 %v6234_v53  ;;  %v10303_v16 = vpack.c.bf16 %v6800_v61, %v6798_v50  ;;  %v6799_v21 = vld [vmem:[%s13677_s11 + $0xb0] sm:$0xff]  ;;  %v6804_v53 = vld [vmem:[%s13677_s11 + $0xd8] sm:$0xff]  ;;  %v6814_v42 = vld [vmem:[%s13677_s11 + $0x128] sm:$0xff] }
 0x2e1   : > { %9941 = vmatmul.mubr.msk.f32.vlgmr.msra.gmra.mrb[4].mxu0 %vm584_vm1, %v9940_v22  ;;  %v6811_v8 = vld [vmem:[%s13677_s11 + $0x110] sm:$0xff]  ;;  %v10319_v40 = vpack.c.bf16 %v6816_v39, %v6814_v42 }
 0x2e2   : > { %v5900_v27 = vpop.permute.xlu1 %5899  ;;  %9937 = vmatmul.mubr.msk.f32.vlgmr.msra.gmra.mrb[8].mxu1 %vm584_vm1, %v11999_v7  ;;  %6459 = vmatprep.mubr.f32.mxu0 %v11022_v0  ;;  %v6227_v30 = vpop.permute.xlu0 %6226 }
 0x2e3   : > { %v5909_v46 = vsel %vm2857_vm7, %v5898_v12, %v5900_v27  ;;  %v5910_v26 = vsel %vm2857_vm7, %v5900_v27, %v5902_v17  ;;  %6199 = vmatprep.mubr.f32.mxu1 %v11022_v0  ;;  %v6787_v12 = vld [vmem:[%s13677_s11 + $0x50] sm:$0xff]  ;;  %v6796_v17 = vld [vmem:[%s13677_s11 + $0x98] sm:$0xff]  ;;  %v10305_v27 = vpack.c.bf16 %v6799_v21, %v6797_v9 }
 0x2e4   : > { %6135 = vmatprep.subr.mxu1 %v5910_v26  ;;  %v10293_v2 = vpack.c.bf16 %v6787_v12, %v6785_v29  ;;  %v10299_v41 = vpack.c.bf16 %v6796_v17, %v6794_v15  ;;  %v6803_v26 = vld [vmem:[%s13677_s11 + $0xd0] sm:$0xff]  ;;  %v6824_v29 = vld [vmem:[%s13677_s11 + $0x178] sm:$0xff]  ;;  %v6821_v12 = vld [vmem:[%s13677_s11 + $0x160] sm:$0xff] }
 0x2e5   : > { %6136 = vmatpush1.msra.mxu1 %v5909_v46  ;;  %v6801_v46 = vld [vmem:[%s13677_s11 + $0xc0] sm:$0xff]  ;;  %v6826_v17 = vld [vmem:[%s13677_s11 + $0x188] sm:$0xff]  ;;  %v6832_v9 = vld [vmem:[%s13677_s11 + $0x1b8] sm:$0xff] }
 0x2e6   : > { %9939 = vmatmul.mubr.msk.f32.vlgmr.msra.gmra.mrb[10].mxu1 %vm584_vm1, %v11999_v7  ;;  %v6231_v58 = vpop.permute.xlu0 %6230  ;;  %v6788_v7 = vld [vmem:[%s13677_s11 + $0x58] sm:$0xff] }
 0x2e7   : > { %v6225_v25 = vpop.permute.xlu1 %6224  ;;  %6388 = vmatprep.mubr.f32.mxu1 %v11022_v0  ;;  %v10291_v60 = vpack.c.bf16 %v6788_v7, %v6786_v51  ;;  %v6819_v7 = vld [vmem:[%s13677_s11 + $0x150] sm:$0xff] }
 0x2e8   : > { %v6237_v45 = vsel %vm3189_vm8, %v6223_v6, %v6225_v25  ;;  %v6238_v4 = vsel %vm3189_vm8, %v6225_v25, %v6227_v30  ;;  %v6806_v25 = vld [vmem:[%s13677_s11 + $0xe8] sm:$0xff] }
 0x2e9   : > { %6324 = vmatprep.subr.mxu1 %v6237_v45  ;;  %v6808_v45 = vld [vmem:[%s13677_s11 + $0xf8] sm:$0xff] }
 0x2ea   : > { %6325 = vmatpush1.msra.mxu1 %v6236_v62  ;;  %v10309_v62 = vpack.c.bf16 %v6803_v26, %v6801_v46  ;;  %v6836_v46 = vld [vmem:[%s13677_s11 + $0x1d8] sm:$0xff] }
 0x2eb   : > { %v6229_v1 = vpop.permute.xlu1 %6228  ;;  %9942 = vmatmul.mubr.msk.f32.vlgmr.msra.gmra.mrb[8].mxu1 %vm584_vm1, %v9940_v22 }
 0x2ec   : > { %v6239_v32 = vsel %vm3189_vm8, %v6227_v30, %v6229_v1  ;;  %6530 = vmatprep.mubr.f32.mxu1 %v11022_v0  ;;  %v6240_v5 = vsel %vm3189_vm8, %v6229_v1, %v6231_v58  ;;  %v10311_v30 = vpack.c.bf16 %v6808_v45, %v6806_v25  ;;  %v6805_v1 = vld [vmem:[%s13677_s11 + $0xe0] sm:$0xff] }
 0x2ed   : > { %6395 = vmatprep.subr.mxu0 %v6239_v32  ;;  %v6807_v32 = vld [vmem:[%s13677_s11 + $0xf0] sm:$0xff] }
 0x2ee   : > { %6396 = vmatpush1.msra.mxu0 %v6238_v4  ;;  %v6810_v4 = vld [vmem:[%s13677_s11 + $0x108] sm:$0xff] }
 0x2ef   : > { %v6233_v31 = vpop.permute.xlu1 %6232  ;;  %9943 = vmatmul.mubr.msk.f32.vlgmr.msra.gmra.mrb[6].mxu0 %vm584_vm1, %v9940_v22  ;;  %10284 = vmatprep.subr.bf16.mxu0 %v10283_v10 }
 0x2f0   : > { %v6241_v34 = vsel %vm3189_vm8, %v6231_v58, %v6233_v31  ;;  %10286 = vmatpush1.bf16.msra.mxu0 %v10285_v48  ;;  %v6812_v58 = vld [vmem:[%s13677_s11 + $0x118] sm:$0xff]  ;;  %v10313_v31 = vpack.c.bf16 %v6807_v32, %v6805_v1  ;;  %v10321_v48 = vpack.c.bf16 %v6815_v47, %v6813_v43 }
 0x2f1   : > { %6466 = vmatprep.subr.mxu1 %v6241_v34  ;;  %10288 = vmatprep.subr.bf16.mxu0 %v10287_v57  ;;  %v10315_v34 = vpack.c.bf16 %v6812_v58, %v6810_v4  ;;  %v6818_v57 = vld [vmem:[%s13677_s11 + $0x148] sm:$0xff] }
 0x2f2   : > { %6467 = vmatpush1.msra.mxu1 %v6240_v5  ;;  %v6809_v5 = vld [vmem:[%s13677_s11 + $0x100] sm:$0xff]  ;;  %v10323_v51 = vpack.c.bf16 %v6820_v38, %v6818_v57 }
 0x2f3   : > { %9944 = vmatmul.mubr.msk.f32.vlgmr.msra.gmra.mrb[10].mxu1 %vm584_vm1, %v9940_v22  ;;  %v6802_v22 = vld [vmem:[%s13677_s11 + $0xc8] sm:$0xff]  ;;  %v10317_v10 = vpack.c.bf16 %v6811_v8, %v6809_v5  ;;  %v6840_v5 = vld [vmem:[%s13677_s11 + $0x1f8] sm:$0xff] }
 0x2f4   : > { %7406 = vmatprep.mubr.f32.mxu1 %v11022_v0  ;;  %10290 = vmatpush1.bf16.msra.mxu0 %v10289_v55  ;;  %v10307_v6 = vpack.c.bf16 %v6804_v53, %v6802_v22  ;;  %v10325_v55 = vpack.c.bf16 %v6819_v7, %v6817_v24  ;;  %v6829_v53 = vld [vmem:[%s13677_s11 + $0x1a0] sm:$0xff]  ;;  %v6844_v7 = vld [vmem:[%s13677_s11 + $0x218] sm:$0xff] }
 0x2f5   : > { %10292 = vmatprep.subr.bf16.mxu0 %v10291_v60  ;;  %v6822_v60 = vld [vmem:[%s13677_s11 + $0x168] sm:$0xff] }
 0x2f6   : > { %v10327_v54 = vpack.c.bf16 %v6824_v29, %v6822_v60 }
 0x2f8   : > { %10294 = vmatpush1.bf16.msra.mxu0 %v10293_v2  ;;  %v10329_v2 = vpack.c.bf16 %v6823_v14, %v6821_v12 }
 0x2f9   : > { %10296 = vmatprep.subr.bf16.mxu0 %v10295_v11  ;;  %v12213_v11 = vpop.permute.xlu0 %6548 }
 0x2fc   : > { %10298 = vmatpush1.bf16.msra.mxu0 %v10297_v37  ;;  %v6828_v37 = vld [vmem:[%s13677_s11 + $0x198] sm:$0xff] }
 0x2fd   : > { %10300 = vmatprep.subr.bf16.mxu0 %v10299_v41  ;;  %v6825_v41 = vld [vmem:[%s13677_s11 + $0x180] sm:$0xff]  ;;  %v10331_v52 = vpack.c.bf16 %v6828_v37, %v6826_v17 }
 0x2fe   : > { %v10333_v61 = vpack.c.bf16 %v6827_v59, %v6825_v41 }
 0x300   : > { %10302 = vmatpush1.bf16.msra.mxu0 %v10301_v20 }
 0x301   : > { %10304 = vmatprep.subr.bf16.mxu0 %v10303_v16  ;;  %v6830_v16 = vld [vmem:[%s13677_s11 + $0x1a8] sm:$0xff] }
 0x302   : > { %v10335_v22 = vpack.c.bf16 %v6832_v9, %v6830_v16 }
 0x304   : > { %10306 = vmatpush1.bf16.msra.mxu0 %v10305_v27 }
 0x305   : > { %10308 = vmatprep.subr.bf16.mxu0 %v10307_v6  ;;  %v6834_v6 = vld [vmem:[%s13677_s11 + $0x1c8] sm:$0xff] }
 0x306   : > { %v10339_v45 = vpack.c.bf16 %v6836_v46, %v6834_v6 }
 0x308   : > { %10310 = vmatpush1.bf16.msra.mxu0 %v10309_v62  ;;  %v6833_v62 = vld [vmem:[%s13677_s11 + $0x1c0] sm:$0xff] }
 0x309   : > { %10312 = vmatprep.subr.bf16.mxu0 %v10311_v30  ;;  %v6835_v30 = vld [vmem:[%s13677_s11 + $0x1d0] sm:$0xff] }
 0x30a   : > { %v10341_v4 = vpack.c.bf16 %v6835_v30, %v6833_v62  ;;  %v6843_v62 = vld [vmem:[%s13677_s11 + $0x210] sm:$0xff] }
 0x30c   : > { %10314 = vmatpush1.bf16.msra.mxu0 %v10313_v31 }
 0x30d   : > { %10316 = vmatprep.subr.bf16.mxu0 %v10315_v34  ;;  %v6838_v34 = vld [vmem:[%s13677_s11 + $0x1e8] sm:$0xff] }
 0x30e   : > { %v10343_v39 = vpack.c.bf16 %v6840_v5, %v6838_v34 }
 0x310   : > { %10318 = vmatpush1.bf16.msra.mxu0 %v10317_v10  ;;  %v6837_v10 = vld [vmem:[%s13677_s11 + $0x1e0] sm:$0xff] }
 0x311   : > { %10320 = vmatprep.subr.bf16.mxu0 %v10319_v40  ;;  %v6839_v40 = vld [vmem:[%s13677_s11 + $0x1f0] sm:$0xff] }
 0x314   : > { %10322 = vmatpush1.bf16.msra.mxu0 %v10321_v48 }
 0x315   : > { %10324 = vmatprep.subr.bf16.mxu0 %v10323_v51 }
 0x318   : > { %10326 = vmatpush1.bf16.msra.mxu0 %v10325_v55 }
 0x319   : > { %10328 = vmatprep.subr.bf16.mxu0 %v10327_v54 }
 0x31c   : > { %10330 = vmatpush1.bf16.msra.mxu0 %v10329_v2 }
 0x31d   : > { %10332 = vmatprep.subr.bf16.mxu0 %v10331_v52 }
 0x320   : > { %10334 = vmatpush1.bf16.msra.mxu0 %v10333_v61 }
 0x321   : > { %10336 = vmatprep.subr.bf16.mxu0 %v10335_v22 }
 0x3b4   : > { %v6319_v33 = vpop.f32.mrb[4].mxu0 }
 0x3b5   : > { %v6551_v35 = vadd.f32 %v12213_v11, %v6319_v33  ;;  %v6321_v15 = vpop.f32.mrb[5].mxu0 }
 0x3b6   : > { %v6552_v21 = vadd.f32 %v12213_v11, %v6321_v15 }
 0x3b7   : > { %v6559_v50 = vmax.f32 %v6551_v35, 0.0 }
 0x3b8   : > { %v6560_v26 = vmax.f32 %v6552_v21, 0.0 }
 0x3b9   : > { %v12229_v20 = vmul.f32 %v6559_v50, %v11533_v44  ;;  %v6831_v44 = vld [vmem:[%s13677_s11 + $0x1b0] sm:$0xff] }
 0x3ba   : > { %v10337_v27 = vpack.c.bf16 %v6831_v44, %v6829_v53  ;;  %v12269_v8 = vmul.f32 %v6560_v26, %v11548_v56  ;;  %v10345_v56 = vpack.c.bf16 %v6839_v40, %v6837_v10 }
 0x3bb   : > { %6651 = vrot.lane.b32.xlu0 %v12229_v20, %s13713_s30 }
 0x3bc   : > { %10338 = vmatpush1.bf16.msra.mxu0 %v10337_v27 }
 0x3bd   : > { %10340 = vmatprep.subr.bf16.mxu0 %v10339_v45  ;;  %v6841_v45 = vld [vmem:[%s13677_s11 + $0x200] sm:$0xff] }
 0x3be   : > { %v6390_v25 = vpop.f32.mrb[8].mxu1  ;;  %v10349_v5 = vpack.c.bf16 %v6843_v62, %v6841_v45 }
 0x3bf   : > { %v6553_v1 = vadd.f32 %v12213_v11, %v6390_v25  ;;  %v6392_v32 = vpop.f32.mrb[9].mxu1  ;;  %6693 = vrot.lane.b32.xlu0 %v12229_v20, %s13715_s17 }
 0x3c0   : > { %v6554_v58 = vadd.f32 %v12213_v11, %v6392_v32  ;;  %10342 = vmatpush1.bf16.msra.mxu0 %v10341_v4  ;;  %v6846_v32 = vld [vmem:[%s13677_s11 + $0x228] sm:$0xff] }
 0x3c1   : > { %v6561_v31 = vmax.f32 %v6553_v1, 0.0  ;;  %10344 = vmatprep.subr.bf16.mxu0 %v10343_v39 }
 0x3c2   : > { %v6461_v42 = vpop.f32.mrb[6].mxu0  ;;  %v6562_v47 = vmax.f32 %v6554_v58, 0.0 }
 0x3c3   : > { %v12278_v43 = vmul.f32 %v6561_v31, %v11600_v18  ;;  %v6555_v48 = vadd.f32 %v12213_v11, %v6461_v42  ;;  %v6463_v57 = vpop.f32.mrb[7].mxu0  ;;  %6735 = vrot.lane.b32.xlu0 %v12229_v20, %s13716_s16  ;;  %v6842_v18 = vld [vmem:[%s13677_s11 + $0x208] sm:$0xff] }
 0x3c4   : > { %v6556_v38 = vadd.f32 %v12213_v11, %v6463_v57  ;;  %10346 = vmatpush1.bf16.msra.mxu0 %v10345_v56  ;;  %v10347_v60 = vpack.c.bf16 %v6844_v7, %v6842_v18  ;;  %v12293_v29 = vmul.f32 %v6562_v47, %v11616_v23  ;;  %v6847_v57 = vld [vmem:[%s13677_s11 + $0x230] sm:$0xff]  ;;  %v6850_v18 = vld [vmem:[%s13677_s11 + $0x248] sm:$0xff]  ;;  %v6852_v7 = vld [vmem:[%s13677_s11 + $0x258] sm:$0xff] }
 0x3c5   : > { %v6563_v24 = vmax.f32 %v6555_v48, 0.0  ;;  %v10882_v51 = vpack.i.bf16 %v12278_v43, %v12269_v8  ;;  %v6845_v48 = vld [vmem:[%s13677_s11 + $0x220] sm:$0xff] }
 0x3c6   : > { %v6532_v55 = vpop.f32.mrb[10].mxu1  ;;  %v6564_v54 = vmax.f32 %v6556_v38, 0.0  ;;  %10348 = vmatprep.subr.bf16.mxu0 %v10347_v60 }
 0x3c7   : > { %v12296_v12 = vmul.f32 %v6563_v24, %v11568_v63  ;;  %v6557_v14 = vadd.f32 %v12213_v11, %v6532_v55  ;;  %v6534_v2 = vpop.f32.mrb[11].mxu1  ;;  %10883 = vrot.lane.b32.xlu1 %v10882_v51, %s13713_s30 }
 0x3c8   : > { %v6558_v35 = vadd.f32 %v12213_v11, %v6534_v2  ;;  %v12304_v17 = vmul.f32 %v6564_v54, %v11584_v13 }
 0x3c9   : > { %v6565_v33 = vmax.f32 %v6557_v14, 0.0  ;;  %v10902_v15 = vpack.i.bf16 %v12296_v12, %v12293_v29  ;;  %v10353_v14 = vpack.c.bf16 %v6847_v57, %v6845_v48  ;;  %v6862_v48 = vld [vmem:[%s13677_s11 + $0x2a8] sm:$0xff]  ;;  %v6864_v57 = vld [vmem:[%s13677_s11 + $0x2b8] sm:$0xff] }
 0x3ca   : > { %v6566_v63 = vmax.f32 %v6558_v35, 0.0 }
 0x3cb   : > { %v12307_v23 = vmul.f32 %v6565_v33, %v11632_v28  ;;  %10888 = vrot.lane.b32.xlu1 %v10882_v51, %s13715_s17  ;;  %10903 = vrot.lane.b32.xlu0 %v10902_v15, %s13715_s17 }
 0x3cc   : > { %v12316_v11 = vmul.f32 %v6566_v63, %v11648_v3  ;;  %v10355_v63 = vpack.c.bf16 %v6852_v7, %v6850_v18 }
 0x3cd   : > { %v10912_v37 = vpack.i.bf16 %v12307_v23, %v12304_v17 }
 0x3ce   : > { %v10932_v13 = vpack.i.bf16 %v11022_v0, %v12316_v11 }
 0x3cf   : > { %10893 = vrot.lane.b32.xlu1 %v10882_v51, %s13716_s16  ;;  %10913 = vrot.lane.b32.xlu0 %v10912_v37, %s13713_s30 }
 0x3d3   : > { %10898 = vrot.lane.b32.xlu1 %v10902_v15, %s13713_s30  ;;  %10923 = vrot.lane.b32.xlu0 %v10912_v37, %s13716_s16 }
 0x3d7   : > { %10908 = vrot.lane.b32.xlu1 %v10902_v15, %s13716_s16  ;;  %10933 = vrot.lane.b32.xlu0 %v10932_v13, %s13715_s17 }
 0x3db   : > { %10918 = vrot.lane.b32.xlu1 %v10912_v37, %s13715_s17 }
 0x3df   : > { %10928 = vrot.lane.b32.xlu1 %v10932_v13, %s13713_s30 }
 0x3e3   : > { %10938 = vrot.lane.b32.xlu1 %v10932_v13, %s13716_s16 }
 0x42d   : > { %v6652_v28 = vpop.permute.xlu0 %6651 }
 0x431   : > { %v6694_v3 = vpop.permute.xlu0 %6693 }
 0x435   : > { %v6736_v41 = vpop.permute.xlu0 %6735 }
 0x439   : > { %v10884_v52 = vpop.permute.xlu1 %10883 }
 0x43a   : > { %v10886_v59 = vunpack.i.h.bf16 %v10884_v52  ;;  %v10885_v50 = vunpack.i.l.bf16 %v10884_v52  ;;  %v6851_v52 = vld [vmem:[%s13677_s11 + $0x250] sm:$0xff] }
 0x43c   : > { %v6669_v9 = vsel %vm2193_vm5, %v6652_v28, %v10885_v50  ;;  %v6670_v21 = vsel %vm2193_vm5, %v10885_v50, %v10886_v59 }
 0x43d   : > { %v10889_v61 = vpop.permute.xlu1 %10888  ;;  %v12327_v16 = vpop.permute.xlu0 %10903  ;;  %v6685_v6 = vmax.f32 %v12229_v20, %v6669_v9  ;;  %v6686_v46 = vmax.f32 %v12269_v8, %v6670_v21  ;;  %v6848_v20 = vld [vmem:[%s13677_s11 + $0x238] sm:$0xff] }
 0x43e   : > { %v10891_v22 = vunpack.i.h.bf16 %v10889_v61  ;;  %v10890_v53 = vunpack.i.l.bf16 %v10889_v61  ;;  %v10905_v8 = vunpack.i.l.bf16 %v12327_v16  ;;  %v10351_v47 = vpack.c.bf16 %v6848_v20, %v6846_v32  ;;  %v6854_v61 = vld [vmem:[%s13677_s11 + $0x268] sm:$0xff] }
 0x43f   : > { %v10906_v56 = vunpack.i.h.bf16 %v12327_v16  ;;  %v6856_v16 = vld [vmem:[%s13677_s11 + $0x278] sm:$0xff]  ;;  %v6858_v20 = vld [vmem:[%s13677_s11 + $0x288] sm:$0xff] }
 0x440   : > { %v6711_v44 = vsel %vm2857_vm7, %v6694_v3, %v10890_v53  ;;  %v6712_v27 = vsel %vm2857_vm7, %v10890_v53, %v10891_v22  ;;  %v6713_v2 = vsel %vm2857_vm7, %v10891_v22, %v10905_v8  ;;  %v10359_v62 = vpack.c.bf16 %v6856_v16, %v6854_v61 }
 0x441   : > { %v10894_v26 = vpop.permute.xlu1 %10893  ;;  %v12335_v25 = vpop.permute.xlu0 %10913  ;;  %v6727_v4 = vmax.f32 %v6685_v6, %v6711_v44  ;;  %v6728_v58 = vmax.f32 %v6686_v46, %v6712_v27  ;;  %v6714_v37 = vsel %vm2857_vm7, %v10905_v8, %v10906_v56 }
 0x442   : > { %v10896_v30 = vunpack.i.h.bf16 %v10894_v26  ;;  %v10895_v1 = vunpack.i.l.bf16 %v10894_v26  ;;  %v10915_v38 = vunpack.i.l.bf16 %v12335_v25  ;;  %v10916_v8 = vunpack.i.h.bf16 %v12335_v25  ;;  %v6908_v25 = vld [vmem:[%s13677_s11 + $0x418] sm:$0xff] }
 0x444   : > { %v6753_v31 = vsel %vm3189_vm8, %v6736_v41, %v10895_v1  ;;  %v6754_v34 = vsel %vm3189_vm8, %v10895_v1, %v10896_v30  ;;  %v6849_v41 = vld [vmem:[%s13677_s11 + $0x240] sm:$0xff]  ;;  %v6855_v1 = vld [vmem:[%s13677_s11 + $0x270] sm:$0xff] }
 0x445   : > { %v6769_v42 = vmax.f32 %v6727_v4, %v6753_v31  ;;  %v10899_v39 = vpop.permute.xlu1 %10898  ;;  %v12352_v10 = vpop.permute.xlu0 %10923  ;;  %v6770_v40 = vmax.f32 %v6728_v58, %v6754_v34  ;;  %v10357_v6 = vpack.c.bf16 %v6851_v52, %v6849_v41  ;;  %v6860_v4 = vld [vmem:[%s13677_s11 + $0x298] sm:$0xff]  ;;  %v6867_v41 = vld [vmem:[%s13677_s11 + $0x2d0] sm:$0xff]  ;;  %v6870_v52 = vld [vmem:[%s13677_s11 + $0x2e8] sm:$0xff] }
 0x446   : > { %v10901_v24 = vunpack.i.h.bf16 %v10899_v39  ;;  %v10900_v51 = vunpack.i.l.bf16 %v10899_v39  ;;  %v10925_v13 = vunpack.i.l.bf16 %v12352_v10  ;;  %v10363_v39 = vpack.c.bf16 %v6860_v4, %v6858_v20  ;;  %v6875_v20 = vld [vmem:[%s13677_s11 + $0x310] sm:$0xff]  ;;  %v6878_v4 = vld [vmem:[%s13677_s11 + $0x328] sm:$0xff] }
 0x447   : > { %7097 = vmatprep.mubr.f32.mxu0 %v6770_v40  ;;  %v6857_v40 = vld [vmem:[%s13677_s11 + $0x280] sm:$0xff] }
 0x448   : > { %v6671_v55 = vsel %vm2193_vm5, %v10886_v59, %v10900_v51  ;;  %v6672_v60 = vsel %vm2193_vm5, %v10900_v51, %v10901_v24  ;;  %v6673_v54 = vsel %vm2193_vm5, %v10901_v24, %v10915_v38  ;;  %7098 = vmatmul.mubr.f32.vlgmr.msra.gmra.mrb[8].mxu0 %v6769_v42 }
 0x449   : > { %v6687_v33 = vmax.f32 %v12278_v43, %v6671_v55  ;;  %v6688_v35 = vmax.f32 %v12293_v29, %v6672_v60  ;;  %10350 = vmatpush1.bf16.msra.mxu0 %v10349_v5  ;;  %v10909_v15 = vpop.permute.xlu1 %10908  ;;  %v12386_v29 = vpop.permute.xlu0 %10933  ;;  %v6689_v32 = vmax.f32 %v12296_v12, %v6673_v54  ;;  %v10926_v55 = vunpack.i.h.bf16 %v12352_v10  ;;  %v6916_v10 = vld [vmem:[%s13677_s11 + $0x458] sm:$0xff] }
 0x44a   : > { %v10911_v28 = vunpack.i.h.bf16 %v10909_v15  ;;  %v10910_v3 = vunpack.i.l.bf16 %v10909_v15  ;;  %10352 = vmatprep.subr.bf16.mxu0 %v10351_v47  ;;  %v10935_v46 = vunpack.i.l.bf16 %v12386_v29  ;;  %v6859_v47 = vld [vmem:[%s13677_s11 + $0x290] sm:$0xff]  ;;  %v10367_v54 = vpack.c.bf16 %v6864_v57, %v6862_v48  ;;  %v6884_v48 = vld [vmem:[%s13677_s11 + $0x358] sm:$0xff] }
 0x44b   : > { %v12384_v59 = vmax.f32 %v6687_v33, %v6713_v2  ;;  %v6730_v50 = vmax.f32 %v6688_v35, %v6714_v37  ;;  %v10365_v7 = vpack.c.bf16 %v6859_v47, %v6857_v40  ;;  %v6863_v2 = vld [vmem:[%s13677_s11 + $0x2b0] sm:$0xff]  ;;  %v6868_v35 = vld [vmem:[%s13677_s11 + $0x2d8] sm:$0xff]  ;;  %v6882_v47 = vld [vmem:[%s13677_s11 + $0x348] sm:$0xff] }
 0x44c   : > { %v12395_v9 = vsel %vm3189_vm8, %v10896_v30, %v10910_v3  ;;  %v12400_v21 = vsel %vm3189_vm8, %v10911_v28, %v10925_v13  ;;  %v6756_v22 = vsel %vm3189_vm8, %v10910_v3, %v10911_v28  ;;  %v6853_v30 = vld [vmem:[%s13677_s11 + $0x260] sm:$0xff]  ;;  %v6879_v40 = vld [vmem:[%s13677_s11 + $0x330] sm:$0xff] }
 0x44d   : > { %v6771_v53 = vmax.f32 %v12384_v59, %v12395_v9  ;;  %10354 = vmatpush1.bf16.msra.mxu0 %v10353_v14  ;;  %v12405_v44 = vpop.permute.xlu1 %10918  ;;  %v6772_v27 = vmax.f32 %v6730_v50, %v6756_v22  ;;  %v10361_v5 = vpack.c.bf16 %v6855_v1, %v6853_v30  ;;  %v6861_v14 = vld [vmem:[%s13677_s11 + $0x2a0] sm:$0xff]  ;;  %v6872_v50 = vld [vmem:[%s13677_s11 + $0x2f8] sm:$0xff] }
 0x44e   : > { %v10921_v26 = vunpack.i.h.bf16 %v12405_v44  ;;  %v10920_v45 = vunpack.i.l.bf16 %v12405_v44  ;;  %10356 = vmatprep.subr.bf16.mxu0 %v10355_v63  ;;  %v10369_v37 = vpack.c.bf16 %v6863_v2, %v6861_v14  ;;  %v6865_v3 = vld [vmem:[%s13677_s11 + $0x2c0] sm:$0xff]  ;;  %v10375_v16 = vpack.c.bf16 %v6872_v50, %v6870_v52  ;;  %v6888_v14 = vld [vmem:[%s13677_s11 + $0x378] sm:$0xff]  ;;  %v6910_v44 = vld [vmem:[%s13677_s11 + $0x428] sm:$0xff] }
 0x44f   : > { %7168 = vmatprep.mubr.f32.mxu0 %v6772_v27  ;;  %v10373_v61 = vpack.c.bf16 %v6867_v41, %v6865_v3  ;;  %v6869_v22 = vld [vmem:[%s13677_s11 + $0x2e0] sm:$0xff]  ;;  %v6871_v27 = vld [vmem:[%s13677_s11 + $0x2f0] sm:$0xff]  ;;  %v6892_v3 = vld [vmem:[%s13677_s11 + $0x398] sm:$0xff] }
 0x450   : > { %v6715_v58 = vsel %vm2857_vm7, %v10906_v56, %v10920_v45  ;;  %v6717_v31 = vsel %vm2857_vm7, %v10921_v26, %v10935_v46  ;;  %v10377_v30 = vpack.c.bf16 %v6871_v27, %v6869_v22  ;;  %v6889_v50 = vld [vmem:[%s13677_s11 + $0x380] sm:$0xff]  ;;  %v6896_v22 = vld [vmem:[%s13677_s11 + $0x3b8] sm:$0xff] }
 0x451   : > { %v12431_v12 = vmax.f32 %v6689_v32, %v6715_v58  ;;  %10358 = vmatpush1.bf16.msra.mxu0 %v10357_v6  ;;  %v12433_v34 = vpop.permute.xlu1 %10928  ;;  %v6874_v6 = vld [vmem:[%s13677_s11 + $0x308] sm:$0xff]  ;;  %v6873_v32 = vld [vmem:[%s13677_s11 + $0x300] sm:$0xff]  ;;  %v6880_v58 = vld [vmem:[%s13677_s11 + $0x338] sm:$0xff] }
 0x452   : > { %v10930_v42 = vunpack.i.l.bf16 %v12433_v34  ;;  %10360 = vmatprep.subr.bf16.mxu0 %v10359_v62  ;;  %v6876_v62 = vld [vmem:[%s13677_s11 + $0x318] sm:$0xff] }
 0x453   : > { %v6773_v56 = vmax.f32 %v12431_v12, %v12400_v21  ;;  %v10379_v1 = vpack.c.bf16 %v6876_v62, %v6874_v6  ;;  %v6893_v62 = vld [vmem:[%s13677_s11 + $0x3a0] sm:$0xff]  ;;  %v6920_v59 = vld [vmem:[%s13677_s11 + $0x478] sm:$0xff] }
 0x454   : > { %v6675_v24 = vsel %vm2193_vm5, %v10916_v8, %v10930_v42  ;;  %v6984_v21 = vld [vmem:[%s13677_s11 + $0x678] sm:$0xff] }
 0x455   : > { %v6691_v51 = vmax.f32 %v12307_v23, %v6675_v24  ;;  %10362 = vmatpush1.bf16.msra.mxu0 %v10361_v5  ;;  %v12457_v18 = vpop.permute.xlu1 %10938  ;;  %v6866_v23 = vld [vmem:[%s13677_s11 + $0x2c8] sm:$0xff]  ;;  %v10383_v5 = vpack.c.bf16 %v6880_v58, %v6878_v4  ;;  %v10387_v24 = vpack.c.bf16 %v6884_v48, %v6882_v47  ;;  %v6897_v58 = vld [vmem:[%s13677_s11 + $0x3c0] sm:$0xff]  ;;  %v6674_v47 = vsel %vm2193_vm5, %v10915_v38, %v10916_v8 }
 0x456   : > { %v10940_v60 = vunpack.i.l.bf16 %v12457_v18  ;;  %10364 = vmatprep.subr.bf16.mxu0 %v10363_v39  ;;  %v10371_v28 = vpack.c.bf16 %v6868_v35, %v6866_v23  ;;  %v6877_v39 = vld [vmem:[%s13677_s11 + $0x320] sm:$0xff]  ;;  %v6716_v38 = vsel %vm2857_vm7, %v10920_v45, %v10921_v26  ;;  %v6690_v8 = vmax.f32 %v12304_v17, %v6674_v47  ;;  %v6912_v17 = vld [vmem:[%s13677_s11 + $0x438] sm:$0xff] }
 0x457   : > { %v12467_v33 = vmax.f32 %v6691_v51, %v6717_v31  ;;  %v10381_v31 = vpack.c.bf16 %v6875_v20, %v6873_v32  ;;  %v10385_v57 = vpack.c.bf16 %v6879_v40, %v6877_v39  ;;  %v6881_v51 = vld [vmem:[%s13677_s11 + $0x340] sm:$0xff]  ;;  %v6900_v32 = vld [vmem:[%s13677_s11 + $0x3d8] sm:$0xff]  ;;  %v6758_v45 = vsel %vm3189_vm8, %v10925_v13, %v10926_v55 }
 0x458   : > { %v12480_v15 = vsel %vm3189_vm8, %v10926_v55, %v10940_v60  ;;  %v6885_v35 = vld [vmem:[%s13677_s11 + $0x360] sm:$0xff]  ;;  %v6904_v39 = vld [vmem:[%s13677_s11 + $0x3f8] sm:$0xff] }
 0x459   : > { %v6775_v63 = vmax.f32 %v12467_v33, %v12480_v15  ;;  %10366 = vmatpush1.bf16.msra.mxu0 %v10365_v7  ;;  %v6883_v7 = vld [vmem:[%s13677_s11 + $0x350] sm:$0xff]  ;;  %v6932_v47 = vld [vmem:[%s13677_s11 + $0x4d8] sm:$0xff]  ;;  %v8114_v33 = vld [vmem:[%s13672_s6] sm:$0xff] }
 0x45a   : > { %10368 = vmatprep.subr.bf16.mxu0 %v10367_v54  ;;  %v6886_v54 = vld [vmem:[%s13677_s11 + $0x368] sm:$0xff]  ;;  %v10389_v2 = vpack.c.bf16 %v6883_v7, %v6881_v51 }
 0x45b   : > { %v10391_v23 = vpack.c.bf16 %v6888_v14, %v6886_v54  ;;  %v6906_v51 = vld [vmem:[%s13677_s11 + $0x408] sm:$0xff]  ;;  %v6905_v14 = vld [vmem:[%s13677_s11 + $0x400] sm:$0xff] }
 0x45c   : > { %v10411_v54 = vpack.c.bf16 %v6908_v25, %v6906_v51  ;;  %v6931_v51 = vld [vmem:[%s13677_s11 + $0x4d0] sm:$0xff]  ;;  %v6934_v25 = vld [vmem:[%s13677_s11 + $0x4e8] sm:$0xff] }
 0x45d   : > { %10370 = vmatpush1.bf16.msra.mxu0 %v10369_v37  ;;  %v6887_v37 = vld [vmem:[%s13677_s11 + $0x370] sm:$0xff] }
 0x45e   : > { %10372 = vmatprep.subr.bf16.mxu0 %v10371_v28  ;;  %v6890_v28 = vld [vmem:[%s13677_s11 + $0x388] sm:$0xff]  ;;  %v10393_v41 = vpack.c.bf16 %v6887_v37, %v6885_v35  ;;  %v10415_v35 = vpack.c.bf16 %v6912_v17, %v6910_v44  ;;  %v6909_v37 = vld [vmem:[%s13677_s11 + $0x420] sm:$0xff] }
 0x45f   : > { %v10395_v52 = vpack.c.bf16 %v6892_v3, %v6890_v28  ;;  %v6911_v28 = vld [vmem:[%s13677_s11 + $0x430] sm:$0xff] }
 0x460   : > { %v10417_v13 = vpack.c.bf16 %v6911_v28, %v6909_v37  ;;  %v6944_v37 = vld [vmem:[%s13677_s11 + $0x538] sm:$0xff] }
 0x461   : > { %10374 = vmatpush1.bf16.msra.mxu0 %v10373_v61  ;;  %v6891_v61 = vld [vmem:[%s13677_s11 + $0x390] sm:$0xff] }
 0x462   : > { %10376 = vmatprep.subr.bf16.mxu0 %v10375_v16  ;;  %v6894_v16 = vld [vmem:[%s13677_s11 + $0x3a8] sm:$0xff]  ;;  %v10397_v27 = vpack.c.bf16 %v6891_v61, %v6889_v50  ;;  %v6915_v50 = vld [vmem:[%s13677_s11 + $0x450] sm:$0xff] }
 0x463   : > { %v10399_v6 = vpack.c.bf16 %v6896_v22, %v6894_v16  ;;  %v6918_v61 = vld [vmem:[%s13677_s11 + $0x468] sm:$0xff]  ;;  %v6917_v16 = vld [vmem:[%s13677_s11 + $0x460] sm:$0xff]  ;;  %v6919_v22 = vld [vmem:[%s13677_s11 + $0x470] sm:$0xff] }
 0x465   : > { %10378 = vmatpush1.bf16.msra.mxu0 %v10377_v30  ;;  %v6895_v30 = vld [vmem:[%s13677_s11 + $0x3b0] sm:$0xff] }
 0x466   : > { %10380 = vmatprep.subr.bf16.mxu0 %v10379_v1  ;;  %v6898_v1 = vld [vmem:[%s13677_s11 + $0x3c8] sm:$0xff]  ;;  %v10401_v20 = vpack.c.bf16 %v6895_v30, %v6893_v62  ;;  %v10425_v62 = vpack.c.bf16 %v6919_v22, %v6917_v16 }
 0x467   : > { %v10403_v4 = vpack.c.bf16 %v6900_v32, %v6898_v1  ;;  %v6921_v1 = vld [vmem:[%s13677_s11 + $0x480] sm:$0xff]  ;;  %v6923_v32 = vld [vmem:[%s13677_s11 + $0x490] sm:$0xff] }
 0x469   : > { %10382 = vmatpush1.bf16.msra.mxu0 %v10381_v31  ;;  %v6899_v31 = vld [vmem:[%s13677_s11 + $0x3d0] sm:$0xff] }
 0x46a   : > { %10384 = vmatprep.subr.bf16.mxu0 %v10383_v5  ;;  %v6902_v5 = vld [vmem:[%s13677_s11 + $0x3e8] sm:$0xff]  ;;  %v10405_v40 = vpack.c.bf16 %v6899_v31, %v6897_v58  ;;  %v10429_v58 = vpack.c.bf16 %v6923_v32, %v6921_v1 }
 0x46b   : > { %v10407_v48 = vpack.c.bf16 %v6904_v39, %v6902_v5  ;;  %v6925_v5 = vld [vmem:[%s13677_s11 + $0x4a0] sm:$0xff]  ;;  %v6927_v39 = vld [vmem:[%s13677_s11 + $0x4b0] sm:$0xff] }
 0x46d   : > { %10386 = vmatpush1.bf16.msra.mxu0 %v10385_v57  ;;  %v6901_v57 = vld [vmem:[%s13677_s11 + $0x3e0] sm:$0xff] }
 0x46e   : > { %10388 = vmatprep.subr.bf16.mxu0 %v10387_v24  ;;  %v6903_v24 = vld [vmem:[%s13677_s11 + $0x3f0] sm:$0xff] }
 0x46f   : > { %v10409_v7 = vpack.c.bf16 %v6903_v24, %v6901_v57  ;;  %v6929_v24 = vld [vmem:[%s13677_s11 + $0x4c0] sm:$0xff] }
 0x471   : > { %10390 = vmatpush1.bf16.msra.mxu0 %v10389_v2  ;;  %v6907_v2 = vld [vmem:[%s13677_s11 + $0x410] sm:$0xff] }
 0x472   : > { %10392 = vmatprep.subr.bf16.mxu0 %v10391_v23  ;;  %v6732_v23 = vmax.f32 %v6690_v8, %v6716_v38  ;;  %v10413_v26 = vpack.c.bf16 %v6907_v2, %v6905_v14  ;;  %v6936_v38 = vld [vmem:[%s13677_s11 + $0x4f8] sm:$0xff]  ;;  %v10437_v8 = vpack.c.bf16 %v6931_v51, %v6929_v24  ;;  %v6935_v14 = vld [vmem:[%s13677_s11 + $0x4f0] sm:$0xff]  ;;  %v6938_v2 = vld [vmem:[%s13677_s11 + $0x508] sm:$0xff]  ;;  %v10931_v24 = vunpack.i.h.bf16 %v12433_v34 }
 0x473   : > { %v6970_v34 = vld [vmem:[%s13677_s11 + $0x608] sm:$0xff] }
 0x474   : > { %v6774_v3 = vmax.f32 %v6732_v23, %v6758_v45  ;;  %v6940_v23 = vld [vmem:[%s13677_s11 + $0x518] sm:$0xff]  ;;  %v6939_v45 = vld [vmem:[%s13677_s11 + $0x510] sm:$0xff] }
 0x475   : > { %10394 = vmatpush1.bf16.msra.mxu0 %v10393_v41  ;;  %v6914_v41 = vld [vmem:[%s13677_s11 + $0x448] sm:$0xff]  ;;  %v10443_v17 = vpack.c.bf16 %v6940_v23, %v6938_v2  ;;  %v10936_v23 = vunpack.i.h.bf16 %v12386_v29  ;;  %v6976_v29 = vld [vmem:[%s13677_s11 + $0x638] sm:$0xff] }
 0x476   : > { %10396 = vmatprep.subr.bf16.mxu0 %v10395_v52  ;;  %v10419_v55 = vpack.c.bf16 %v6916_v10, %v6914_v41  ;;  %v6913_v52 = vld [vmem:[%s13677_s11 + $0x440] sm:$0xff]  ;;  %v6943_v10 = vld [vmem:[%s13677_s11 + $0x530] sm:$0xff] }
 0x477   : > { %v10421_v9 = vpack.c.bf16 %v6915_v50, %v6913_v52  ;;  %v6941_v41 = vld [vmem:[%s13677_s11 + $0x520] sm:$0xff] }
 0x478   : > { %v10449_v52 = vpack.c.bf16 %v6943_v10, %v6941_v41  ;;  %v6971_v41 = vld [vmem:[%s13677_s11 + $0x610] sm:$0xff] }
 0x479   : > { %10398 = vmatpush1.bf16.msra.mxu0 %v10397_v27  ;;  %v6922_v27 = vld [vmem:[%s13677_s11 + $0x488] sm:$0xff] }
 0x47a   : > { %10400 = vmatprep.subr.bf16.mxu0 %v10399_v6  ;;  %v6924_v6 = vld [vmem:[%s13677_s11 + $0x498] sm:$0xff] }
 0x47b   : > { %v10427_v30 = vpack.c.bf16 %v6924_v6, %v6922_v27  ;;  %v6949_v27 = vld [vmem:[%s13677_s11 + $0x560] sm:$0xff]  ;;  %v6951_v6 = vld [vmem:[%s13677_s11 + $0x570] sm:$0xff] }
 0x47c   : > { %v10457_v1 = vpack.c.bf16 %v6951_v6, %v6949_v27  ;;  %v6982_v27 = vld [vmem:[%s13677_s11 + $0x668] sm:$0xff]  ;;  %v6981_v6 = vld [vmem:[%s13677_s11 + $0x660] sm:$0xff] }
 0x47d   : > { %10402 = vmatpush1.bf16.msra.mxu0 %v10401_v20  ;;  %v6926_v20 = vld [vmem:[%s13677_s11 + $0x4a8] sm:$0xff] }
 0x47e   : > { %10404 = vmatprep.subr.bf16.mxu0 %v10403_v4  ;;  %v6928_v4 = vld [vmem:[%s13677_s11 + $0x4b8] sm:$0xff] }
 0x47f   : > { %v10431_v31 = vpack.c.bf16 %v6928_v4, %v6926_v20  ;;  %v6953_v20 = vld [vmem:[%s13677_s11 + $0x580] sm:$0xff]  ;;  %v6955_v4 = vld [vmem:[%s13677_s11 + $0x590] sm:$0xff] }
 0x481   : > { %10406 = vmatpush1.bf16.msra.mxu0 %v10405_v40  ;;  %v6930_v40 = vld [vmem:[%s13677_s11 + $0x4c8] sm:$0xff] }
 0x482   : > { %10408 = vmatprep.subr.bf16.mxu0 %v10407_v48  ;;  %v10433_v48 = vpack.c.bf16 %v6927_v39, %v6925_v5  ;;  %v10435_v57 = vpack.c.bf16 %v6932_v47, %v6930_v40  ;;  %v10461_v5 = vpack.c.bf16 %v6955_v4, %v6953_v20  ;;  %v6957_v40 = vld [vmem:[%s13677_s11 + $0x5a0] sm:$0xff]  ;;  %v6959_v47 = vld [vmem:[%s13677_s11 + $0x5b0] sm:$0xff] }
 0x483   : > { %v10465_v51 = vpack.c.bf16 %v6959_v47, %v6957_v40  ;;  %v6985_v4 = vld [vmem:[%s13677_s11 + $0x680] sm:$0xff] }
 0x484   : > { %v6989_v47 = vld [vmem:[%s13677_s11 + $0x6a0] sm:$0xff] }
 0x485   : > { %10410 = vmatpush1.bf16.msra.mxu0 %v10409_v7  ;;  %v10439_v7 = vpack.c.bf16 %v6936_v38, %v6934_v25  ;;  %v6961_v38 = vld [vmem:[%s13677_s11 + $0x5c0] sm:$0xff] }
 0x486   : > { %10412 = vmatprep.subr.bf16.mxu0 %v10411_v54  ;;  %v6933_v54 = vld [vmem:[%s13677_s11 + $0x4e0] sm:$0xff] }
 0x487   : > { %v10441_v44 = vpack.c.bf16 %v6935_v14, %v6933_v54  ;;  %v6968_v54 = vld [vmem:[%s13677_s11 + $0x5f8] sm:$0xff]  ;;  %v6676_v14 = vsel %vm2193_vm5, %v10930_v42, %v10931_v24 }
 0x488   : > { %7169 = vmatmul.mubr.f32.vlgmr.msra.gmra.mrb[8].mxu0 %v6771_v53  ;;  %v10423_v53 = vpack.c.bf16 %v6920_v59, %v6918_v61  ;;  %v6945_v61 = vld [vmem:[%s13677_s11 + $0x540] sm:$0xff]  ;;  %v6947_v59 = vld [vmem:[%s13677_s11 + $0x550] sm:$0xff]  ;;  %v6972_v42 = vld [vmem:[%s13677_s11 + $0x618] sm:$0xff] }
 0x489   : > { %10414 = vmatpush1.bf16.msra.mxu0 %v10413_v26  ;;  %7239 = vmatprep.mubr.f32.mxu0 %v6774_v3  ;;  %v6937_v26 = vld [vmem:[%s13677_s11 + $0x500] sm:$0xff]  ;;  %v10453_v16 = vpack.c.bf16 %v6947_v59, %v6945_v61  ;;  %v6975_v61 = vld [vmem:[%s13677_s11 + $0x630] sm:$0xff]  ;;  %v6996_v24 = vld [vmem:[%s13677_s11 + $0x6d8] sm:$0xff] }
 0x48a   : > { %10416 = vmatprep.subr.bf16.mxu0 %v10415_v35  ;;  %v6942_v35 = vld [vmem:[%s13677_s11 + $0x528] sm:$0xff]  ;;  %v10445_v28 = vpack.c.bf16 %v6939_v45, %v6937_v26  ;;  %v6967_v26 = vld [vmem:[%s13677_s11 + $0x5f0] sm:$0xff]  ;;  %v6692_v45 = vmax.f32 %v12316_v11, %v6676_v14  ;;  %v6969_v11 = vld [vmem:[%s13677_s11 + $0x600] sm:$0xff] }
 0x48b   : > { %v10447_v3 = vpack.c.bf16 %v6944_v37, %v6942_v35  ;;  %v10941_v35 = vunpack.i.h.bf16 %v12457_v18  ;;  %v6980_v18 = vld [vmem:[%s13677_s11 + $0x658] sm:$0xff] }
 0x48d   : > { %10418 = vmatpush1.bf16.msra.mxu0 %v10417_v13  ;;  %v6946_v13 = vld [vmem:[%s13677_s11 + $0x548] sm:$0xff] }
 0x48e   : > { %10420 = vmatprep.subr.bf16.mxu0 %v10419_v55  ;;  %v6948_v55 = vld [vmem:[%s13677_s11 + $0x558] sm:$0xff] }
 0x48f   : > { %v10451_v50 = vpack.c.bf16 %v6948_v55, %v6946_v13  ;;  %v6974_v13 = vld [vmem:[%s13677_s11 + $0x628] sm:$0xff]  ;;  %v10477_v55 = vpack.c.bf16 %v6971_v41, %v6969_v11  ;;  %v7005_v41 = vld [vmem:[%s13677_s11 + $0x720] sm:$0xff] }
 0x491   : > { %10422 = vmatpush1.bf16.msra.mxu0 %v10421_v9  ;;  %v6950_v9 = vld [vmem:[%s13677_s11 + $0x568] sm:$0xff] }
 0x492   : > { %10424 = vmatprep.subr.bf16.mxu0 %v10423_v53  ;;  %v6952_v53 = vld [vmem:[%s13677_s11 + $0x578] sm:$0xff] }
 0x493   : > { %v10455_v22 = vpack.c.bf16 %v6952_v53, %v6950_v9  ;;  %v6978_v9 = vld [vmem:[%s13677_s11 + $0x648] sm:$0xff] }
 0x494   : > { %v10483_v53 = vpack.c.bf16 %v6980_v18, %v6978_v9 }
 0x495   : > { %10426 = vmatpush1.bf16.msra.mxu0 %v10425_v62  ;;  %v6954_v62 = vld [vmem:[%s13677_s11 + $0x588] sm:$0xff] }
 0x496   : > { %10428 = vmatprep.subr.bf16.mxu0 %v10427_v30  ;;  %v6956_v30 = vld [vmem:[%s13677_s11 + $0x598] sm:$0xff] }
 0x497   : > { %v10459_v32 = vpack.c.bf16 %v6956_v30, %v6954_v62  ;;  %v6983_v62 = vld [vmem:[%s13677_s11 + $0x670] sm:$0xff]  ;;  %v6986_v30 = vld [vmem:[%s13677_s11 + $0x688] sm:$0xff] }
 0x499   : > { %10430 = vmatpush1.bf16.msra.mxu0 %v10429_v58  ;;  %v6958_v58 = vld [vmem:[%s13677_s11 + $0x5a8] sm:$0xff] }
 0x49a   : > { %10432 = vmatprep.subr.bf16.mxu0 %v10431_v31  ;;  %v6960_v31 = vld [vmem:[%s13677_s11 + $0x5b8] sm:$0xff] }
 0x49b   : > { %v10463_v39 = vpack.c.bf16 %v6960_v31, %v6958_v58  ;;  %v6987_v58 = vld [vmem:[%s13677_s11 + $0x690] sm:$0xff]  ;;  %v6990_v31 = vld [vmem:[%s13677_s11 + $0x6a8] sm:$0xff] }
 0x49d   : > { %10434 = vmatpush1.bf16.msra.mxu0 %v10433_v48  ;;  %v6962_v48 = vld [vmem:[%s13677_s11 + $0x5c8] sm:$0xff] }
 0x49e   : > { %10436 = vmatprep.subr.bf16.mxu0 %v10435_v57  ;;  %v6964_v57 = vld [vmem:[%s13677_s11 + $0x5d8] sm:$0xff] }
 0x49f   : > { %v10467_v25 = vpack.c.bf16 %v6964_v57, %v6962_v48  ;;  %v6991_v48 = vld [vmem:[%s13677_s11 + $0x6b0] sm:$0xff]  ;;  %v6994_v57 = vld [vmem:[%s13677_s11 + $0x6c8] sm:$0xff] }
 0x4a1   : > { %10438 = vmatpush1.bf16.msra.mxu0 %v10437_v8  ;;  %v6963_v8 = vld [vmem:[%s13677_s11 + $0x5d0] sm:$0xff] }
 0x4a2   : > { %10440 = vmatprep.subr.bf16.mxu0 %v10439_v7  ;;  %v6966_v7 = vld [vmem:[%s13677_s11 + $0x5e8] sm:$0xff]  ;;  %v10469_v2 = vpack.c.bf16 %v6963_v8, %v6961_v38  ;;  %v6993_v38 = vld [vmem:[%s13677_s11 + $0x6c0] sm:$0xff]  ;;  %v6995_v8 = vld [vmem:[%s13677_s11 + $0x6d0] sm:$0xff] }
 0x4a3   : > { %v10501_v14 = vpack.c.bf16 %v6995_v8, %v6993_v38 }
 0x4a5   : > { %10442 = vmatpush1.bf16.msra.mxu0 %v10441_v44  ;;  %v10471_v44 = vpack.c.bf16 %v6968_v54, %v6966_v7  ;;  %v6998_v7 = vld [vmem:[%s13677_s11 + $0x6e8] sm:$0xff]  ;;  %v7000_v54 = vld [vmem:[%s13677_s11 + $0x6f8] sm:$0xff] }
 0x4a6   : > { %10444 = vmatprep.subr.bf16.mxu0 %v10443_v17  ;;  %v6965_v17 = vld [vmem:[%s13677_s11 + $0x5e0] sm:$0xff] }
 0x4a7   : > { %v10473_v37 = vpack.c.bf16 %v6967_v26, %v6965_v17  ;;  %v7002_v17 = vld [vmem:[%s13677_s11 + $0x708] sm:$0xff]  ;;  %v7004_v26 = vld [vmem:[%s13677_s11 + $0x718] sm:$0xff] }
 0x4a9   : > { %10446 = vmatpush1.bf16.msra.mxu0 %v10445_v28  ;;  %v6718_v28 = vsel %vm2857_vm7, %v10935_v46, %v10936_v23  ;;  %v6760_v46 = vsel %vm3189_vm8, %v10940_v60, %v10941_v35  ;;  %v6997_v23 = vld [vmem:[%s13677_s11 + $0x6e0] sm:$0xff]  ;;  %v7003_v35 = vld [vmem:[%s13677_s11 + $0x710] sm:$0xff] }
 0x4aa   : > { %10448 = vmatprep.subr.bf16.mxu0 %v10447_v3  ;;  %v10475_v3 = vpack.c.bf16 %v6972_v42, %v6970_v34  ;;  %v6734_v10 = vmax.f32 %v6692_v45, %v6718_v28  ;;  %v10507_v34 = vpack.c.bf16 %v7004_v26, %v7002_v17  ;;  %v7001_v42 = vld [vmem:[%s13677_s11 + $0x700] sm:$0xff]  ;;  %v7008_v28 = vld [vmem:[%s13677_s11 + $0x738] sm:$0xff] }
 0x4ac   : > { %v6776_v59 = vmax.f32 %v6734_v10, %v6760_v46  ;;  %v7007_v10 = vld [vmem:[%s13677_s11 + $0x730] sm:$0xff] }
 0x4ad   : > { %10450 = vmatpush1.bf16.msra.mxu0 %v10449_v52  ;;  %v10479_v52 = vpack.c.bf16 %v6976_v29, %v6974_v13  ;;  %v7010_v13 = vld [vmem:[%s13677_s11 + $0x748] sm:$0xff]  ;;  %v7012_v29 = vld [vmem:[%s13677_s11 + $0x758] sm:$0xff]  ;;  %v10513_v46 = vpack.c.bf16 %v7007_v10, %v7005_v41 }
 0x4ae   : > { %10452 = vmatprep.subr.bf16.mxu0 %v10451_v50  ;;  %v6973_v50 = vld [vmem:[%s13677_s11 + $0x620] sm:$0xff] }
 0x4af   : > { %v10481_v60 = vpack.c.bf16 %v6975_v61, %v6973_v50  ;;  %v7011_v50 = vld [vmem:[%s13677_s11 + $0x750] sm:$0xff]  ;;  %v7014_v61 = vld [vmem:[%s13677_s11 + $0x768] sm:$0xff] }
 0x4b1   : > { %10454 = vmatpush1.bf16.msra.mxu0 %v10453_v16  ;;  %v6977_v16 = vld [vmem:[%s13677_s11 + $0x640] sm:$0xff] }
 0x4b2   : > { %10456 = vmatprep.subr.bf16.mxu0 %v10455_v22  ;;  %v6979_v22 = vld [vmem:[%s13677_s11 + $0x650] sm:$0xff] }
 0x4b3   : > { %v10485_v12 = vpack.c.bf16 %v6979_v22, %v6977_v16  ;;  %v7018_v16 = vld [vmem:[%s13677_s11 + $0x788] sm:$0xff]  ;;  %v7020_v22 = vld [vmem:[%s13677_s11 + $0x798] sm:$0xff] }
 0x4b5   : > { %10458 = vmatpush1.bf16.msra.mxu0 %v10457_v1  ;;  %v6988_v1 = vld [vmem:[%s13677_s11 + $0x698] sm:$0xff] }
 0x4b6   : > { %10460 = vmatprep.subr.bf16.mxu0 %v10459_v32  ;;  %v10489_v32 = vpack.c.bf16 %v6983_v62, %v6981_v6  ;;  %v10491_v20 = vpack.c.bf16 %v6988_v1, %v6986_v30  ;;  %v7022_v6 = vld [vmem:[%s13677_s11 + $0x7a8] sm:$0xff]  ;;  %v7024_v62 = vld [vmem:[%s13677_s11 + $0x7b8] sm:$0xff] }
 0x4b7   : > { %v10527_v1 = vpack.c.bf16 %v7024_v62, %v7022_v6 }
 0x4b9   : > { %10462 = vmatpush1.bf16.msra.mxu0 %v10461_v5  ;;  %v6992_v5 = vld [vmem:[%s13677_s11 + $0x6b8] sm:$0xff] }
 0x4ba   : > { %10464 = vmatprep.subr.bf16.mxu0 %v10463_v39  ;;  %v10493_v39 = vpack.c.bf16 %v6987_v58, %v6985_v4  ;;  %v10495_v40 = vpack.c.bf16 %v6992_v5, %v6990_v31  ;;  %v7026_v4 = vld [vmem:[%s13677_s11 + $0x7c8] sm:$0xff]  ;;  %v7028_v58 = vld [vmem:[%s13677_s11 + $0x7d8] sm:$0xff] }
 0x4bb   : > { %v10531_v5 = vpack.c.bf16 %v7028_v58, %v7026_v4 }
 0x4bd   : > { %10466 = vmatpush1.bf16.msra.mxu0 %v10465_v51  ;;  %v10497_v51 = vpack.c.bf16 %v6991_v48, %v6989_v47  ;;  %v7030_v47 = vld [vmem:[%s13677_s11 + $0x7e8] sm:$0xff]  ;;  %v7032_v48 = vld [vmem:[%s13677_s11 + $0x7f8] sm:$0xff] }
 0x4be   : > { %10468 = vmatprep.subr.bf16.mxu0 %v10467_v25  ;;  %v10499_v25 = vpack.c.bf16 %v6996_v24, %v6994_v57  ;;  %v10535_v24 = vpack.c.bf16 %v7032_v48, %v7030_v47  ;;  %v8124_v47 = vld [vmem:[%s13680_s14] sm:$0x3] }
 0x4c1   : > { %10470 = vmatpush1.bf16.msra.mxu0 %v10469_v2  ;;  %v10503_v2 = vpack.c.bf16 %v7000_v54, %v6998_v7 }
 0x4c2   : > { %10472 = vmatprep.subr.bf16.mxu0 %v10471_v44  ;;  %v6999_v44 = vld [vmem:[%s13677_s11 + $0x6f0] sm:$0xff] }
 0x4c3   : > { %v10505_v45 = vpack.c.bf16 %v6999_v44, %v6997_v23 }
 0x4c5   : > { %10474 = vmatpush1.bf16.msra.mxu0 %v10473_v37  ;;  %v7006_v37 = vld [vmem:[%s13677_s11 + $0x728] sm:$0xff] }
 0x4c6   : > { %10476 = vmatprep.subr.bf16.mxu0 %v10475_v3  ;;  %v10509_v3 = vpack.c.bf16 %v7003_v35, %v7001_v42  ;;  %v10511_v11 = vpack.c.bf16 %v7008_v28, %v7006_v37  ;;  %v7322_v35 = vld [vmem:[%s13671_s5] sm:$0xff] }
 0x4c8   : > { %7240 = vmatmul.mubr.f32.vlgmr.msra.gmra.mrb[8].mxu0 %v6773_v56  ;;  %v10487_v56 = vpack.c.bf16 %v6984_v21, %v6982_v27  ;;  %v10523_v21 = vpack.c.bf16 %v7020_v22, %v7018_v16 }
 0x4c9   : > { %10478 = vmatpush1.bf16.msra.mxu0 %v10477_v55  ;;  %7310 = vmatprep.mubr.f32.mxu0 %v6776_v59  ;;  %v10515_v55 = vpack.c.bf16 %v7012_v29, %v7010_v13  ;;  %v7016_v59 = vld [vmem:[%s13677_s11 + $0x778] sm:$0xff]  ;;  %v9948_v13 = vld [vmem:[%s13671_s5 + $0x10] sm:$0xff] }
 0x4ca   : > { %10480 = vmatprep.subr.bf16.mxu0 %v10479_v52  ;;  %v7009_v52 = vld [vmem:[%s13677_s11 + $0x740] sm:$0xff]  ;;  %v10519_v18 = vpack.c.bf16 %v7016_v59, %v7014_v61  ;;  %v9950_v61 = vld [vmem:[%s13671_s5 + $0x18] sm:$0xff] }
 0x4cb   : > { %v10517_v9 = vpack.c.bf16 %v7011_v50, %v7009_v52 }
 0x4cd   : > { %10482 = vmatpush1.bf16.msra.mxu0 %v10481_v60  ;;  %v7013_v60 = vld [vmem:[%s13677_s11 + $0x760] sm:$0xff] }
 0x4ce   : > { %10484 = vmatprep.subr.bf16.mxu0 %v10483_v53  ;;  %v7015_v53 = vld [vmem:[%s13677_s11 + $0x770] sm:$0xff] }
 0x4cf   : > { %v10521_v27 = vpack.c.bf16 %v7015_v53, %v7013_v60  ;;  %v9952_v53 = vld [vmem:[%s13671_s5 + $0x20] sm:$0xff] }
 0x4d1   : > { %10486 = vmatpush1.bf16.msra.mxu0 %v10485_v12  ;;  %v7017_v12 = vld [vmem:[%s13677_s11 + $0x780] sm:$0xff] }
 0x4d2   : > { %10488 = vmatprep.subr.bf16.mxu0 %v10487_v56  ;;  %v7019_v56 = vld [vmem:[%s13677_s11 + $0x790] sm:$0xff] }
 0x4d3   : > { %v10525_v30 = vpack.c.bf16 %v7019_v56, %v7017_v12  ;;  %v9954_v12 = vld [vmem:[%s13671_s5 + $0x28] sm:$0xff] }
 0x4d5   : > { %10490 = vmatpush1.bf16.msra.mxu0 %v10489_v32  ;;  %v7021_v32 = vld [vmem:[%s13677_s11 + $0x7a0] sm:$0xff] }
 0x4d6   : > { %10492 = vmatprep.subr.bf16.mxu0 %v10491_v20  ;;  %v7023_v20 = vld [vmem:[%s13677_s11 + $0x7b0] sm:$0xff] }
 0x4d7   : > { %v10529_v31 = vpack.c.bf16 %v7023_v20, %v7021_v32 }
 0x4d9   : > { %10494 = vmatpush1.bf16.msra.mxu0 %v10493_v39  ;;  %v7025_v39 = vld [vmem:[%s13677_s11 + $0x7c0] sm:$0xff] }
 0x4da   : > { %10496 = vmatprep.subr.bf16.mxu0 %v10495_v40  ;;  %v7027_v40 = vld [vmem:[%s13677_s11 + $0x7d0] sm:$0xff] }
 0x4db   : > { %v10533_v57 = vpack.c.bf16 %v7027_v40, %v7025_v39  ;;  %v9960_v40 = vld [vmem:[%s13671_s5 + $0x40] sm:$0xff] }
 0x4dd   : > { %10498 = vmatpush1.bf16.msra.mxu0 %v10497_v51  ;;  %v7029_v51 = vld [vmem:[%s13677_s11 + $0x7e0] sm:$0xff] }
 0x4de   : > { %10500 = vmatprep.subr.bf16.mxu0 %v10499_v25  ;;  %v7031_v25 = vld [vmem:[%s13677_s11 + $0x7f0] sm:$0xff] }
 0x4df   : > { %v10537_v38 = vpack.c.bf16 %v7031_v25, %v7029_v51  ;;  %v8129_v51 = vrot.slane %v8124_v47, %v11521_v36 }
 0x4e1   : > { %10502 = vmatpush1.bf16.msra.mxu0 %v10501_v14 }
 0x4e2   : > { %10504 = vmatprep.subr.bf16.mxu0 %v10503_v2  ;;  %v9945_v2 = vld [vmem:[%s13671_s5 + $0x8] sm:$0xff] }
 0x4e5   : > { %10506 = vmatpush1.bf16.msra.mxu0 %v10505_v45 }
 0x4e6   : > { %10508 = vmatprep.subr.bf16.mxu0 %v10507_v34 }
 0x4e9   : > { %10510 = vmatpush1.bf16.msra.mxu0 %v10509_v3 }
 0x4ea   : > { %10512 = vmatprep.subr.bf16.mxu0 %v10511_v11 }
 0x4ed   : > { %10514 = vmatpush1.bf16.msra.mxu0 %v10513_v46 }
 0x4ee   : > { %10516 = vmatprep.subr.bf16.mxu0 %v10515_v55 }
 0x4f1   : > { %10518 = vmatpush1.bf16.msra.mxu0 %v10517_v9 }
 0x4f2   : > { %10520 = vmatprep.subr.bf16.mxu0 %v10519_v18 }
 0x4f5   : > { %10522 = vmatpush1.bf16.msra.mxu0 %v10521_v27 }
 0x4f6   : > { %10524 = vmatprep.subr.bf16.mxu0 %v10523_v21 }
 0x4f9   : > { %10526 = vmatpush1.bf16.msra.mxu0 %v10525_v30 }
 0x4fa   : > { %10528 = vmatprep.subr.bf16.mxu0 %v10527_v1  ;;  %v9956_v1 = vld [vmem:[%s13671_s5 + $0x30] sm:$0xff] }
 0x4fd   : > { %10530 = vmatpush1.bf16.msra.mxu0 %v10529_v31 }
 0x4fe   : > { %10532 = vmatprep.subr.bf16.mxu0 %v10531_v5  ;;  %v9958_v5 = vld [vmem:[%s13671_s5 + $0x38] sm:$0xff] }
 0x501   : > { %10534 = vmatpush1.bf16.msra.mxu0 %v10533_v57 }
 0x502   : > { %10536 = vmatprep.subr.bf16.mxu0 %v10535_v24 }
 0x505   : > { %10538 = vmatpush1.bf16.msra.mxu0 %v10537_v38 }
 0x508   : > { %7311 = vmatmul.mubr.f32.vlgmr.msra.gmra.mrb[8].mxu0 %v6775_v63 }
 0x5db   : > { %v13020_v8 = vpop.f32.mrb[8].mxu0 }
 0x5dc   : > { %7330 = vrot.lane.b32.xlu0 %v13020_v8, %s11032_s23  ;;  %v13024_v7 = vpop.f32.mrb[9].mxu0 }
 0x5dd   : > { %7332 = vrot.lane.b32.xlu1 %v13024_v7, %s11032_s23 }
 0x5e0   : > { %7328 = vrot.lane.b32.xlu0 %v11022_v0, %s11032_s23 }
 0x5e1   : > { %7415 = vrot.lane.b32.xlu1 %v13020_v8, %s11033_s26 }
 0x5e4   : > { %7417 = vrot.lane.b32.xlu0 %v13024_v7, %s11033_s26 }
 0x5e5   : > { %7413 = vrot.lane.b32.xlu1 %v11022_v0, %s11033_s26 }
 0x5e8   : > { %7502 = vrot.lane.b32.xlu0 %v13020_v8, %s11034_s1 }
 0x5e9   : > { %7504 = vrot.lane.b32.xlu1 %v13024_v7, %s11034_s1 }
 0x5ec   : > { %7500 = vrot.lane.b32.xlu0 %v11022_v0, %s11034_s1 }
 0x5ed   : > { %7591 = vrot.lane.b32.xlu1 %v13020_v8, %s13719_s2 }
 0x5f0   : > { %7593 = vrot.lane.b32.xlu0 %v13024_v7, %s13719_s2 }
 0x5f1   : > { %7589 = vrot.lane.b32.xlu1 %v11022_v0, %s13719_s2 }
 0x5f4   : > { %7763 = vrot.lane.b32.xlu0 %v13024_v7, %s13713_s30 }
 0x5f5   : > { %7765 = vrot.lane.b32.xlu1 %v11607_v19, %s13713_s30 }
 0x5f8   : > { %7761 = vrot.lane.b32.xlu0 %v13020_v8, %s13713_s30 }
 0x5f9   : > { %7851 = vrot.lane.b32.xlu1 %v13024_v7, %s11035_s3 }
 0x5fc   : > { %7853 = vrot.lane.b32.xlu0 %v11607_v19, %s11035_s3 }
 0x5fd   : > { %7849 = vrot.lane.b32.xlu1 %v13020_v8, %s11035_s3 }
 0x600   : > { %7940 = vrot.lane.b32.xlu0 %v13024_v7, %s11036_s4 }
 0x601   : > { %7942 = vrot.lane.b32.xlu1 %v11607_v19, %s11036_s4 }
 0x604   : > { %7938 = vrot.lane.b32.xlu0 %v13020_v8, %s11036_s4 }
 0x605   : > { %8029 = vrot.lane.b32.xlu1 %v13024_v7, %s11037_s13 }
 0x608   : > { %8031 = vrot.lane.b32.xlu0 %v11607_v19, %s11037_s13 }
 0x609   : > { %8027 = vrot.lane.b32.xlu1 %v13020_v8, %s11037_s13 }
 0x60c   : > { %8117 = vperm.xlu0 %10881, %v8114_v33  }
 0x64e   : > { %v7331_v15 = vpop.permute.xlu0 %7330 }
 0x64f   : > { %v7333_v63 = vpop.permute.xlu1 %7332 }
 0x650   : > { %v7336_v54 = vsel %vm7334_vm9, %v7331_v15, %v7333_v63 }
 0x651   : > { %7342 = vmatprep.subr.mxu1 %v7336_v54  ;;  %v8929_v54 = vld [vmem:[%s13674_s8] sm:$0xff] }
 0x652   : > { %v7329_v14 = vpop.permute.xlu0 %7328 }
 0x653   : > { %v7335_v23 = vsel %vm7334_vm9, %v7329_v14, %v7331_v15  ;;  %v7416_v44 = vpop.permute.xlu1 %7415 }
 0x654   : > { %7343 = vmatpush1.msra.mxu1 %v7335_v23 }
 0x655   : > { %9946 = vmatmul.mubr.msk.f32.vlgmr.msra.gmra.mrb[12].mxu1 %vm584_vm1, %v9945_v2 }
 0x656   : > { %v7418_v17 = vpop.permute.xlu0 %7417  ;;  %7491 = vmatprep.mubr.f32.mxu1 %v11022_v0 }
 0x657   : > { %v7414_v26 = vpop.permute.xlu1 %7413  ;;  %v7421_v45 = vsel %vm7419_vm10, %v7416_v44, %v7418_v17  ;;  %v9962_v17 = vld [vmem:[%s13673_s7 + $0x8] sm:$0xff] }
 0x658   : > { %v7420_v34 = vsel %vm7419_vm10, %v7414_v26, %v7416_v44  ;;  %7427 = vmatprep.subr.mxu1 %v7421_v45 }
 0x659   : > { %7428 = vmatpush1.msra.mxu1 %v7420_v34 }
 0x65a   : > { %v7503_v42 = vpop.permute.xlu0 %7502 }
 0x65b   : > { %v7505_v37 = vpop.permute.xlu1 %7504 }
 0x65c   : > { %v7508_v28 = vsel %vm7506_vm11, %v7503_v42, %v7505_v37 }
 0x65d   : > { %9947 = vmatmul.mubr.msk.f32.vlgmr.msra.gmra.mrb[12].mxu1 %vm584_vm1, %v7322_v35  ;;  %7514 = vmatprep.subr.mxu1 %v7508_v28  ;;  %v8143_v28 = vld [vmem:[%s13673_s7] sm:$0xff] }
 0x65e   : > { %v7501_v3 = vpop.permute.xlu0 %7500  ;;  %7578 = vmatprep.mubr.f32.mxu1 %v11022_v0 }
 0x65f   : > { %v7507_v11 = vsel %vm7506_vm11, %v7501_v3, %v7503_v42  ;;  %v7592_v41 = vpop.permute.xlu1 %7591 }
 0x660   : > { %7515 = vmatpush1.msra.mxu1 %v7507_v11 }
 0x662   : > { %v7594_v10 = vpop.permute.xlu0 %7593 }
 0x663   : > { %v7590_v29 = vpop.permute.xlu1 %7589  ;;  %v7596_v46 = vsel %vm1546_vm4, %v7592_v41, %v7594_v10 }
 0x664   : > { %v7595_v55 = vsel %vm1546_vm4, %v7590_v29, %v7592_v41  ;;  %7602 = vmatprep.subr.mxu1 %v7596_v46  ;;  %v9965_v46 = vld [vmem:[%s13673_s7 + $0x10] sm:$0xff] }
 0x665   : > { %9949 = vmatmul.mubr.msk.f32.vlgmr.msra.gmra.mrb[12].mxu1 %vm584_vm1, %v9948_v13 }
 0x666   : > { %7603 = vmatpush1.msra.mxu1 %v7595_v55  ;;  %v7764_v52 = vpop.permute.xlu0 %7763  ;;  %7666 = vmatprep.mubr.f32.mxu1 %v11022_v0 }
 0x667   : > { %7680 = vmatprep.subr.mxu1 %v13024_v7  ;;  %v7766_v50 = vpop.permute.xlu1 %7765 }
 0x668   : > { %v7768_v9 = vsel %vm2193_vm5, %v7764_v52, %v7766_v50 }
 0x66a   : > { %v7762_v59 = vpop.permute.xlu0 %7761 }
 0x66b   : > { %v7852_v18 = vpop.permute.xlu1 %7851  ;;  %v7767_v16 = vsel %vm2193_vm5, %v7762_v59, %v7764_v52 }
 0x66d   : > { %9951 = vmatmul.mubr.msk.f32.vlgmr.msra.gmra.mrb[12].mxu1 %vm584_vm1, %v9950_v61 }
 0x66e   : > { %7681 = vmatpush1.msra.mxu1 %v13020_v8  ;;  %7744 = vmatprep.mubr.f32.mxu1 %v11022_v0  ;;  %v7854_v60 = vpop.permute.xlu0 %7853  ;;  %v8133_v8 = vrot.slane %v8124_v47, %v11537_v49 }
 0x66f   : > { %7774 = vmatprep.subr.mxu1 %v7768_v9  ;;  %v7850_v22 = vpop.permute.xlu1 %7849  ;;  %v7857_v27 = vsel %vm7855_vm12, %v7852_v18, %v7854_v60  ;;  %v9967_v9 = vld [vmem:[%s13673_s7 + $0x18] sm:$0xff] }
 0x670   : > { %v7856_v6 = vsel %vm7855_vm12, %v7850_v22, %v7852_v18  ;;  %v9969_v22 = vld [vmem:[%s13673_s7 + $0x20] sm:$0xff] }
 0x672   : > { %v7941_v21 = vpop.permute.xlu0 %7940 }
 0x673   : > { %v7943_v56 = vpop.permute.xlu1 %7942 }
 0x674   : > { %v7946_v30 = vsel %vm7944_vm13, %v7941_v21, %v7943_v56 }
 0x675   : > { %9953 = vmatmul.mubr.msk.f32.vlgmr.msra.gmra.mrb[12].mxu1 %vm584_vm1, %v9952_v53 }
 0x676   : > { %7775 = vmatpush1.msra.mxu1 %v7767_v16  ;;  %7838 = vmatprep.mubr.f32.mxu1 %v11022_v0  ;;  %v7939_v62 = vpop.permute.xlu0 %7938 }
 0x677   : > { %7863 = vmatprep.subr.mxu1 %v7857_v27  ;;  %v8030_v20 = vpop.permute.xlu1 %8029  ;;  %v7945_v4 = vsel %vm7944_vm13, %v7939_v62, %v7941_v21 }
 0x67a   : > { %v8032_v32 = vpop.permute.xlu0 %8031 }
 0x67b   : > { %v8035_v58 = vsel %vm8033_vm14, %v8030_v20, %v8032_v32  ;;  %v8028_v31 = vpop.permute.xlu1 %8027 }
 0x67c   : > { %v8034_v39 = vsel %vm8033_vm14, %v8028_v31, %v8030_v20  ;;  %v9973_v20 = vld [vmem:[%s13673_s7 + $0x30] sm:$0xff] }
 0x67d   : > { %9955 = vmatmul.mubr.msk.f32.vlgmr.msra.gmra.mrb[12].mxu1 %vm584_vm1, %v9954_v12 }
 0x67e   : > { %7864 = vmatpush1.msra.mxu1 %v7856_v6  ;;  %7927 = vmatprep.mubr.f32.mxu1 %v11022_v0  ;;  %v9971_v6 = vld [vmem:[%s13673_s7 + $0x28] sm:$0xff] }
 0x67f   : > { %7952 = vmatprep.subr.mxu1 %v7946_v30 }
 0x685   : > { %9957 = vmatmul.mubr.msk.f32.vlgmr.msra.gmra.mrb[12].mxu1 %vm584_vm1, %v9956_v1 }
 0x686   : > { %7953 = vmatpush1.msra.mxu1 %v7945_v4  ;;  %8016 = vmatprep.mubr.f32.mxu1 %v11022_v0 }
 0x687   : > { %8041 = vmatprep.subr.mxu1 %v8035_v58 }
 0x68b   : > { %v8118_v48 = vpop.permute.xlu0 %8117 }
 0x68d   : > { %9959 = vmatmul.mubr.msk.f32.vlgmr.msra.gmra.mrb[12].mxu1 %vm584_vm1, %v9958_v5 }
 0x68e   : > { %8042 = vmatpush1.msra.mxu1 %v8034_v39  ;;  %8105 = vmatprep.mubr.f32.mxu1 %v11022_v0 }
 0x695   : > { %9961 = vmatmul.mubr.msk.f32.vlgmr.msra.gmra.mrb[12].mxu1 %vm584_vm1, %v9960_v40  ;;  %v9975_v40 = vld [vmem:[%s13673_s7 + $0x38] sm:$0xff] }
 0x696   : > { %8226 = vmatprep.mubr.f32.mxu1 %v11022_v0 }
 0x768   : > { %v8107_v57 = vpop.f32.mrb[12].mxu1 }
 0x769   : > { %v8120_v24 = vadd.f32 %v8118_v48, %v8107_v57  ;;  %v8109_v25 = vpop.f32.mrb[13].mxu1  ;;  %v9013_v57 = vld [vmem:[%s13678_s12 + $0x80] sm:$0xff] }
 0x76a   : > { %v8121_v38 = vadd.f32 %v8118_v48, %v8109_v25  ;;  %v9977_v48 = vld [vmem:[%s13673_s7 + $0x40] sm:$0xff] }
 0x76b   : > { %v8122_v7 = vmax.f32 %v8120_v24, 0.0  ;;  %v9014_v24 = vld [vmem:[%s13678_s12 + $0x88] sm:$0xff] }
 0x76c   : > { %v8123_v33 = vmax.f32 %v8121_v38, 0.0  ;;  %v10539_v25 = vpack.c.bf16 %v9014_v24, %v9013_v57  ;;  %v8998_v38 = vld [vmem:[%s13678_s12 + $0x8] sm:$0xff] }
 0x76d   : > { %v13143_v15 = vmul.f32 %v8129_v51, %v8122_v7  ;;  %v8997_v51 = vld [vmem:[%s13678_s12] sm:$0xff]  ;;  %v9016_v7 = vld [vmem:[%s13678_s12 + $0x98] sm:$0xff] }
 0x76e   : > { %v13145_v63 = vmul.f32 %v8133_v8, %v8123_v33  ;;  %v9015_v8 = vld [vmem:[%s13678_s12 + $0x90] sm:$0xff]  ;;  %v10541_v33 = vpack.c.bf16 %v8998_v38, %v8997_v51 }
 0x76f   : > { %8151 = vrot.lane.b32.xlu1 %v13143_v15, %s11032_s23 }
 0x770   : > { %8153 = vrot.lane.b32.xlu0 %v13145_v63, %s11032_s23 }
 0x773   : > { %8149 = vrot.lane.b32.xlu1 %v11022_v0, %s11032_s23 }
 0x774   : > { %8235 = vrot.lane.b32.xlu0 %v13143_v15, %s11033_s26 }
 0x777   : > { %8237 = vrot.lane.b32.xlu1 %v13145_v63, %s11033_s26 }
 0x778   : > { %8233 = vrot.lane.b32.xlu0 %v11022_v0, %s11033_s26 }
 0x77b   : > { %8321 = vrot.lane.b32.xlu1 %v13143_v15, %s11034_s1 }
 0x77c   : > { %8323 = vrot.lane.b32.xlu0 %v13145_v63, %s11034_s1 }
 0x77f   : > { %8319 = vrot.lane.b32.xlu1 %v11022_v0, %s11034_s1 }
 0x780   : > { %8409 = vrot.lane.b32.xlu0 %v13143_v15, %s13719_s2 }
 0x783   : > { %8411 = vrot.lane.b32.xlu1 %v13145_v63, %s13719_s2 }
 0x784   : > { %8407 = vrot.lane.b32.xlu0 %v11022_v0, %s13719_s2  ;;  %s13624_s2 = scalar_lea.hbm %s13681_s15, %s10044_s25 }
 0x787   : > { %8581 = vrot.lane.b32.xlu1 %v13145_v63, %s13713_s30 }
 0x788   : > { %8583 = vrot.lane.b32.xlu0 %v12278_v43, %s13713_s30 }
 0x78b   : > { %8579 = vrot.lane.b32.xlu1 %v13143_v15, %s13713_s30 }
 0x78c   : > { %8669 = vrot.lane.b32.xlu0 %v13145_v63, %s11035_s3 }
 0x78f   : > { %8671 = vrot.lane.b32.xlu1 %v12278_v43, %s11035_s3 }
 0x790   : > { %8667 = vrot.lane.b32.xlu0 %v13143_v15, %s11035_s3 }
 0x793   : > { %8757 = vrot.lane.b32.xlu1 %v13145_v63, %s11036_s4 }
 0x794   : > { %8759 = vrot.lane.b32.xlu0 %v12278_v43, %s11036_s4 }
 0x797   : > { %8755 = vrot.lane.b32.xlu1 %v13143_v15, %s11036_s4 }
 0x798   : > { %8845 = vrot.lane.b32.xlu0 %v13145_v63, %s11037_s13 }
 0x79b   : > { %8847 = vrot.lane.b32.xlu1 %v12278_v43, %s11037_s13 }
 0x79c   : > { %8843 = vrot.lane.b32.xlu0 %v13143_v15, %s11037_s13 }
 0x79f   : > { %8932 = vperm.xlu1 %10942, %v8929_v54   ;;  %v9000_v54 = vld [vmem:[%s13678_s12 + $0x18] sm:$0xff] }
 0x7e1   : > { %v8152_v14 = vpop.permute.xlu1 %8151 }
 0x7e2   : > { %v8154_v2 = vpop.permute.xlu0 %8153 }
 0x7e3   : > { %v8156_v23 = vsel %vm7334_vm9, %v8152_v14, %v8154_v2  ;;  %v9018_v2 = vld [vmem:[%s13678_s12 + $0xa8] sm:$0xff] }
 0x7e4   : > { %8162 = vmatprep.subr.mxu1 %v8156_v23 }
 0x7e5   : > { %v8150_v44 = vpop.permute.xlu1 %8149 }
 0x7e6   : > { %v8155_v43 = vsel %vm7334_vm9, %v8150_v44, %v8152_v14  ;;  %v8236_v26 = vpop.permute.xlu0 %8235  ;;  %v9017_v14 = vld [vmem:[%s13678_s12 + $0xa0] sm:$0xff] }
 0x7e7   : > { %8163 = vmatpush1.msra.mxu1 %v8155_v43  ;;  %v10547_v44 = vpack.c.bf16 %v9018_v2, %v9017_v14  ;;  %v9002_v43 = vld [vmem:[%s13678_s12 + $0x28] sm:$0xff] }
 0x7e8   : > { %9963 = vmatmul.mubr.msk.f32.vlgmr.msra.gmra.mrb[14].mxu1 %vm584_vm1, %v9962_v17  ;;  %v9001_v17 = vld [vmem:[%s13678_s12 + $0x20] sm:$0xff] }
 0x7e9   : > { %v8238_v45 = vpop.permute.xlu1 %8237  ;;  %8310 = vmatprep.mubr.f32.mxu1 %v11022_v0 }
 0x7ea   : > { %v8234_v34 = vpop.permute.xlu0 %8233  ;;  %v8240_v42 = vsel %vm7419_vm10, %v8236_v26, %v8238_v45  ;;  %v9020_v45 = vld [vmem:[%s13678_s12 + $0xb8] sm:$0xff] }
 0x7eb   : > { %v8239_v35 = vsel %vm7419_vm10, %v8234_v34, %v8236_v26  ;;  %8246 = vmatprep.subr.mxu1 %v8240_v42  ;;  %v9019_v26 = vld [vmem:[%s13678_s12 + $0xb0] sm:$0xff]  ;;  %v10549_v34 = vpack.c.bf16 %v9002_v43, %v9001_v17  ;;  %v9100_v43 = vld [vmem:[%s13675_s9] sm:$0xff] }
 0x7ec   : > { %8247 = vmatpush1.msra.mxu1 %v8239_v35  ;;  %v10551_v42 = vpack.c.bf16 %v9020_v45, %v9019_v26  ;;  %v9003_v35 = vld [vmem:[%s13678_s12 + $0x30] sm:$0xff]  ;;  %v9101_v26 = vld [vmem:[%s13675_s9 + $0x8] sm:$0xff] }
 0x7ed   : > { %v8322_v37 = vpop.permute.xlu1 %8321 }
 0x7ee   : > { %v8324_v3 = vpop.permute.xlu0 %8323 }
 0x7ef   : > { %v8326_v11 = vsel %vm7506_vm11, %v8322_v37, %v8324_v3  ;;  %v9021_v3 = vld [vmem:[%s13678_s12 + $0xc0] sm:$0xff] }
 0x7f0   : > { %9964 = vmatmul.mubr.msk.f32.vlgmr.msra.gmra.mrb[14].mxu1 %vm584_vm1, %v8143_v28  ;;  %8332 = vmatprep.subr.mxu1 %v8326_v11  ;;  %v9022_v11 = vld [vmem:[%s13678_s12 + $0xc8] sm:$0xff] }
 0x7f1   : > { %v8320_v41 = vpop.permute.xlu1 %8319  ;;  %8396 = vmatprep.mubr.f32.mxu1 %v11022_v0 }
 0x7f2   : > { %v8325_v10 = vsel %vm7506_vm11, %v8320_v41, %v8322_v37  ;;  %v8410_v13 = vpop.permute.xlu0 %8409  ;;  %v9004_v37 = vld [vmem:[%s13678_s12 + $0x38] sm:$0xff]  ;;  %v9005_v41 = vld [vmem:[%s13678_s12 + $0x40] sm:$0xff] }
 0x7f3   : > { %8333 = vmatpush1.msra.mxu1 %v8325_v10  ;;  %v10553_v28 = vpack.c.bf16 %v9004_v37, %v9003_v35  ;;  %v10555_v10 = vpack.c.bf16 %v9022_v11, %v9021_v3  ;;  %v10572_v11 = vpack.c.bf16 %v9101_v26, %v9100_v43  ;;  %v10017_v43 = vld [vmem:[%s13675_s9 + $0x118] sm:$0xff]  ;;  %v10018_v26 = vld [vmem:[%s13675_s9 + $0x120] sm:$0xff] }
 0x7f5   : > { %v8412_v29 = vpop.permute.xlu1 %8411 }
 0x7f6   : > { %v8408_v55 = vpop.permute.xlu0 %8407  ;;  %v8414_v52 = vsel %vm1546_vm4, %v8410_v13, %v8412_v29 }
 0x7f7   : > { %v8413_v50 = vsel %vm1546_vm4, %v8408_v55, %v8410_v13  ;;  %8420 = vmatprep.subr.mxu1 %v8414_v52  ;;  %v9006_v13 = vld [vmem:[%s13678_s12 + $0x48] sm:$0xff]  ;;  %v9024_v55 = vld [vmem:[%s13678_s12 + $0xd8] sm:$0xff] }
 0x7f8   : > { %9966 = vmatmul.mubr.msk.f32.vlgmr.msra.gmra.mrb[14].mxu1 %vm584_vm1, %v9965_v46  ;;  %v10557_v29 = vpack.c.bf16 %v9006_v13, %v9005_v41  ;;  %v9023_v46 = vld [vmem:[%s13678_s12 + $0xd0] sm:$0xff] }
 0x7f9   : > { %8421 = vmatpush1.msra.mxu1 %v8413_v50  ;;  %v8582_v61 = vpop.permute.xlu1 %8581  ;;  %8484 = vmatprep.mubr.f32.mxu1 %v11022_v0  ;;  %v8939_v50 = vld [vmem:[%s13680_s14] sm:$0x3]  ;;  %v9102_v41 = vld [vmem:[%s13675_s9 + $0x10] sm:$0xff] }
 0x7fa   : > { %8498 = vmatprep.subr.mxu1 %v13145_v63  ;;  %v8584_v59 = vpop.permute.xlu0 %8583  ;;  %v8999_v63 = vld [vmem:[%s13678_s12 + $0x10] sm:$0xff] }
 0x7fb   : > { %v8586_v60 = vsel %vm2193_vm5, %v8582_v61, %v8584_v59  ;;  %v10545_v23 = vpack.c.bf16 %v9000_v54, %v8999_v63  ;;  %v9007_v59 = vld [vmem:[%s13678_s12 + $0x50] sm:$0xff] }
 0x7fd   : > { %v8580_v18 = vpop.permute.xlu1 %8579 }
 0x7fe   : > { %v8670_v53 = vpop.permute.xlu0 %8669  ;;  %v8585_v27 = vsel %vm2193_vm5, %v8580_v18, %v8582_v61  ;;  %v10559_v61 = vpack.c.bf16 %v9024_v55, %v9023_v46  ;;  %v9105_v46 = vld [vmem:[%s13675_s9 + $0x28] sm:$0xff] }
 0x800   : > { %9968 = vmatmul.mubr.msk.f32.vlgmr.msra.gmra.mrb[14].mxu1 %vm584_vm1, %v9967_v9  ;;  %v9008_v9 = vld [vmem:[%s13678_s12 + $0x58] sm:$0xff] }
 0x801   : > { %8499 = vmatpush1.msra.mxu1 %v13143_v15  ;;  %8562 = vmatprep.mubr.f32.mxu1 %v11022_v0  ;;  %v8672_v16 = vpop.permute.xlu1 %8671  ;;  %v10543_v15 = vpack.c.bf16 %v9016_v7, %v9015_v8  ;;  %v10561_v18 = vpack.c.bf16 %v9008_v9, %v9007_v59 }
 0x802   : > { %8592 = vmatprep.subr.mxu1 %v8586_v60  ;;  %v8668_v21 = vpop.permute.xlu0 %8667  ;;  %v8674_v12 = vsel %vm7855_vm12, %v8670_v53, %v8672_v16  ;;  %v8944_v16 = vrot.slane %v8939_v50, %v11521_v36  ;;  %v9010_v36 = vld [vmem:[%s13678_s12 + $0x68] sm:$0xff] }
 0x803   : > { %v8673_v30 = vsel %vm7855_vm12, %v8668_v21, %v8670_v53  ;;  %v9026_v21 = vld [vmem:[%s13678_s12 + $0xe8] sm:$0xff] }
 0x805   : > { %v8758_v56 = vpop.permute.xlu1 %8757 }
 0x806   : > { %v8760_v62 = vpop.permute.xlu0 %8759 }
 0x807   : > { %v8762_v32 = vsel %vm7944_vm13, %v8758_v56, %v8760_v62  ;;  %v9009_v62 = vld [vmem:[%s13678_s12 + $0x60] sm:$0xff] }
 0x808   : > { %9970 = vmatmul.mubr.msk.f32.vlgmr.msra.gmra.mrb[14].mxu1 %vm584_vm1, %v9969_v22 }
 0x809   : > { %8593 = vmatpush1.msra.mxu1 %v8585_v27  ;;  %8656 = vmatprep.mubr.f32.mxu1 %v11022_v0  ;;  %v8756_v1 = vpop.permute.xlu1 %8755  ;;  %v9025_v27 = vld [vmem:[%s13678_s12 + $0xe0] sm:$0xff] }
 0x80a   : > { %8680 = vmatprep.subr.mxu1 %v8674_v12  ;;  %v8846_v58 = vpop.permute.xlu0 %8845  ;;  %v8761_v31 = vsel %vm7944_vm13, %v8756_v1, %v8758_v56  ;;  %v8948_v56 = vrot.slane %v8939_v50, %v11537_v49  ;;  %v10565_v1 = vpack.c.bf16 %v9010_v36, %v9009_v62  ;;  %v9028_v49 = vld [vmem:[%s13678_s12 + $0xf8] sm:$0xff]  ;;  %v9987_v62 = vld [vmem:[%s13675_s9 + $0x68] sm:$0x1] }
 0x80b   : > { %v9981_v50 = vld [vmem:[%s13675_s9 + $0x38] sm:$0xff] }
 0x80d   : > { %v8848_v4 = vpop.permute.xlu1 %8847 }
 0x80e   : > { %v8850_v5 = vsel %vm8033_vm14, %v8846_v58, %v8848_v4  ;;  %v8844_v39 = vpop.permute.xlu0 %8843  ;;  %v9027_v4 = vld [vmem:[%s13678_s12 + $0xf0] sm:$0xff] }
 0x80f   : > { %v8849_v47 = vsel %vm8033_vm14, %v8844_v39, %v8846_v58  ;;  %v9012_v39 = vld [vmem:[%s13678_s12 + $0x78] sm:$0xff] }
 0x810   : > { %9972 = vmatmul.mubr.msk.f32.vlgmr.msra.gmra.mrb[14].mxu1 %vm584_vm1, %v9971_v6  ;;  %v10563_v6 = vpack.c.bf16 %v9026_v21, %v9025_v27  ;;  %v9985_v27 = vld [vmem:[%s13675_s9 + $0x58] sm:$0xff]  ;;  %v9986_v21 = vld [vmem:[%s13675_s9 + $0x60] sm:$0xff] }
 0x811   : > { %8681 = vmatpush1.msra.mxu1 %v8673_v30  ;;  %8744 = vmatprep.mubr.f32.mxu1 %v11022_v0 }
 0x812   : > { %8768 = vmatprep.subr.mxu1 %v8762_v32 }
 0x818   : > { %9974 = vmatmul.mubr.msk.f32.vlgmr.msra.gmra.mrb[14].mxu1 %vm584_vm1, %v9973_v20 }
 0x819   : > { %8769 = vmatpush1.msra.mxu1 %v8761_v31  ;;  %8832 = vmatprep.mubr.f32.mxu1 %v11022_v0  ;;  %v10567_v31 = vpack.c.bf16 %v9028_v49, %v9027_v4  ;;  %v9994_v4 = vld [vmem:[%s13675_s9 + $0x90] sm:$0xff]  ;;  %v9995_v49 = vld [vmem:[%s13675_s9 + $0x98] sm:$0xff] }
 0x81a   : > { %8856 = vmatprep.subr.mxu1 %v8850_v5  ;;  %v9011_v5 = vld [vmem:[%s13678_s12 + $0x70] sm:$0xff] }
 0x81e   : > { %v8933_v52 = vpop.permute.xlu1 %8932 }
 0x820   : > { %9976 = vmatmul.mubr.msk.f32.vlgmr.msra.gmra.mrb[14].mxu1 %vm584_vm1, %v9975_v40  ;;  %v10569_v40 = vpack.c.bf16 %v9012_v39, %v9011_v5  ;;  %v10000_v5 = vld [vmem:[%s13675_s9 + $0xb0] sm:$0xff]  ;;  %v9996_v39 = vld [vmem:[%s13675_s9 + $0xa0] sm:$0x1] }
 0x821   : > { %8857 = vmatpush1.msra.mxu1 %v8849_v47  ;;  %8920 = vmatprep.mubr.f32.mxu1 %v11022_v0 }
 0x822   : > { %10540 = vmatprep.subr.bf16.mxu1 %v10539_v25 }
 0x828   : > { %9978 = vmatmul.mubr.msk.f32.vlgmr.msra.gmra.mrb[14].mxu1 %vm584_vm1, %v9977_v48  ;;  %v11038_v48 = vmov 0.0|0.0   ;;  %vm9107_vm1 = vcmask 400384  }
 0x829   : > { %10542 = vmatpush3.bf16.msra.mxu1 %v10541_v33 }
 0x82a   : > { %10544 = vmatprep.subr.bf16.mxu1 %v10543_v15 }
 0x82d   : > { %10546 = vmatpush3.bf16.msra.mxu1 %v10545_v23 }
 0x82e   : > { %10548 = vmatprep.subr.bf16.mxu1 %v10547_v44 }
 0x831   : > { %10550 = vmatpush3.bf16.msra.mxu1 %v10549_v34 }
 0x832   : > { %10552 = vmatprep.subr.bf16.mxu1 %v10551_v42 }
 0x835   : > { %10554 = vmatpush3.bf16.msra.mxu1 %v10553_v28 }
 0x836   : > { %10556 = vmatprep.subr.bf16.mxu1 %v10555_v10  ;;  %v9103_v10 = vld [vmem:[%s13675_s9 + $0x18] sm:$0xff] }
 0x837   : > { %v10575_v13 = vpack.c.bf16 %v9103_v10, %v9102_v41  ;;  %v10026_v10 = vld [vmem:[%s13675_s9 + $0x150] sm:$0xff] }
 0x839   : > { %10558 = vmatpush3.bf16.msra.mxu1 %v10557_v29  ;;  %v9104_v29 = vld [vmem:[%s13675_s9 + $0x20] sm:$0xff] }
 0x83a   : > { %10560 = vmatprep.subr.bf16.mxu1 %v10559_v61  ;;  %v10578_v55 = vpack.c.bf16 %v9105_v46, %v9104_v29  ;;  %v9982_v61 = vld [vmem:[%s13675_s9 + $0x40] sm:$0xff]  ;;  %v10023_v29 = vld [vmem:[%s13675_s9 + $0x148] sm:$0x1] }
 0x83d   : > { %10562 = vmatpush3.bf16.msra.mxu1 %v10561_v18  ;;  %v10581_v18 = vpack.c.bf16 %v9982_v61, %v9981_v50  ;;  %v10029_v50 = vld [vmem:[%s13675_s9 + $0x168] sm:$0xff] }
 0x83e   : > { %10564 = vmatprep.subr.bf16.mxu1 %v10563_v6  ;;  %v9991_v6 = vld [vmem:[%s13675_s9 + $0x78] sm:$0xff] }
 0x841   : > { %10566 = vmatpush3.bf16.msra.mxu1 %v10565_v1  ;;  %v9992_v1 = vld [vmem:[%s13675_s9 + $0x80] sm:$0xff] }
 0x842   : > { %10568 = vmatprep.subr.bf16.mxu1 %v10567_v31  ;;  %v9999_v31 = vld [vmem:[%s13675_s9 + $0xa8] sm:$0xff] }
 0x845   : > { %10570 = vmatpush3.bf16.msra.mxu1 %v10569_v40  ;;  %v10599_v40 = vpack.c.bf16 %v10000_v5, %v9999_v31 }
 0x846   : > { %10571 = vmatprep.subr.bf16.mxu1 %v11038_v48 }
 0x8fb   : > { %v8922_v60 = vpop.f32.mrb[14].mxu1 }
 0x8fc   : > { %v8935_v53 = vadd.f32 %v8933_v52, %v8922_v60  ;;  %v8924_v22 = vpop.f32.mrb[15].mxu1 }
 0x8fd   : > { %v8936_v12 = vadd.f32 %v8933_v52, %v8924_v22  ;;  %v9106_v52 = vld [vmem:[%s13675_s9 + $0x30] sm:$0x1] }
 0x8fe   : > { %v8937_v30 = vmax.f32 %v8935_v53, 0.0  ;;  %v9983_v53 = vld [vmem:[%s13675_s9 + $0x48] sm:$0xff] }
 0x8ff   : > { %v8938_v32 = vmax.f32 %v8936_v12, 0.0  ;;  %v10587_v12 = vpack.c.bf16 %v9986_v21, %v9985_v27 }
 0x900   : > { %v8951_v20 = vmul.f32 %v8944_v16, %v8937_v30  ;;  %v9984_v16 = vld [vmem:[%s13675_s9 + $0x50] sm:$0xff] }
 0x901   : > { %v8952_v58 = vmul.f32 %v8948_v56, %v8938_v32  ;;  %v10584_v22 = vpack.c.bf16 %v9984_v16, %v9983_v53  ;;  %v9990_v56 = vld [vmem:[%s13675_s9 + $0x70] sm:$0xff]  ;;  %v9993_v32 = vld [vmem:[%s13675_s9 + $0x88] sm:$0xff] }
 0x902   : > { %8961 = vrot.lane.b32.xlu1 %v8951_v20, %s13713_s30  ;;  %v10590_v36 = vpack.c.bf16 %v9991_v6, %v9990_v56  ;;  %v10035_v53 = vld [vmem:[%s13675_s9 + $0x188] sm:$0xff]  ;;  %v10036_v16 = vld [vmem:[%s13675_s9 + $0x190] sm:$0xff]  ;;  %v10038_v56 = vld [vmem:[%s13675_s9 + $0x1a0] sm:$0xff] }
 0x903   : > { %v10943_v47 = vpack.i.bf16 %v11607_v19, %v8952_v58  ;;  %v10635_v27 = vpack.c.bf16 %v10036_v16, %v10035_v53 }
 0x905   : > { %10944 = vrot.lane.b32.xlu0 %v10943_v47, %s13713_s30  ;;  %s485_s30 = sand.u32 1, %s11012_s19  }
 0x906   : > { %8973 = vrot.lane.b32.xlu1 %v8951_v20, %s11036_s4  ;;  %s486_s17 = scalar_lea.vmem [#allocation4], %s485_s30  ;;  %s9784_s3 = scalar_lea.sflag [#allocation5], %s485_s30 }
 0x907   : > { %s9796_s23 = sshll.u32 %s486_s17, 4  ;;  %s13626_s23 = int_to_ptr.vmem [resolvable:$true] %s9796_s23 }
 0x908   : > { %s10958_s16 = scalar_lea.vmem %s13626_s23, 16  ;;  %p10965_p0 = scmp.lt.s32.totalorder %s13626_s23, %s10963_s0 }
 0x909   : > { %10949 = vrot.lane.b32.xlu0 %v10943_v47, %s11036_s4  ;;  %p10959_p11 = scmp.ne.s32.totalorder %s13626_s23, %s10958_s16  ;;  %p10966_p1 = scmp.lt.s32.totalorder %s10964_s27, %s10958_s16 }
 0x90a   : > { %8985 = vrot.lane.b32.xlu1 %v8951_v20, %s11037_s13 }
 0x90b   : > { %p10960_p12 = pnand %p10959_p11, %p11159_p5  ;;  %p10967_p2 = por %p10966_p1, %p10965_p0 }
 0x90d   : > { %10954 = vrot.lane.b32.xlu0 %v10943_v47, %s11037_s13  ;;  %p10961_p13 = pneg %p10960_p12 }
 0x90f   : > { %p10968_p3 = pnand %p10967_p2, %p10961_p13 }
 0x974   : > { %v8962_v57 = vpop.permute.xlu1 %8961 }
 0x977   : > { %v10945_v24 = vpop.permute.xlu0 %10944 }
 0x978   : > { %v10947_v51 = vunpack.i.h.bf16 %v10945_v24  ;;  %v10946_v25 = vunpack.i.l.bf16 %v10945_v24  ;;  %v8974_v19 = vpop.permute.xlu1 %8973  ;;  %v10002_v24 = vld [vmem:[%s13675_s9 + $0xc0] sm:$0xff] }
 0x97a   : > { %v8967_v8 = vsel %vm2193_vm5, %v8962_v57, %v10946_v25  ;;  %v8968_v7 = vsel %vm2193_vm5, %v10946_v25, %v10947_v51  ;;  %v10001_v57 = vld [vmem:[%s13675_s9 + $0xb8] sm:$0xff]  ;;  %v10003_v25 = vld [vmem:[%s13675_s9 + $0xc8] sm:$0xff] }
 0x97b   : > { %v10950_v38 = vpop.permute.xlu0 %10949  ;;  %v8971_v14 = vmax.f32 %v8951_v20, %v8967_v8  ;;  %v8972_v2 = vmax.f32 %v8952_v58, %v8968_v7  ;;  %v10593_v20 = vpack.c.bf16 %v9993_v32, %v9992_v1  ;;  %v10596_v58 = vpack.c.bf16 %v9995_v49, %v9994_v4  ;;  %v10008_v8 = vld [vmem:[%s13675_s9 + $0xe0] sm:$0xff]  ;;  %v10009_v7 = vld [vmem:[%s13675_s9 + $0xe8] sm:$0xff]  ;;  %v10041_v1 = vld [vmem:[%s13675_s9 + $0x1b8] sm:$0x1] }
 0x97c   : > { %v10952_v33 = vunpack.i.h.bf16 %v10950_v38  ;;  %v10951_v15 = vunpack.i.l.bf16 %v10950_v38  ;;  %v8986_v34 = vpop.permute.xlu1 %8985  ;;  %v10602_v51 = vpack.c.bf16 %v10002_v24, %v10001_v57 }
 0x97e   : > { %v8979_v63 = vsel %vm7944_vm13, %v8974_v19, %v10951_v15  ;;  %v8980_v54 = vsel %vm7944_vm13, %v10951_v15, %v10952_v33  ;;  %v10004_v19 = vld [vmem:[%s13675_s9 + $0xd0] sm:$0xff]  ;;  %v10005_v33 = vld [vmem:[%s13675_s9 + $0xd8] sm:$0x1]  ;;  %v10608_v15 = vpack.c.bf16 %v10009_v7, %v10008_v8 }
 0x97f   : > { %v10955_v23 = vpop.permute.xlu0 %10954  ;;  %v8983_v45 = vmax.f32 %v8971_v14, %v8979_v63  ;;  %v8984_v42 = vmax.f32 %v8972_v2, %v8980_v54  ;;  %v10605_v38 = vpack.c.bf16 %v10004_v19, %v10003_v25  ;;  %v10010_v54 = vld [vmem:[%s13675_s9 + $0xf0] sm:$0xff]  ;;  %v10011_v14 = vld [vmem:[%s13675_s9 + $0xf8] sm:$0xff] }
 0x980   : > { %v10957_v44 = vunpack.i.h.bf16 %v10955_v23  ;;  %v10956_v17 = vunpack.i.l.bf16 %v10955_v23  ;;  %v10611_v2 = vpack.c.bf16 %v10011_v14, %v10010_v54  ;;  %v10012_v23 = vld [vmem:[%s13675_s9 + $0x100] sm:$0xff] }
 0x982   : > { %v8991_v35 = vsel %vm8033_vm14, %v8986_v34, %v10956_v17  ;;  %v8992_v37 = vsel %vm8033_vm14, %v10956_v17, %v10957_v44  ;;  %v10013_v44 = vld [vmem:[%s13675_s9 + $0x108] sm:$0xff]  ;;  %v10617_v34 = vpack.c.bf16 %v10018_v26, %v10017_v43 }
 0x983   : > { %v8995_v28 = vmax.f32 %v8983_v45, %v8991_v35  ;;  %v8996_v3 = vmax.f32 %v8984_v42, %v8992_v37  ;;  %v10614_v17 = vpack.c.bf16 %v10013_v44, %v10012_v23  ;;  %v10014_v45 = vld [vmem:[%s13675_s9 + $0x110] sm:$0x1]  ;;  %v10019_v35 = vld [vmem:[%s13675_s9 + $0x128] sm:$0xff] }
 0x984   : > { %v10020_v37 = vld [vmem:[%s13675_s9 + $0x130] sm:$0xff] }
 0x985   : > { %9093 = vmatprep.mubr.f32.mxu1 %v8996_v3  ;;  %v10021_v3 = vld [vmem:[%s13675_s9 + $0x138] sm:$0xff] }
 0x986   : > { %9094 = vmatmul.mubr.f32.vlgmr.msra.gmra.mrb[16].mxu1 %v8995_v28  ;;  %v10620_v28 = vpack.c.bf16 %v10020_v37, %v10019_v35 }
 0x987   : > { %10573 = vmatpush3.bf16.msra.mxu1 %v10572_v11  ;;  %10161 = vmatprep.mubr.msk.f32.mxu1 %vm11039_vm0, %v11022_v0  ;;  %v10022_v11 = vld [vmem:[%s13675_s9 + $0x140] sm:$0xff] }
 0x988   : > { %10574 = vmatprep.subr.bf16.mxu1 %v11038_v48  ;;  %v10623_v41 = vpack.c.bf16 %v10022_v11, %v10021_v3 }
 0x98b   : > { %10576 = vmatpush3.bf16.msra.mxu1 %v10575_v13  ;;  %v10027_v13 = vld [vmem:[%s13675_s9 + $0x158] sm:$0xff] }
 0x98c   : > { %10577 = vmatprep.subr.bf16.mxu1 %v11038_v48  ;;  %v10626_v46 = vpack.c.bf16 %v10027_v13, %v10026_v10 }
 0x98f   : > { %10579 = vmatpush3.bf16.msra.mxu1 %v10578_v55 }
 0x990   : > { %10159 = vmatprep.subr.mxu1 %v11022_v0 }
 0x993   : > { %10160 = vmatpush3.msk.msra.mxu1 %vm9111_vm15, %v9106_v52  ;;  %v10028_v52 = vld [vmem:[%s13675_s9 + $0x160] sm:$0xff] }
 0x994   : > { %10580 = vmatprep.subr.bf16.mxu1 %v11038_v48  ;;  %v10629_v61 = vpack.c.bf16 %v10029_v50, %v10028_v52 }
 0xa59   : > { %v10080_v59 = vpop.f32.mrb[16].mxu1 }
 0xa5a   : > { %v10081_v9 = vpop.f32.mrb[17].mxu1 }
 0xa5b   : > { %v13409_v60 = vadd.f32 %v10081_v9, %v10080_v59  ;;  %v10030_v59 = vld [vmem:[%s13675_s9 + $0x170] sm:$0xff]  ;;  %v10031_v9 = vld [vmem:[%s13675_s9 + $0x178] sm:$0xff] }
 0xa5d   : > { %10162 = vmatmul.mubr.msk.f32.vlgmr.msra.gmra.mrb[18].mxu1 %vm9107_vm1, %v13409_v60  ;;  %v9194_v30 = vrot.slane %v13409_v60, 1  ;;  %v9279_v47 = vrot.slane %v13409_v60, 2  ;;  %v9364_v63 = vrot.slane %v13409_v60, 3  ;;  %v9449_v42 = vrot.slane %v13409_v60, 4 }
 0xa5e   : > { %10582 = vmatpush3.bf16.msra.mxu1 %v10581_v18  ;;  %10178 = vmatprep.mubr.msk.f32.mxu1 %vm11039_vm0, %v11022_v0  ;;  %v9534_v55 = vrot.slane %v13409_v60, 5  ;;  %v10632_v18 = vpack.c.bf16 %v10031_v9, %v10030_v59  ;;  %v9619_v21 = vrot.slane %v13409_v60, 6  ;;  %v9704_v32 = vrot.slane %v13409_v60, 7 }
 0xa5f   : > { %10583 = vmatprep.subr.bf16.mxu1 %v11038_v48 }
 0xa62   : > { %10585 = vmatpush3.bf16.msra.mxu1 %v10584_v22  ;;  %v10032_v22 = vld [vmem:[%s13675_s9 + $0x180] sm:$0x1] }
 0xa63   : > { %10586 = vmatprep.subr.bf16.mxu1 %v11038_v48 }
 0xa66   : > { %10588 = vmatpush3.bf16.msra.mxu1 %v10587_v12  ;;  %v10037_v12 = vld [vmem:[%s13675_s9 + $0x198] sm:$0xff] }
 0xa67   : > { %10176 = vmatprep.subr.mxu1 %v11022_v0  ;;  %v10638_v6 = vpack.c.bf16 %v10038_v56, %v10037_v12 }
 0xa6a   : > { %10177 = vmatpush3.msk.msra.mxu1 %vm9111_vm15, %v9987_v62  ;;  %v10039_v62 = vld [vmem:[%s13675_s9 + $0x1a8] sm:$0xff] }
 0xa6b   : > { %10179 = vmatmul.mubr.msk.f32.vlgmr.msra.gmra.mrb[18].mxu1 %vm9107_vm1, %v9194_v30  ;;  %10589 = vmatprep.subr.bf16.mxu1 %v11038_v48 }
 0xa6c   : > { %10591 = vmatpush3.bf16.msra.mxu1 %v10590_v36  ;;  %10195 = vmatprep.mubr.msk.f32.mxu1 %vm11039_vm0, %v11022_v0  ;;  %v10040_v36 = vld [vmem:[%s13675_s9 + $0x1b0] sm:$0xff] }
 0xa6d   : > { %10592 = vmatprep.subr.bf16.mxu1 %v11038_v48  ;;  %v10641_v30 = vpack.c.bf16 %v10040_v36, %v10039_v62 }
 0xa70   : > { %10594 = vmatpush3.bf16.msra.mxu1 %v10593_v20  ;;  %v9099_v20 = vld [vmem:[%s13676_s10] sm:$0x1] }
 0xa71   : > { %10595 = vmatprep.subr.bf16.mxu1 %v11038_v48 }
 0xa74   : > { %10597 = vmatpush3.bf16.msra.mxu1 %v10596_v58 }
 0xa75   : > { %10193 = vmatprep.subr.mxu1 %v11022_v0 }
 0xa78   : > { %10194 = vmatpush3.msk.msra.mxu1 %vm9111_vm15, %v9996_v39 }
 0xa79   : > { %10196 = vmatmul.mubr.msk.f32.vlgmr.msra.gmra.mrb[18].mxu1 %vm9107_vm1, %v9279_v47  ;;  %10598 = vmatprep.subr.bf16.mxu1 %v11038_v48 }
 0xa7a   : > { %10600 = vmatpush3.bf16.msra.mxu1 %v10599_v40  ;;  %10212 = vmatprep.mubr.msk.f32.mxu1 %vm11039_vm0, %v11022_v0 }
 0xa7b   : > { %10601 = vmatprep.subr.bf16.mxu1 %v11038_v48 }
 0xa7e   : > { %10603 = vmatpush3.bf16.msra.mxu1 %v10602_v51 }
 0xa7f   : > { %10604 = vmatprep.subr.bf16.mxu1 %v11038_v48 }
 0xa82   : > { %10606 = vmatpush3.bf16.msra.mxu1 %v10605_v38 }
 0xa83   : > { %10210 = vmatprep.subr.mxu1 %v11022_v0 }
 0xa86   : > { %10211 = vmatpush3.msk.msra.mxu1 %vm9111_vm15, %v10005_v33 }
 0xa87   : > { %10213 = vmatmul.mubr.msk.f32.vlgmr.msra.gmra.mrb[18].mxu1 %vm9107_vm1, %v9364_v63  ;;  %10607 = vmatprep.subr.bf16.mxu1 %v11038_v48 }
 0xa88   : > { %10609 = vmatpush3.bf16.msra.mxu1 %v10608_v15  ;;  %10229 = vmatprep.mubr.msk.f32.mxu1 %vm11039_vm0, %v11022_v0 }
 0xa89   : > { %10610 = vmatprep.subr.bf16.mxu1 %v11038_v48 }
 0xa8c   : > { %10612 = vmatpush3.bf16.msra.mxu1 %v10611_v2 }
 0xa8d   : > { %10613 = vmatprep.subr.bf16.mxu1 %v11038_v48 }
 0xa90   : > { %10615 = vmatpush3.bf16.msra.mxu1 %v10614_v17 }
 0xa91   : > { %10227 = vmatprep.subr.mxu1 %v11022_v0 }
 0xa94   : > { %10228 = vmatpush3.msk.msra.mxu1 %vm9111_vm15, %v10014_v45 }
 0xa95   : > { %10230 = vmatmul.mubr.msk.f32.vlgmr.msra.gmra.mrb[18].mxu1 %vm9107_vm1, %v9449_v42  ;;  %10616 = vmatprep.subr.bf16.mxu1 %v11038_v48 }
 0xa96   : > { %10618 = vmatpush3.bf16.msra.mxu1 %v10617_v34  ;;  %10246 = vmatprep.mubr.msk.f32.mxu1 %vm11039_vm0, %v11022_v0 }
 0xa97   : > { %10619 = vmatprep.subr.bf16.mxu1 %v11038_v48 }
 0xa9a   : > { %10621 = vmatpush3.bf16.msra.mxu1 %v10620_v28 }
 0xa9b   : > { %10622 = vmatprep.subr.bf16.mxu1 %v11038_v48 }
 0xa9e   : > { %10624 = vmatpush3.bf16.msra.mxu1 %v10623_v41 }
 0xa9f   : > { %10244 = vmatprep.subr.mxu1 %v11022_v0 }
 0xaa2   : > { %10245 = vmatpush3.msk.msra.mxu1 %vm9111_vm15, %v10023_v29 }
 0xaa3   : > { %10247 = vmatmul.mubr.msk.f32.vlgmr.msra.gmra.mrb[18].mxu1 %vm9107_vm1, %v9534_v55  ;;  %10625 = vmatprep.subr.bf16.mxu1 %v11038_v48 }
 0xaa4   : > { %10627 = vmatpush3.bf16.msra.mxu1 %v10626_v46  ;;  %10263 = vmatprep.mubr.msk.f32.mxu1 %vm11039_vm0, %v11022_v0 }
 0xaa5   : > { %10628 = vmatprep.subr.bf16.mxu1 %v11038_v48 }
 0xaa8   : > { %10630 = vmatpush3.bf16.msra.mxu1 %v10629_v61 }
 0xaa9   : > { %10631 = vmatprep.subr.bf16.mxu1 %v11038_v48 }
 0xaac   : > { %10633 = vmatpush3.bf16.msra.mxu1 %v10632_v18 }
 0xaad   : > { %10261 = vmatprep.subr.mxu1 %v11022_v0 }
 0xab0   : > { %10262 = vmatpush3.msk.msra.mxu1 %vm9111_vm15, %v10032_v22 }
 0xab1   : > { %10264 = vmatmul.mubr.msk.f32.vlgmr.msra.gmra.mrb[18].mxu1 %vm9107_vm1, %v9619_v21  ;;  %10634 = vmatprep.subr.bf16.mxu1 %v11038_v48 }
 0xab2   : > { %10636 = vmatpush3.bf16.msra.mxu1 %v10635_v27  ;;  %10280 = vmatprep.mubr.msk.f32.mxu1 %vm11039_vm0, %v11022_v0 }
 0xab3   : > { %10637 = vmatprep.subr.bf16.mxu1 %v11038_v48 }
 0xab6   : > { %10639 = vmatpush3.bf16.msra.mxu1 %v10638_v6 }
 0xab7   : > { %10640 = vmatprep.subr.bf16.mxu1 %v11038_v48 }
 0xaba   : > { %10642 = vmatpush3.bf16.msra.mxu1 %v10641_v30 }
 0xabb   : > { %10278 = vmatprep.subr.mxu1 %v11022_v0 }
 0xabe   : > { %10279 = vmatpush3.msk.msra.mxu1 %vm9111_vm15, %v10041_v1 }
 0xabf   : > { %10281 = vmatmul.mubr.msk.f32.vlgmr.msra.gmra.mrb[18].mxu1 %vm9107_vm1, %v9704_v32 }
 0xb92   : > { %v9776_v0 = vpop.f32.mrb[18].mxu1 }
 0xb93   : > { %v10647_v48 = vadd.f32 %v9776_v0, %v9099_v20  ;;  %v10282_v4 = vpop.f32.mrb[19].mxu1 }
 0xb95   : > { %9782 = vst.msk [vmem:[%s486_s17] sm:$0x1] %vm9781_vm2, %v10647_v48 }
 0xb96   : > { %10971 = shalt.err (!%p10968_p3)
}
 0xb97   : > { %s10972_s20 = scalar_lea.hbm %s13624_s2, 16  ;;  %s10976_s13 = scalar_lea.hbm %s13681_s15, 32 }
 0xb98   : > { %p10973_p4 = scmp.ne.s32.totalorder %s13624_s2, %s10972_s20  ;;  %p10977_p9 = scmp.lt.u32.totalorder %s13624_s2, %s13681_s15 }
 0xb99   : > { %p10978_p10 = scmp.lt.u32.totalorder %s10976_s13, %s10972_s20  ;;  %p10980_p12 = scmp.lt.u32.totalorder %s10972_s20, %s13624_s2 }
 0xb9a   : > { %p10974_p7 = pnand %p10973_p4, %p11159_p5 }
 0xb9b   : > { %p10979_p11 = por %p10978_p10, %p10977_p9 }
 0xb9c   : > { %p10975_p8 = pneg %p10974_p7 }
 0xb9d   : > { %p10981_p13 = por %p10980_p12, %p10979_p11 }
 0xb9f   : > { %p10982_p0 = pnand %p10981_p13, %p10975_p8 }
 0xba1   : > { %10985 = shalt.err (!%p10982_p0)
}
 0xba2   : > { %10824 = dma.vmem_to_hbm [thread:$0]  (%p11159_p5), %s13626_s23, 16, %s13624_s2, %s9784_s3  }
 0xba3 PF: > { %p10830_p1 = scmp.ge.s32.totalorder %s11020_s21, 2  ;;  %s9808_s26 = sand.u32 1, %s11008_s18  }
 0xba4   : > { %s9809_s1 = scalar_lea.sflag [#allocation5], %s9808_s26 }
 0xba5   : > { %p10827_p2 = pnand %p10830_p1, %p11163_p6 }
 0xba7   : > { %11003 = dma.done.wait (!%p10827_p2), %s9809_s1, 16  }
 0xba8   : > { %11005 = vsyncadd (!%p10827_p2), %s9809_s1, 4294967280  ;;  %s13720_s16 = sld [smem:[#allocation7_spill]]  ;;  %s13721_s20 = sld [smem:[#allocation8_spill]] }
 0xba9   : > { %p25_p3 = scmp.ge.s32.totalorder %s11146_s24, 4   ;;  %s13722_s18 = smov %s11012_s19 }
 0xbaa   : > { %s13724_s21 = smov %s11146_s24 }
 0xbab   :  { %27 = sbr.rel (!%p25_p3) target bundleno = 10 (0xa), region = 154 }
 0xbae   : > { %s13723_s19 = smov %s13720_s16 }
 0xbb2   :  { %9813 = vsyncpa [#allocation5], 1 }
 0xbb3   :  { %9815 = vsyncpa [#allocation5 + $0x1], 1 }

</bundles_post_ra>
